<compile_context>
chip_gen: v5e
topology: v5e:2x2
jax: 0.10.0
libtpu: 0.0.40
codegen_flags: <defaults>
</compile_context>

<pallas_src>
import functools

import jax
import jax.numpy as jnp
import numpy as np
from jax import lax
from jax.experimental import pallas as pl
from jax.experimental.pallas import tpu as pltpu

EPS = 1e-5                        # PyTorch BatchNorm2d default
VMEM_LIMIT = 48 * 1024 * 1024     # sized against v7x's 64 MiB physical VMEM (v5e/v6e: 128 MiB)
HALO_ROWS = 8                     # sublane-aligned vertical halo window; covers pad <= 4 (k <= 9)


def _pick_row_block(H, P, WpC, WC, nb):
    """Largest row-block th (multiple of 8, divides H) whose f32 working set fits VMEM."""
    budget = VMEM_LIMIT // 2                        # headroom for Mosaic internal scratch
    per_row = 4 * (2 * WpC                          # double-buffered main input window
                   + 2 * nb * WC                    # double-buffered packed output tile
                   + WpC                            # xw window value
                   + (2 * P + 1) * WC               # lane-shifted views
                   + ((2 * P + 1) ** 2 + 2) * WC)   # shared (dy,dx) views + acc / y temps
    th = 8
    for cand in range(8, min(H, 1024) + 1, 8):
        if H % cand == 0 and cand * per_row <= budget:
            th = cand
    return th


def _load_window(xm_ref, xh_ref, pad):
    """Load this grid step's (th + 2P, WpC) padded row window exactly once."""
    xm = xm_ref[...].astype(jnp.float32)
    if pad == 0:
        return xm
    xh = xh_ref[0:2 * pad, :].astype(jnp.float32)     # first 2P rows of the 8-row halo block
    return jnp.concatenate([xm, xh], axis=0)


def _conv_views(xw, pad, th, w, c):
    """2P+1 lane-shifted full-height views plus memoized (dy, dx) row views.

    The views are shared by every tap of every branch (smaller-kernel footprints are
    subsets of the largest kernel's), cutting relayout work from sum(k^2) slices to a
    handful of shared shifts per grid step."""
    wc = w * c
    xs = [xw[:, j * c: j * c + wc] for j in range(2 * pad + 1)]
    cache = {}

    def view(i, j):
        if (i, j) not in cache:
            cache[(i, j)] = xs[j][i:i + th, :]
        return cache[(i, j)]

    return view


def _branch_conv(view, wt_ref, k, pad, th, wc):
    """Depthwise k x k convolution for one branch on the shared window views -> (th, WC) f32."""
    p = k // 2
    wts = wt_ref[...]                                  # (k*k, WC) tap weights, loaded once
    acc = jnp.zeros((th, wc), jnp.float32)
    for dy in range(k):
        for dx in range(k):
            t = dy * k + dx
            xv = view(pad - p + dy, pad - p + dx)
            acc = acc + xv * wts[t:t + 1, :]
    return acc


def _make_stats_kernel(kernel_sizes, th, pad, w, c):
    """Phase 1: per-batch partial sums / sums-of-squares of each DW-conv branch output."""
    nb = len(kernel_sizes)
    wc = w * c

    def kernel(xm_ref, xh_ref, *rest):
        # xm_ref : (th, WpC)  this row block of the padded input
        # xh_ref : (8, WpC)   the 8 rows just below it (vertical conv halo)
        # rest   : nb tap-weight refs (k*k, WC), then per-batch stats accumulator (2*nb, WC)
        wt_refs = rest[:nb]
        stats_ref = rest[nb]

        @pl.when(pl.program_id(1) == 0)                # first row block of this batch
        def _():
            stats_ref[...] = jnp.zeros_like(stats_ref)

        view = _conv_views(_load_window(xm_ref, xh_ref, pad), pad, th, w, c)
        for br, k in enumerate(kernel_sizes):
            acc = _branch_conv(view, wt_refs[br], k, pad, th, wc)
            # Single-pass f32 moments (var = E[x^2] - mean^2 folded in the wrapper).
            # TODO(synk): mean-shifted / Welford accumulation for very large B*H*W where
            #             cancellation could matter; fine at these scales.
            stats_ref[2 * br:2 * br + 1, :] = (
                stats_ref[2 * br:2 * br + 1, :]
                + jnp.sum(acc, axis=0, keepdims=True))
            stats_ref[2 * br + 1:2 * br + 2, :] = (
                stats_ref[2 * br + 1:2 * br + 2, :]
                + jnp.sum(acc * acc, axis=0, keepdims=True))

    return kernel


def _make_apply_kernel(kernel_sizes, th, pad, w, c):
    """Phase 2: recompute DW conv, fuse BN normalize + ReLU6, write one packed lane-dense slab."""
    nb = len(kernel_sizes)
    wc = w * c

    def kernel(xm_ref, xh_ref, *rest):
        wt_refs = rest[:nb]
        scale_ref = rest[nb]          # (nb, WC)  gamma * rsqrt(var + eps), lane-tiled
        shift_ref = rest[nb + 1]      # (nb, WC)  beta  - mean * scale,     lane-tiled
        out_ref = rest[nb + 2]        # (th, nb*WC) packed output, one aligned slab per branch

        view = _conv_views(_load_window(xm_ref, xh_ref, pad), pad, th, w, c)
        scales = scale_ref[...]
        shifts = shift_ref[...]
        for br, k in enumerate(kernel_sizes):
            acc = _branch_conv(view, wt_refs[br], k, pad, th, wc)
            y = acc * scales[br:br + 1, :] + shifts[br:br + 1, :]
            y = jnp.clip(y, 0.0, 6.0)                  # ReLU6
            out_ref[:, br * wc:(br + 1) * wc] = y.astype(out_ref.dtype)

    return kernel


@functools.partial(jax.jit, static_argnames=("kernel_sizes",))
def msdc_forward(x_nchw, dw_weights, gammas, betas, *, kernel_sizes):
    """x_nchw: (B, C, H, W); dw_weights: list of (k, k, C); gammas/betas: (nb, C).
    Returns a list of (B, C, H, W) outputs, one per kernel size (dw_parallel=True)."""
    B, C, H, W = x_nchw.shape
    nb = len(kernel_sizes)
    P = max(k // 2 for k in kernel_sizes)
    assert P <= HALO_ROWS // 2, "kernel sizes up to 9 supported"
    assert H % 8 == 0, "H must be a multiple of 8"
    WC = W * C
    WpC = (W + 2 * P) * C

    th = _pick_row_block(H, P, WpC, WC, nb)            # biggest row block that fits VMEM
    nH = H // th

    # Layout glue: NCHW -> NHWC -> zero-pad spatially -> lane-flatten rows to (W+2P)*C.
    # Bottom padding is extended to HALO_ROWS rows so the 8-row Blocked halo window below
    # never reads out of bounds; the extra zero rows are never used by the convolution.
    x = jnp.transpose(x_nchw, (0, 2, 3, 1))
    xpad = jnp.pad(x, ((0, 0), (P, HALO_ROWS - P), (P, P), (0, 0)))
    xpad = xpad.reshape(B, H + HALO_ROWS, WpC)

    # Per-branch depthwise tap weights, tiled along the lane axis: (k*k, W*C).
    wt_list = [
        jnp.tile(dw_weights[br].astype(jnp.float32).reshape(k * k, 1, C),
                 (1, W, 1)).reshape(k * k, WC)
        for br, k in enumerate(kernel_sizes)
    ]

    # Halo handled by passing xpad twice: a th-row main block and the aligned 8-row block
    # directly below it.  Both are plain Blocked specs -> full auto-pipelining, no gathered
    # copy of the input in HBM.
    x_main_spec = pl.BlockSpec((None, th, WpC), lambda b, i: (b, i, 0))
    x_halo_spec = pl.BlockSpec((None, HALO_ROWS, WpC),
                               lambda b, i: (b, (i + 1) * (th // HALO_ROWS), 0))
    wt_specs = [pl.BlockSpec((k * k, WC), lambda b, i: (0, 0)) for k in kernel_sizes]

    # ---- Phase 1: BN statistics (per-batch partial accumulators, batch axis parallel) ----
    stats = pl.pallas_call(
        _make_stats_kernel(kernel_sizes, th, P, W, C),
        out_shape=jax.ShapeDtypeStruct((B, 2 * nb, WC), jnp.float32),
        grid=(B, nH),
        in_specs=[x_main_spec, x_halo_spec] + wt_specs,
        out_specs=pl.BlockSpec((None, 2 * nb, WC), lambda b, i: (b, 0, 0)),
        compiler_params=pltpu.CompilerParams(
            dimension_semantics=("parallel", "arbitrary"),   # megacore over batches on v7x
            vmem_limit_bytes=VMEM_LIMIT),
    )(xpad, xpad, *wt_list)
    stats = stats.sum(axis=0)                                # fold per-batch partials

    # Fold batch statistics into per-channel scale/shift (tiny wrapper math).
    n = B * H * W
    stats_c = stats.reshape(2 * nb, W, C).sum(axis=1)        # collapse W -> (2*nb, C)
    mean = stats_c[0::2] / n                                 # (nb, C)
    var = stats_c[1::2] / n - mean * mean                    # biased (training-mode) variance
    scale_c = gammas * lax.rsqrt(var + EPS)
    shift_c = betas - mean * scale_c
    scale = jnp.tile(scale_c[:, None, :], (1, W, 1)).reshape(nb, WC)
    shift = jnp.tile(shift_c[:, None, :], (1, W, 1)).reshape(nb, WC)

    # ---- Phase 2: fused DW conv + BN + ReLU6, one packed lane-dense output slab ----
    out = pl.pallas_call(
        _make_apply_kernel(kernel_sizes, th, P, W, C),
        out_shape=jax.ShapeDtypeStruct((B, H, nb * WC), x_nchw.dtype),
        grid=(B, nH),
        in_specs=[x_main_spec, x_halo_spec] + wt_specs + [
            pl.BlockSpec((nb, WC), lambda b, i: (0, 0)),
            pl.BlockSpec((nb, WC), lambda b, i: (0, 0)),
        ],
        out_specs=pl.BlockSpec((None, th, nb * WC), lambda b, i: (b, i, 0)),
        compiler_params=pltpu.CompilerParams(
            dimension_semantics=("parallel", "parallel"),    # fully independent tiles
            vmem_limit_bytes=VMEM_LIMIT),
    )(xpad, xpad, *wt_list, scale, shift)

    # Split packed slab: (B, H, nb*WC) -> nb x (B, C, H, W).
    outs = []
    for br in range(nb):
        o = out[:, :, br * WC:(br + 1) * WC].reshape(B, H, W, C)
        outs.append(jnp.transpose(o, (0, 3, 1, 2)))
    return outs


def msdc_reference(x_nchw, dw_weights, gammas, betas, kernel_sizes):
    """Pure-JAX reference matching the PyTorch module (training-mode BN, ReLU6)."""
    B, C, H, W = x_nchw.shape
    x = jnp.transpose(x_nchw, (0, 2, 3, 1))
    outs = []
    for br, k in enumerate(kernel_sizes):
        p = k // 2
        rhs = dw_weights[br][:, :, None, :]                  # (k, k, 1, C) HWIO depthwise
        y = lax.conv_general_dilated(
            x, rhs, window_strides=(1, 1), padding=[(p, p), (p, p)],
            dimension_numbers=("NHWC", "HWIO", "NHWC"), feature_group_count=C)
        mean = jnp.mean(y, axis=(0, 1, 2), keepdims=True)
        var = jnp.mean((y - mean) ** 2, axis=(0, 1, 2), keepdims=True)
        y = (y - mean) * lax.rsqrt(var + EPS) * gammas[br] + betas[br]
        y = jnp.clip(y, 0.0, 6.0)
        outs.append(jnp.transpose(y, (0, 3, 1, 2)))
    return outs


if __name__ == "__main__":
    B, C, H, W = 2, 8, 16, 16
    kernel_sizes = (1, 3, 5)   # multi-scale depthwise branches

    key = jax.random.PRNGKey(0)
    keys = jax.random.split(key, 1 + len(kernel_sizes))
    x = jax.random.normal(keys[0], (B, C, H, W), jnp.float32)
    # _init_weights(scheme='normal'): conv weights ~ N(0, 0.02), no conv bias,
    # BatchNorm gamma = 1, beta = 0.
    dw_weights = [0.02 * jax.random.normal(keys[1 + i], (k, k, C), jnp.float32)
                  for i, k in enumerate(kernel_sizes)]
    gammas = jnp.ones((len(kernel_sizes), C), jnp.float32)
    betas = jnp.zeros((len(kernel_sizes), C), jnp.float32)

    outs = msdc_forward(x, dw_weights, gammas, betas, kernel_sizes=kernel_sizes)
    outs = [jax.block_until_ready(o) for o in outs]
    refs = msdc_reference(x, dw_weights, gammas, betas, kernel_sizes)

    assert len(outs) == len(kernel_sizes)
    for o, r in zip(outs, refs):
        assert o.shape == (B, C, H, W), o.shape
        np.testing.assert_allclose(np.asarray(o), np.asarray(r), rtol=1e-4, atol=1e-4)
    print("KERNEL_OK")
</pallas_src>

<mosaic_0001>
module attributes {stable_mosaic.version = 11 : i64} {
  func.func @kernel(%arg0: i32, %arg1: i32, %arg2: memref<1x16x160xf32, #tpu.memory_space<vmem>>, %arg3: memref<1x8x160xf32, #tpu.memory_space<vmem>>, %arg4: memref<1x128xf32, #tpu.memory_space<vmem>>, %arg5: memref<9x128xf32, #tpu.memory_space<vmem>>, %arg6: memref<25x128xf32, #tpu.memory_space<vmem>>, %arg7: memref<1x6x128xf32, #tpu.memory_space<vmem>>) attributes {dimension_semantics = [#tpu.dimension_semantics<parallel>, #tpu.dimension_semantics<arbitrary>], iteration_bounds = array<i64: 2, 1>, scalar_prefetch = 0 : i64, scratch_operands = 0 : i64, tpu.core_type = #tpu.core_type<tc>, window_params = [{transform_indices = @transform_0, window_bounds = array<i64: 1, 16, 160>}, {transform_indices = @transform_1, window_bounds = array<i64: 1, 8, 160>}, {pipeline_mode = #tpu.pipeline_mode<synchronous>, transform_indices = @transform_2, window_bounds = array<i64: 1, 128>}, {pipeline_mode = #tpu.pipeline_mode<synchronous>, transform_indices = @transform_3, window_bounds = array<i64: 9, 128>}, {pipeline_mode = #tpu.pipeline_mode<synchronous>, transform_indices = @transform_4, window_bounds = array<i64: 25, 128>}, {transform_indices = @transform_5, window_bounds = array<i64: 1, 6, 128>}]} {
    %c0_i32 = arith.constant 0 : i32
    %0 = arith.cmpi eq, %arg1, %c0_i32 : i32
    %1 = arith.extui %0 : i1 to i32
    %c0_i32_0 = arith.constant 0 : i32
    %2 = arith.cmpi ne, %1, %c0_i32_0 : i32
    scf.if %2 {
      %cst_51 = arith.constant 0.000000e+00 : f32
      %234 = vector.broadcast %cst_51 : f32 to vector<6x128xf32>
      %c0_52 = arith.constant 0 : index
      %c0_53 = arith.constant 0 : index
      %c0_54 = arith.constant 0 : index
      %235 = vector.load %arg7[%c0_52, %c0_53, %c0_54] : memref<1x6x128xf32, #tpu.memory_space<vmem>>, vector<1x6x128xf32>
      %236 = vector.shape_cast %235 : vector<1x6x128xf32> to vector<6x128xf32>
      %237 = vector.shape_cast %234 : vector<6x128xf32> to vector<1x6x128xf32>
      tpu.vector_store %arg7[%c0_52, %c0_53, %c0_54], %237 {strides = array<i32>} : memref<1x6x128xf32, #tpu.memory_space<vmem>>, vector<1x6x128xf32>,
    } else {
    }
    %c0 = arith.constant 0 : index
    %c0_1 = arith.constant 0 : index
    %c0_2 = arith.constant 0 : index
    %3 = vector.load %arg2[%c0, %c0_1, %c0_2] : memref<1x16x160xf32, #tpu.memory_space<vmem>>, vector<1x16x160xf32>
    %4 = vector.shape_cast %3 : vector<1x16x160xf32> to vector<16x160xf32>
    %c0_3 = arith.constant 0 : index
    %c0_4 = arith.constant 0 : index
    %c0_5 = arith.constant 0 : index
    %5 = vector.load %arg3[%c0_3, %c0_4, %c0_5] : memref<1x8x160xf32, #tpu.memory_space<vmem>>, vector<1x4x160xf32>
    %6 = vector.shape_cast %5 : vector<1x4x160xf32> to vector<4x160xf32>
    %7 = tpu.concatenate %4, %6 in 0 : vector<16x160xf32>, vector<4x160xf32> -> vector<20x160xf32>
    %8 = vector.extract_strided_slice %7 {offsets = [0, 0], sizes = [20, 128], strides = [1, 1]} : vector<20x160xf32> to vector<20x128xf32>
    %9 = vector.extract_strided_slice %7 {offsets = [0, 8], sizes = [20, 128], strides = [1, 1]} : vector<20x160xf32> to vector<20x128xf32>
    %10 = vector.extract_strided_slice %7 {offsets = [0, 16], sizes = [20, 128], strides = [1, 1]} : vector<20x160xf32> to vector<20x128xf32>
    %11 = vector.extract_strided_slice %7 {offsets = [0, 24], sizes = [20, 128], strides = [1, 1]} : vector<20x160xf32> to vector<20x128xf32>
    %12 = vector.extract_strided_slice %7 {offsets = [0, 32], sizes = [20, 128], strides = [1, 1]} : vector<20x160xf32> to vector<20x128xf32>
    %c0_6 = arith.constant 0 : index
    %c0_7 = arith.constant 0 : index
    %13 = vector.load %arg4[%c0_6, %c0_7] : memref<1x128xf32, #tpu.memory_space<vmem>>, vector<1x128xf32>
    %cst = arith.constant 0.000000e+00 : f32
    %14 = vector.broadcast %cst : f32 to vector<16x128xf32>
    %15 = vector.extract_strided_slice %10 {offsets = [2, 0], sizes = [16, 128], strides = [1, 1]} : vector<20x128xf32> to vector<16x128xf32>
    %16 = vector.broadcast %13 : vector<1x128xf32> to vector<16x128xf32>
    %17 = arith.mulf %15, %16 : vector<16x128xf32>
    %18 = arith.addf %14, %17 : vector<16x128xf32>
    %c0_8 = arith.constant 0 : index
    %c0_9 = arith.constant 0 : index
    %c0_10 = arith.constant 0 : index
    %19 = vector.load %arg7[%c0_8, %c0_9, %c0_10] : memref<1x6x128xf32, #tpu.memory_space<vmem>>, vector<1x1x128xf32>
    %20 = vector.shape_cast %19 : vector<1x1x128xf32> to vector<1x128xf32>
    %cst_11 = arith.constant dense<0.000000e+00> : vector<128xf32>
    %21 = vector.multi_reduction <add>, %18, %cst_11 [0] : vector<16x128xf32> to vector<128xf32>
    %22 = vector.shape_cast %21 : vector<128xf32> to vector<1x128xf32>
    %23 = arith.addf %20, %22 : vector<1x128xf32>
    %c0_12 = arith.constant 0 : index
    %c0_13 = arith.constant 0 : index
    %c0_14 = arith.constant 0 : index
    %24 = vector.load %arg7[%c0_12, %c0_13, %c0_14] : memref<1x6x128xf32, #tpu.memory_space<vmem>>, vector<1x1x128xf32>
    %25 = vector.shape_cast %24 : vector<1x1x128xf32> to vector<1x128xf32>
    %26 = vector.shape_cast %23 : vector<1x128xf32> to vector<1x1x128xf32>
    tpu.vector_store %arg7[%c0_12, %c0_13, %c0_14], %26 {strides = array<i32>} : memref<1x6x128xf32, #tpu.memory_space<vmem>>, vector<1x1x128xf32>,
    %c0_15 = arith.constant 0 : index
    %c1 = arith.constant 1 : index
    %c0_16 = arith.constant 0 : index
    %27 = vector.load %arg7[%c0_15, %c1, %c0_16] : memref<1x6x128xf32, #tpu.memory_space<vmem>>, vector<1x1x128xf32>
    %28 = vector.shape_cast %27 : vector<1x1x128xf32> to vector<1x128xf32>
    %29 = arith.mulf %18, %18 : vector<16x128xf32>
    %cst_17 = arith.constant dense<0.000000e+00> : vector<128xf32>
    %30 = vector.multi_reduction <add>, %29, %cst_17 [0] : vector<16x128xf32> to vector<128xf32>
    %31 = vector.shape_cast %30 : vector<128xf32> to vector<1x128xf32>
    %32 = arith.addf %28, %31 : vector<1x128xf32>
    %c0_18 = arith.constant 0 : index
    %c1_19 = arith.constant 1 : index
    %c0_20 = arith.constant 0 : index
    %33 = vector.load %arg7[%c0_18, %c1_19, %c0_20] : memref<1x6x128xf32, #tpu.memory_space<vmem>>, vector<1x1x128xf32>
    %34 = vector.shape_cast %33 : vector<1x1x128xf32> to vector<1x128xf32>
    %35 = vector.shape_cast %32 : vector<1x128xf32> to vector<1x1x128xf32>
    tpu.vector_store %arg7[%c0_18, %c1_19, %c0_20], %35 {strides = array<i32>} : memref<1x6x128xf32, #tpu.memory_space<vmem>>, vector<1x1x128xf32>,
    %c0_21 = arith.constant 0 : index
    %c0_22 = arith.constant 0 : index
    %36 = vector.load %arg5[%c0_21, %c0_22] : memref<9x128xf32, #tpu.memory_space<vmem>>, vector<9x128xf32>
    %cst_23 = arith.constant 0.000000e+00 : f32
    %37 = vector.broadcast %cst_23 : f32 to vector<16x128xf32>
    %38 = vector.extract_strided_slice %9 {offsets = [1, 0], sizes = [16, 128], strides = [1, 1]} : vector<20x128xf32> to vector<16x128xf32>
    %39 = vector.extract_strided_slice %36 {offsets = [0, 0], sizes = [1, 128], strides = [1, 1]} : vector<9x128xf32> to vector<1x128xf32>
    %40 = vector.broadcast %39 : vector<1x128xf32> to vector<16x128xf32>
    %41 = arith.mulf %38, %40 : vector<16x128xf32>
    %42 = arith.addf %37, %41 : vector<16x128xf32>
    %43 = vector.extract_strided_slice %10 {offsets = [1, 0], sizes = [16, 128], strides = [1, 1]} : vector<20x128xf32> to vector<16x128xf32>
    %44 = vector.extract_strided_slice %36 {offsets = [1, 0], sizes = [1, 128], strides = [1, 1]} : vector<9x128xf32> to vector<1x128xf32>
    %45 = vector.broadcast %44 : vector<1x128xf32> to vector<16x128xf32>
    %46 = arith.mulf %43, %45 : vector<16x128xf32>
    %47 = arith.addf %42, %46 : vector<16x128xf32>
    %48 = vector.extract_strided_slice %11 {offsets = [1, 0], sizes = [16, 128], strides = [1, 1]} : vector<20x128xf32> to vector<16x128xf32>
    %49 = vector.extract_strided_slice %36 {offsets = [2, 0], sizes = [1, 128], strides = [1, 1]} : vector<9x128xf32> to vector<1x128xf32>
    %50 = vector.broadcast %49 : vector<1x128xf32> to vector<16x128xf32>
    %51 = arith.mulf %48, %50 : vector<16x128xf32>
    %52 = arith.addf %47, %51 : vector<16x128xf32>
    %53 = vector.extract_strided_slice %9 {offsets = [2, 0], sizes = [16, 128], strides = [1, 1]} : vector<20x128xf32> to vector<16x128xf32>
    %54 = vector.extract_strided_slice %36 {offsets = [3, 0], sizes = [1, 128], strides = [1, 1]} : vector<9x128xf32> to vector<1x128xf32>
    %55 = vector.broadcast %54 : vector<1x128xf32> to vector<16x128xf32>
    %56 = arith.mulf %53, %55 : vector<16x128xf32>
    %57 = arith.addf %52, %56 : vector<16x128xf32>
    %58 = vector.extract_strided_slice %36 {offsets = [4, 0], sizes = [1, 128], strides = [1, 1]} : vector<9x128xf32> to vector<1x128xf32>
    %59 = vector.broadcast %58 : vector<1x128xf32> to vector<16x128xf32>
    %60 = arith.mulf %15, %59 : vector<16x128xf32>
    %61 = arith.addf %57, %60 : vector<16x128xf32>
    %62 = vector.extract_strided_slice %11 {offsets = [2, 0], sizes = [16, 128], strides = [1, 1]} : vector<20x128xf32> to vector<16x128xf32>
    %63 = vector.extract_strided_slice %36 {offsets = [5, 0], sizes = [1, 128], strides = [1, 1]} : vector<9x128xf32> to vector<1x128xf32>
    %64 = vector.broadcast %63 : vector<1x128xf32> to vector<16x128xf32>
    %65 = arith.mulf %62, %64 : vector<16x128xf32>
    %66 = arith.addf %61, %65 : vector<16x128xf32>
    %67 = vector.extract_strided_slice %9 {offsets = [3, 0], sizes = [16, 128], strides = [1, 1]} : vector<20x128xf32> to vector<16x128xf32>
    %68 = vector.extract_strided_slice %36 {offsets = [6, 0], sizes = [1, 128], strides = [1, 1]} : vector<9x128xf32> to vector<1x128xf32>
    %69 = vector.broadcast %68 : vector<1x128xf32> to vector<16x128xf32>
    %70 = arith.mulf %67, %69 : vector<16x128xf32>
    %71 = arith.addf %66, %70 : vector<16x128xf32>
    %72 = vector.extract_strided_slice %10 {offsets = [3, 0], sizes = [16, 128], strides = [1, 1]} : vector<20x128xf32> to vector<16x128xf32>
    %73 = vector.extract_strided_slice %36 {offsets = [7, 0], sizes = [1, 128], strides = [1, 1]} : vector<9x128xf32> to vector<1x128xf32>
    %74 = vector.broadcast %73 : vector<1x128xf32> to vector<16x128xf32>
    %75 = arith.mulf %72, %74 : vector<16x128xf32>
    %76 = arith.addf %71, %75 : vector<16x128xf32>
    %77 = vector.extract_strided_slice %11 {offsets = [3, 0], sizes = [16, 128], strides = [1, 1]} : vector<20x128xf32> to vector<16x128xf32>
    %78 = vector.extract_strided_slice %36 {offsets = [8, 0], sizes = [1, 128], strides = [1, 1]} : vector<9x128xf32> to vector<1x128xf32>
    %79 = vector.broadcast %78 : vector<1x128xf32> to vector<16x128xf32>
    %80 = arith.mulf %77, %79 : vector<16x128xf32>
    %81 = arith.addf %76, %80 : vector<16x128xf32>
    %c0_24 = arith.constant 0 : index
    %c2 = arith.constant 2 : index
    %c0_25 = arith.constant 0 : index
    %82 = vector.load %arg7[%c0_24, %c2, %c0_25] : memref<1x6x128xf32, #tpu.memory_space<vmem>>, vector<1x1x128xf32>
    %83 = vector.shape_cast %82 : vector<1x1x128xf32> to vector<1x128xf32>
    %cst_26 = arith.constant dense<0.000000e+00> : vector<128xf32>
    %84 = vector.multi_reduction <add>, %81, %cst_26 [0] : vector<16x128xf32> to vector<128xf32>
    %85 = vector.shape_cast %84 : vector<128xf32> to vector<1x128xf32>
    %86 = arith.addf %83, %85 : vector<1x128xf32>
    %c0_27 = arith.constant 0 : index
    %c2_28 = arith.constant 2 : index
    %c0_29 = arith.constant 0 : index
    %87 = vector.load %arg7[%c0_27, %c2_28, %c0_29] : memref<1x6x128xf32, #tpu.memory_space<vmem>>, vector<1x1x128xf32>
    %88 = vector.shape_cast %87 : vector<1x1x128xf32> to vector<1x128xf32>
    %89 = vector.shape_cast %86 : vector<1x128xf32> to vector<1x1x128xf32>
    tpu.vector_store %arg7[%c0_27, %c2_28, %c0_29], %89 {strides = array<i32>} : memref<1x6x128xf32, #tpu.memory_space<vmem>>, vector<1x1x128xf32>,
    %c0_30 = arith.constant 0 : index
    %c3 = arith.constant 3 : index
    %c0_31 = arith.constant 0 : index
    %90 = vector.load %arg7[%c0_30, %c3, %c0_31] : memref<1x6x128xf32, #tpu.memory_space<vmem>>, vector<1x1x128xf32>
    %91 = vector.shape_cast %90 : vector<1x1x128xf32> to vector<1x128xf32>
    %92 = arith.mulf %81, %81 : vector<16x128xf32>
    %cst_32 = arith.constant dense<0.000000e+00> : vector<128xf32>
    %93 = vector.multi_reduction <add>, %92, %cst_32 [0] : vector<16x128xf32> to vector<128xf32>
    %94 = vector.shape_cast %93 : vector<128xf32> to vector<1x128xf32>
    %95 = arith.addf %91, %94 : vector<1x128xf32>
    %c0_33 = arith.constant 0 : index
    %c3_34 = arith.constant 3 : index
    %c0_35 = arith.constant 0 : index
    %96 = vector.load %arg7[%c0_33, %c3_34, %c0_35] : memref<1x6x128xf32, #tpu.memory_space<vmem>>, vector<1x1x128xf32>
    %97 = vector.shape_cast %96 : vector<1x1x128xf32> to vector<1x128xf32>
    %98 = vector.shape_cast %95 : vector<1x128xf32> to vector<1x1x128xf32>
    tpu.vector_store %arg7[%c0_33, %c3_34, %c0_35], %98 {strides = array<i32>} : memref<1x6x128xf32, #tpu.memory_space<vmem>>, vector<1x1x128xf32>,
    %c0_36 = arith.constant 0 : index
    %c0_37 = arith.constant 0 : index
    %99 = vector.load %arg6[%c0_36, %c0_37] : memref<25x128xf32, #tpu.memory_space<vmem>>, vector<25x128xf32>
    %cst_38 = arith.constant 0.000000e+00 : f32
    %100 = vector.broadcast %cst_38 : f32 to vector<16x128xf32>
    %101 = vector.extract_strided_slice %8 {offsets = [0, 0], sizes = [16, 128], strides = [1, 1]} : vector<20x128xf32> to vector<16x128xf32>
    %102 = vector.extract_strided_slice %99 {offsets = [0, 0], sizes = [1, 128], strides = [1, 1]} : vector<25x128xf32> to vector<1x128xf32>
    %103 = vector.broadcast %102 : vector<1x128xf32> to vector<16x128xf32>
    %104 = arith.mulf %101, %103 : vector<16x128xf32>
    %105 = arith.addf %100, %104 : vector<16x128xf32>
    %106 = vector.extract_strided_slice %9 {offsets = [0, 0], sizes = [16, 128], strides = [1, 1]} : vector<20x128xf32> to vector<16x128xf32>
    %107 = vector.extract_strided_slice %99 {offsets = [1, 0], sizes = [1, 128], strides = [1, 1]} : vector<25x128xf32> to vector<1x128xf32>
    %108 = vector.broadcast %107 : vector<1x128xf32> to vector<16x128xf32>
    %109 = arith.mulf %106, %108 : vector<16x128xf32>
    %110 = arith.addf %105, %109 : vector<16x128xf32>
    %111 = vector.extract_strided_slice %10 {offsets = [0, 0], sizes = [16, 128], strides = [1, 1]} : vector<20x128xf32> to vector<16x128xf32>
    %112 = vector.extract_strided_slice %99 {offsets = [2, 0], sizes = [1, 128], strides = [1, 1]} : vector<25x128xf32> to vector<1x128xf32>
    %113 = vector.broadcast %112 : vector<1x128xf32> to vector<16x128xf32>
    %114 = arith.mulf %111, %113 : vector<16x128xf32>
    %115 = arith.addf %110, %114 : vector<16x128xf32>
    %116 = vector.extract_strided_slice %11 {offsets = [0, 0], sizes = [16, 128], strides = [1, 1]} : vector<20x128xf32> to vector<16x128xf32>
    %117 = vector.extract_strided_slice %99 {offsets = [3, 0], sizes = [1, 128], strides = [1, 1]} : vector<25x128xf32> to vector<1x128xf32>
    %118 = vector.broadcast %117 : vector<1x128xf32> to vector<16x128xf32>
    %119 = arith.mulf %116, %118 : vector<16x128xf32>
    %120 = arith.addf %115, %119 : vector<16x128xf32>
    %121 = vector.extract_strided_slice %12 {offsets = [0, 0], sizes = [16, 128], strides = [1, 1]} : vector<20x128xf32> to vector<16x128xf32>
    %122 = vector.extract_strided_slice %99 {offsets = [4, 0], sizes = [1, 128], strides = [1, 1]} : vector<25x128xf32> to vector<1x128xf32>
    %123 = vector.broadcast %122 : vector<1x128xf32> to vector<16x128xf32>
    %124 = arith.mulf %121, %123 : vector<16x128xf32>
    %125 = arith.addf %120, %124 : vector<16x128xf32>
    %126 = vector.extract_strided_slice %8 {offsets = [1, 0], sizes = [16, 128], strides = [1, 1]} : vector<20x128xf32> to vector<16x128xf32>
    %127 = vector.extract_strided_slice %99 {offsets = [5, 0], sizes = [1, 128], strides = [1, 1]} : vector<25x128xf32> to vector<1x128xf32>
    %128 = vector.broadcast %127 : vector<1x128xf32> to vector<16x128xf32>
    %129 = arith.mulf %126, %128 : vector<16x128xf32>
    %130 = arith.addf %125, %129 : vector<16x128xf32>
    %131 = vector.extract_strided_slice %99 {offsets = [6, 0], sizes = [1, 128], strides = [1, 1]} : vector<25x128xf32> to vector<1x128xf32>
    %132 = vector.broadcast %131 : vector<1x128xf32> to vector<16x128xf32>
    %133 = arith.mulf %38, %132 : vector<16x128xf32>
    %134 = arith.addf %130, %133 : vector<16x128xf32>
    %135 = vector.extract_strided_slice %99 {offsets = [7, 0], sizes = [1, 128], strides = [1, 1]} : vector<25x128xf32> to vector<1x128xf32>
    %136 = vector.broadcast %135 : vector<1x128xf32> to vector<16x128xf32>
    %137 = arith.mulf %43, %136 : vector<16x128xf32>
    %138 = arith.addf %134, %137 : vector<16x128xf32>
    %139 = vector.extract_strided_slice %99 {offsets = [8, 0], sizes = [1, 128], strides = [1, 1]} : vector<25x128xf32> to vector<1x128xf32>
    %140 = vector.broadcast %139 : vector<1x128xf32> to vector<16x128xf32>
    %141 = arith.mulf %48, %140 : vector<16x128xf32>
    %142 = arith.addf %138, %141 : vector<16x128xf32>
    %143 = vector.extract_strided_slice %12 {offsets = [1, 0], sizes = [16, 128], strides = [1, 1]} : vector<20x128xf32> to vector<16x128xf32>
    %144 = vector.extract_strided_slice %99 {offsets = [9, 0], sizes = [1, 128], strides = [1, 1]} : vector<25x128xf32> to vector<1x128xf32>
    %145 = vector.broadcast %144 : vector<1x128xf32> to vector<16x128xf32>
    %146 = arith.mulf %143, %145 : vector<16x128xf32>
    %147 = arith.addf %142, %146 : vector<16x128xf32>
    %148 = vector.extract_strided_slice %8 {offsets = [2, 0], sizes = [16, 128], strides = [1, 1]} : vector<20x128xf32> to vector<16x128xf32>
    %149 = vector.extract_strided_slice %99 {offsets = [10, 0], sizes = [1, 128], strides = [1, 1]} : vector<25x128xf32> to vector<1x128xf32>
    %150 = vector.broadcast %149 : vector<1x128xf32> to vector<16x128xf32>
    %151 = arith.mulf %148, %150 : vector<16x128xf32>
    %152 = arith.addf %147, %151 : vector<16x128xf32>
    %153 = vector.extract_strided_slice %99 {offsets = [11, 0], sizes = [1, 128], strides = [1, 1]} : vector<25x128xf32> to vector<1x128xf32>
    %154 = vector.broadcast %153 : vector<1x128xf32> to vector<16x128xf32>
    %155 = arith.mulf %53, %154 : vector<16x128xf32>
    %156 = arith.addf %152, %155 : vector<16x128xf32>
    %157 = vector.extract_strided_slice %99 {offsets = [12, 0], sizes = [1, 128], strides = [1, 1]} : vector<25x128xf32> to vector<1x128xf32>
    %158 = vector.broadcast %157 : vector<1x128xf32> to vector<16x128xf32>
    %159 = arith.mulf %15, %158 : vector<16x128xf32>
    %160 = arith.addf %156, %159 : vector<16x128xf32>
    %161 = vector.extract_strided_slice %99 {offsets = [13, 0], sizes = [1, 128], strides = [1, 1]} : vector<25x128xf32> to vector<1x128xf32>
    %162 = vector.broadcast %161 : vector<1x128xf32> to vector<16x128xf32>
    %163 = arith.mulf %62, %162 : vector<16x128xf32>
    %164 = arith.addf %160, %163 : vector<16x128xf32>
    %165 = vector.extract_strided_slice %12 {offsets = [2, 0], sizes = [16, 128], strides = [1, 1]} : vector<20x128xf32> to vector<16x128xf32>
    %166 = vector.extract_strided_slice %99 {offsets = [14, 0], sizes = [1, 128], strides = [1, 1]} : vector<25x128xf32> to vector<1x128xf32>
    %167 = vector.broadcast %166 : vector<1x128xf32> to vector<16x128xf32>
    %168 = arith.mulf %165, %167 : vector<16x128xf32>
    %169 = arith.addf %164, %168 : vector<16x128xf32>
    %170 = vector.extract_strided_slice %8 {offsets = [3, 0], sizes = [16, 128], strides = [1, 1]} : vector<20x128xf32> to vector<16x128xf32>
    %171 = vector.extract_strided_slice %99 {offsets = [15, 0], sizes = [1, 128], strides = [1, 1]} : vector<25x128xf32> to vector<1x128xf32>
    %172 = vector.broadcast %171 : vector<1x128xf32> to vector<16x128xf32>
    %173 = arith.mulf %170, %172 : vector<16x128xf32>
    %174 = arith.addf %169, %173 : vector<16x128xf32>
    %175 = vector.extract_strided_slice %99 {offsets = [16, 0], sizes = [1, 128], strides = [1, 1]} : vector<25x128xf32> to vector<1x128xf32>
    %176 = vector.broadcast %175 : vector<1x128xf32> to vector<16x128xf32>
    %177 = arith.mulf %67, %176 : vector<16x128xf32>
    %178 = arith.addf %174, %177 : vector<16x128xf32>
    %179 = vector.extract_strided_slice %99 {offsets = [17, 0], sizes = [1, 128], strides = [1, 1]} : vector<25x128xf32> to vector<1x128xf32>
    %180 = vector.broadcast %179 : vector<1x128xf32> to vector<16x128xf32>
    %181 = arith.mulf %72, %180 : vector<16x128xf32>
    %182 = arith.addf %178, %181 : vector<16x128xf32>
    %183 = vector.extract_strided_slice %99 {offsets = [18, 0], sizes = [1, 128], strides = [1, 1]} : vector<25x128xf32> to vector<1x128xf32>
    %184 = vector.broadcast %183 : vector<1x128xf32> to vector<16x128xf32>
    %185 = arith.mulf %77, %184 : vector<16x128xf32>
    %186 = arith.addf %182, %185 : vector<16x128xf32>
    %187 = vector.extract_strided_slice %12 {offsets = [3, 0], sizes = [16, 128], strides = [1, 1]} : vector<20x128xf32> to vector<16x128xf32>
    %188 = vector.extract_strided_slice %99 {offsets = [19, 0], sizes = [1, 128], strides = [1, 1]} : vector<25x128xf32> to vector<1x128xf32>
    %189 = vector.broadcast %188 : vector<1x128xf32> to vector<16x128xf32>
    %190 = arith.mulf %187, %189 : vector<16x128xf32>
    %191 = arith.addf %186, %190 : vector<16x128xf32>
    %192 = vector.extract_strided_slice %8 {offsets = [4, 0], sizes = [16, 128], strides = [1, 1]} : vector<20x128xf32> to vector<16x128xf32>
    %193 = vector.extract_strided_slice %99 {offsets = [20, 0], sizes = [1, 128], strides = [1, 1]} : vector<25x128xf32> to vector<1x128xf32>
    %194 = vector.broadcast %193 : vector<1x128xf32> to vector<16x128xf32>
    %195 = arith.mulf %192, %194 : vector<16x128xf32>
    %196 = arith.addf %191, %195 : vector<16x128xf32>
    %197 = vector.extract_strided_slice %9 {offsets = [4, 0], sizes = [16, 128], strides = [1, 1]} : vector<20x128xf32> to vector<16x128xf32>
    %198 = vector.extract_strided_slice %99 {offsets = [21, 0], sizes = [1, 128], strides = [1, 1]} : vector<25x128xf32> to vector<1x128xf32>
    %199 = vector.broadcast %198 : vector<1x128xf32> to vector<16x128xf32>
    %200 = arith.mulf %197, %199 : vector<16x128xf32>
    %201 = arith.addf %196, %200 : vector<16x128xf32>
    %202 = vector.extract_strided_slice %10 {offsets = [4, 0], sizes = [16, 128], strides = [1, 1]} : vector<20x128xf32> to vector<16x128xf32>
    %203 = vector.extract_strided_slice %99 {offsets = [22, 0], sizes = [1, 128], strides = [1, 1]} : vector<25x128xf32> to vector<1x128xf32>
    %204 = vector.broadcast %203 : vector<1x128xf32> to vector<16x128xf32>
    %205 = arith.mulf %202, %204 : vector<16x128xf32>
    %206 = arith.addf %201, %205 : vector<16x128xf32>
    %207 = vector.extract_strided_slice %11 {offsets = [4, 0], sizes = [16, 128], strides = [1, 1]} : vector<20x128xf32> to vector<16x128xf32>
    %208 = vector.extract_strided_slice %99 {offsets = [23, 0], sizes = [1, 128], strides = [1, 1]} : vector<25x128xf32> to vector<1x128xf32>
    %209 = vector.broadcast %208 : vector<1x128xf32> to vector<16x128xf32>
    %210 = arith.mulf %207, %209 : vector<16x128xf32>
    %211 = arith.addf %206, %210 : vector<16x128xf32>
    %212 = vector.extract_strided_slice %12 {offsets = [4, 0], sizes = [16, 128], strides = [1, 1]} : vector<20x128xf32> to vector<16x128xf32>
    %213 = vector.extract_strided_slice %99 {offsets = [24, 0], sizes = [1, 128], strides = [1, 1]} : vector<25x128xf32> to vector<1x128xf32>
    %214 = vector.broadcast %213 : vector<1x128xf32> to vector<16x128xf32>
    %215 = arith.mulf %212, %214 : vector<16x128xf32>
    %216 = arith.addf %211, %215 : vector<16x128xf32>
    %c0_39 = arith.constant 0 : index
    %c4 = arith.constant 4 : index
    %c0_40 = arith.constant 0 : index
    %217 = vector.load %arg7[%c0_39, %c4, %c0_40] : memref<1x6x128xf32, #tpu.memory_space<vmem>>, vector<1x1x128xf32>
    %218 = vector.shape_cast %217 : vector<1x1x128xf32> to vector<1x128xf32>
    %cst_41 = arith.constant dense<0.000000e+00> : vector<128xf32>
    %219 = vector.multi_reduction <add>, %216, %cst_41 [0] : vector<16x128xf32> to vector<128xf32>
    %220 = vector.shape_cast %219 : vector<128xf32> to vector<1x128xf32>
    %221 = arith.addf %218, %220 : vector<1x128xf32>
    %c0_42 = arith.constant 0 : index
    %c4_43 = arith.constant 4 : index
    %c0_44 = arith.constant 0 : index
    %222 = vector.load %arg7[%c0_42, %c4_43, %c0_44] : memref<1x6x128xf32, #tpu.memory_space<vmem>>, vector<1x1x128xf32>
    %223 = vector.shape_cast %222 : vector<1x1x128xf32> to vector<1x128xf32>
    %224 = vector.shape_cast %221 : vector<1x128xf32> to vector<1x1x128xf32>
    tpu.vector_store %arg7[%c0_42, %c4_43, %c0_44], %224 {strides = array<i32>} : memref<1x6x128xf32, #tpu.memory_space<vmem>>, vector<1x1x128xf32>,
    %c0_45 = arith.constant 0 : index
    %c5 = arith.constant 5 : index
    %c0_46 = arith.constant 0 : index
    %225 = vector.load %arg7[%c0_45, %c5, %c0_46] : memref<1x6x128xf32, #tpu.memory_space<vmem>>, vector<1x1x128xf32>
    %226 = vector.shape_cast %225 : vector<1x1x128xf32> to vector<1x128xf32>
    %227 = arith.mulf %216, %216 : vector<16x128xf32>
    %cst_47 = arith.constant dense<0.000000e+00> : vector<128xf32>
    %228 = vector.multi_reduction <add>, %227, %cst_47 [0] : vector<16x128xf32> to vector<128xf32>
    %229 = vector.shape_cast %228 : vector<128xf32> to vector<1x128xf32>
    %230 = arith.addf %226, %229 : vector<1x128xf32>
    %c0_48 = arith.constant 0 : index
    %c5_49 = arith.constant 5 : index
    %c0_50 = arith.constant 0 : index
    %231 = vector.load %arg7[%c0_48, %c5_49, %c0_50] : memref<1x6x128xf32, #tpu.memory_space<vmem>>, vector<1x1x128xf32>
    %232 = vector.shape_cast %231 : vector<1x1x128xf32> to vector<1x128xf32>
    %233 = vector.shape_cast %230 : vector<1x128xf32> to vector<1x1x128xf32>
    tpu.vector_store %arg7[%c0_48, %c5_49, %c0_50], %233 {strides = array<i32>} : memref<1x6x128xf32, #tpu.memory_space<vmem>>, vector<1x1x128xf32>,
    return
  }
  func.func @transform_0(%arg0: i32, %arg1: i32) -> (i32, i32, i32) {
    %c0_i32 = arith.constant 0 : i32
    %c0_i32_0 = arith.constant 0 : i32
    return %arg0, %arg1, %c0_i32 : i32, i32, i32
  }
  func.func @transform_1(%arg0: i32, %arg1: i32) -> (i32, i32, i32) {
    %c1_i32 = arith.constant 1 : i32
    %0 = arith.addi %arg1, %c1_i32 : i32
    %c2_i32 = arith.constant 2 : i32
    %1 = arith.muli %0, %c2_i32 : i32
    %c0_i32 = arith.constant 0 : i32
    %c0_i32_0 = arith.constant 0 : i32
    return %arg0, %1, %c0_i32 : i32, i32, i32
  }
  func.func @transform_2(%arg0: i32, %arg1: i32) -> (i32, i32) {
    %c0_i32 = arith.constant 0 : i32
    %c0_i32_0 = arith.constant 0 : i32
    %c0_i32_1 = arith.constant 0 : i32
    return %c0_i32, %c0_i32_0 : i32, i32
  }
  func.func @transform_3(%arg0: i32, %arg1: i32) -> (i32, i32) {
    %c0_i32 = arith.constant 0 : i32
    %c0_i32_0 = arith.constant 0 : i32
    %c0_i32_1 = arith.constant 0 : i32
    return %c0_i32, %c0_i32_0 : i32, i32
  }
  func.func @transform_4(%arg0: i32, %arg1: i32) -> (i32, i32) {
    %c0_i32 = arith.constant 0 : i32
    %c0_i32_0 = arith.constant 0 : i32
    %c0_i32_1 = arith.constant 0 : i32
    return %c0_i32, %c0_i32_0 : i32, i32
  }
  func.func @transform_5(%arg0: i32, %arg1: i32) -> (i32, i32, i32) {
    %c0_i32 = arith.constant 0 : i32
    %c0_i32_0 = arith.constant 0 : i32
    %c0_i32_1 = arith.constant 0 : i32
    return %arg0, %c0_i32, %c0_i32_0 : i32, i32, i32
  }
}

module attributes {stable_mosaic.version = 11 : i64} {
  func.func @kernel(%arg0: i32, %arg1: i32, %arg2: memref<1x16x160xf32, #tpu.memory_space<vmem>>, %arg3: memref<1x8x160xf32, #tpu.memory_space<vmem>>, %arg4: memref<1x128xf32, #tpu.memory_space<vmem>>, %arg5: memref<9x128xf32, #tpu.memory_space<vmem>>, %arg6: memref<25x128xf32, #tpu.memory_space<vmem>>, %arg7: memref<3x128xf32, #tpu.memory_space<vmem>>, %arg8: memref<3x128xf32, #tpu.memory_space<vmem>>, %arg9: memref<1x16x384xf32, #tpu.memory_space<vmem>>) attributes {dimension_semantics = [#tpu.dimension_semantics<parallel>, #tpu.dimension_semantics<parallel>], iteration_bounds = array<i64: 2, 1>, scalar_prefetch = 0 : i64, scratch_operands = 0 : i64, tpu.core_type = #tpu.core_type<tc>, window_params = [{transform_indices = @transform_0, window_bounds = array<i64: 1, 16, 160>}, {transform_indices = @transform_1, window_bounds = array<i64: 1, 8, 160>}, {pipeline_mode = #tpu.pipeline_mode<synchronous>, transform_indices = @transform_2, window_bounds = array<i64: 1, 128>}, {pipeline_mode = #tpu.pipeline_mode<synchronous>, transform_indices = @transform_3, window_bounds = array<i64: 9, 128>}, {pipeline_mode = #tpu.pipeline_mode<synchronous>, transform_indices = @transform_4, window_bounds = array<i64: 25, 128>}, {pipeline_mode = #tpu.pipeline_mode<synchronous>, transform_indices = @transform_5, window_bounds = array<i64: 3, 128>}, {pipeline_mode = #tpu.pipeline_mode<synchronous>, transform_indices = @transform_6, window_bounds = array<i64: 3, 128>}, {transform_indices = @transform_7, window_bounds = array<i64: 1, 16, 384>}]} {
    %c0 = arith.constant 0 : index
    %c0_0 = arith.constant 0 : index
    %c0_1 = arith.constant 0 : index
    %0 = vector.load %arg2[%c0, %c0_0, %c0_1] : memref<1x16x160xf32, #tpu.memory_space<vmem>>, vector<1x16x160xf32>
    %1 = vector.shape_cast %0 : vector<1x16x160xf32> to vector<16x160xf32>
    %c0_2 = arith.constant 0 : index
    %c0_3 = arith.constant 0 : index
    %c0_4 = arith.constant 0 : index
    %2 = vector.load %arg3[%c0_2, %c0_3, %c0_4] : memref<1x8x160xf32, #tpu.memory_space<vmem>>, vector<1x4x160xf32>
    %3 = vector.shape_cast %2 : vector<1x4x160xf32> to vector<4x160xf32>
    %4 = tpu.concatenate %1, %3 in 0 : vector<16x160xf32>, vector<4x160xf32> -> vector<20x160xf32>
    %5 = vector.extract_strided_slice %4 {offsets = [0, 0], sizes = [20, 128], strides = [1, 1]} : vector<20x160xf32> to vector<20x128xf32>
    %6 = vector.extract_strided_slice %4 {offsets = [0, 8], sizes = [20, 128], strides = [1, 1]} : vector<20x160xf32> to vector<20x128xf32>
    %7 = vector.extract_strided_slice %4 {offsets = [0, 16], sizes = [20, 128], strides = [1, 1]} : vector<20x160xf32> to vector<20x128xf32>
    %8 = vector.extract_strided_slice %4 {offsets = [0, 24], sizes = [20, 128], strides = [1, 1]} : vector<20x160xf32> to vector<20x128xf32>
    %9 = vector.extract_strided_slice %4 {offsets = [0, 32], sizes = [20, 128], strides = [1, 1]} : vector<20x160xf32> to vector<20x128xf32>
    %c0_5 = arith.constant 0 : index
    %c0_6 = arith.constant 0 : index
    %10 = vector.load %arg7[%c0_5, %c0_6] : memref<3x128xf32, #tpu.memory_space<vmem>>, vector<3x128xf32>
    %c0_7 = arith.constant 0 : index
    %c0_8 = arith.constant 0 : index
    %11 = vector.load %arg8[%c0_7, %c0_8] : memref<3x128xf32, #tpu.memory_space<vmem>>, vector<3x128xf32>
    %c0_9 = arith.constant 0 : index
    %c0_10 = arith.constant 0 : index
    %12 = vector.load %arg4[%c0_9, %c0_10] : memref<1x128xf32, #tpu.memory_space<vmem>>, vector<1x128xf32>
    %cst = arith.constant 0.000000e+00 : f32
    %13 = vector.broadcast %cst : f32 to vector<16x128xf32>
    %14 = vector.extract_strided_slice %7 {offsets = [2, 0], sizes = [16, 128], strides = [1, 1]} : vector<20x128xf32> to vector<16x128xf32>
    %15 = vector.broadcast %12 : vector<1x128xf32> to vector<16x128xf32>
    %16 = arith.mulf %14, %15 : vector<16x128xf32>
    %17 = arith.addf %13, %16 : vector<16x128xf32>
    %18 = vector.extract_strided_slice %10 {offsets = [0, 0], sizes = [1, 128], strides = [1, 1]} : vector<3x128xf32> to vector<1x128xf32>
    %19 = vector.broadcast %18 : vector<1x128xf32> to vector<16x128xf32>
    %20 = arith.mulf %17, %19 : vector<16x128xf32>
    %21 = vector.extract_strided_slice %11 {offsets = [0, 0], sizes = [1, 128], strides = [1, 1]} : vector<3x128xf32> to vector<1x128xf32>
    %22 = vector.broadcast %21 : vector<1x128xf32> to vector<16x128xf32>
    %23 = arith.addf %20, %22 : vector<16x128xf32>
    %cst_11 = arith.constant 0.000000e+00 : f32
    %cst_12 = arith.constant 6.000000e+00 : f32
    %24 = vector.broadcast %cst_11 : f32 to vector<16x128xf32>
    %25 = arith.maximumf %24, %23 : vector<16x128xf32>
    %26 = vector.broadcast %cst_12 : f32 to vector<16x128xf32>
    %27 = arith.minimumf %26, %25 : vector<16x128xf32>
    %c0_13 = arith.constant 0 : index
    %c0_14 = arith.constant 0 : index
    %c0_15 = arith.constant 0 : index
    %28 = vector.load %arg9[%c0_13, %c0_14, %c0_15] : memref<1x16x384xf32, #tpu.memory_space<vmem>>, vector<1x16x128xf32>
    %29 = vector.shape_cast %28 : vector<1x16x128xf32> to vector<16x128xf32>
    %30 = vector.shape_cast %27 : vector<16x128xf32> to vector<1x16x128xf32>
    tpu.vector_store %arg9[%c0_13, %c0_14, %c0_15], %30 {strides = array<i32>} : memref<1x16x384xf32, #tpu.memory_space<vmem>>, vector<1x16x128xf32>,
    %c0_16 = arith.constant 0 : index
    %c0_17 = arith.constant 0 : index
    %31 = vector.load %arg5[%c0_16, %c0_17] : memref<9x128xf32, #tpu.memory_space<vmem>>, vector<9x128xf32>
    %cst_18 = arith.constant 0.000000e+00 : f32
    %32 = vector.broadcast %cst_18 : f32 to vector<16x128xf32>
    %33 = vector.extract_strided_slice %6 {offsets = [1, 0], sizes = [16, 128], strides = [1, 1]} : vector<20x128xf32> to vector<16x128xf32>
    %34 = vector.extract_strided_slice %31 {offsets = [0, 0], sizes = [1, 128], strides = [1, 1]} : vector<9x128xf32> to vector<1x128xf32>
    %35 = vector.broadcast %34 : vector<1x128xf32> to vector<16x128xf32>
    %36 = arith.mulf %33, %35 : vector<16x128xf32>
    %37 = arith.addf %32, %36 : vector<16x128xf32>
    %38 = vector.extract_strided_slice %7 {offsets = [1, 0], sizes = [16, 128], strides = [1, 1]} : vector<20x128xf32> to vector<16x128xf32>
    %39 = vector.extract_strided_slice %31 {offsets = [1, 0], sizes = [1, 128], strides = [1, 1]} : vector<9x128xf32> to vector<1x128xf32>
    %40 = vector.broadcast %39 : vector<1x128xf32> to vector<16x128xf32>
    %41 = arith.mulf %38, %40 : vector<16x128xf32>
    %42 = arith.addf %37, %41 : vector<16x128xf32>
    %43 = vector.extract_strided_slice %8 {offsets = [1, 0], sizes = [16, 128], strides = [1, 1]} : vector<20x128xf32> to vector<16x128xf32>
    %44 = vector.extract_strided_slice %31 {offsets = [2, 0], sizes = [1, 128], strides = [1, 1]} : vector<9x128xf32> to vector<1x128xf32>
    %45 = vector.broadcast %44 : vector<1x128xf32> to vector<16x128xf32>
    %46 = arith.mulf %43, %45 : vector<16x128xf32>
    %47 = arith.addf %42, %46 : vector<16x128xf32>
    %48 = vector.extract_strided_slice %6 {offsets = [2, 0], sizes = [16, 128], strides = [1, 1]} : vector<20x128xf32> to vector<16x128xf32>
    %49 = vector.extract_strided_slice %31 {offsets = [3, 0], sizes = [1, 128], strides = [1, 1]} : vector<9x128xf32> to vector<1x128xf32>
    %50 = vector.broadcast %49 : vector<1x128xf32> to vector<16x128xf32>
    %51 = arith.mulf %48, %50 : vector<16x128xf32>
    %52 = arith.addf %47, %51 : vector<16x128xf32>
    %53 = vector.extract_strided_slice %31 {offsets = [4, 0], sizes = [1, 128], strides = [1, 1]} : vector<9x128xf32> to vector<1x128xf32>
    %54 = vector.broadcast %53 : vector<1x128xf32> to vector<16x128xf32>
    %55 = arith.mulf %14, %54 : vector<16x128xf32>
    %56 = arith.addf %52, %55 : vector<16x128xf32>
    %57 = vector.extract_strided_slice %8 {offsets = [2, 0], sizes = [16, 128], strides = [1, 1]} : vector<20x128xf32> to vector<16x128xf32>
    %58 = vector.extract_strided_slice %31 {offsets = [5, 0], sizes = [1, 128], strides = [1, 1]} : vector<9x128xf32> to vector<1x128xf32>
    %59 = vector.broadcast %58 : vector<1x128xf32> to vector<16x128xf32>
    %60 = arith.mulf %57, %59 : vector<16x128xf32>
    %61 = arith.addf %56, %60 : vector<16x128xf32>
    %62 = vector.extract_strided_slice %6 {offsets = [3, 0], sizes = [16, 128], strides = [1, 1]} : vector<20x128xf32> to vector<16x128xf32>
    %63 = vector.extract_strided_slice %31 {offsets = [6, 0], sizes = [1, 128], strides = [1, 1]} : vector<9x128xf32> to vector<1x128xf32>
    %64 = vector.broadcast %63 : vector<1x128xf32> to vector<16x128xf32>
    %65 = arith.mulf %62, %64 : vector<16x128xf32>
    %66 = arith.addf %61, %65 : vector<16x128xf32>
    %67 = vector.extract_strided_slice %7 {offsets = [3, 0], sizes = [16, 128], strides = [1, 1]} : vector<20x128xf32> to vector<16x128xf32>
    %68 = vector.extract_strided_slice %31 {offsets = [7, 0], sizes = [1, 128], strides = [1, 1]} : vector<9x128xf32> to vector<1x128xf32>
    %69 = vector.broadcast %68 : vector<1x128xf32> to vector<16x128xf32>
    %70 = arith.mulf %67, %69 : vector<16x128xf32>
    %71 = arith.addf %66, %70 : vector<16x128xf32>
    %72 = vector.extract_strided_slice %8 {offsets = [3, 0], sizes = [16, 128], strides = [1, 1]} : vector<20x128xf32> to vector<16x128xf32>
    %73 = vector.extract_strided_slice %31 {offsets = [8, 0], sizes = [1, 128], strides = [1, 1]} : vector<9x128xf32> to vector<1x128xf32>
    %74 = vector.broadcast %73 : vector<1x128xf32> to vector<16x128xf32>
    %75 = arith.mulf %72, %74 : vector<16x128xf32>
    %76 = arith.addf %71, %75 : vector<16x128xf32>
    %77 = vector.extract_strided_slice %10 {offsets = [1, 0], sizes = [1, 128], strides = [1, 1]} : vector<3x128xf32> to vector<1x128xf32>
    %78 = vector.broadcast %77 : vector<1x128xf32> to vector<16x128xf32>
    %79 = arith.mulf %76, %78 : vector<16x128xf32>
    %80 = vector.extract_strided_slice %11 {offsets = [1, 0], sizes = [1, 128], strides = [1, 1]} : vector<3x128xf32> to vector<1x128xf32>
    %81 = vector.broadcast %80 : vector<1x128xf32> to vector<16x128xf32>
    %82 = arith.addf %79, %81 : vector<16x128xf32>
    %cst_19 = arith.constant 0.000000e+00 : f32
    %cst_20 = arith.constant 6.000000e+00 : f32
    %83 = vector.broadcast %cst_19 : f32 to vector<16x128xf32>
    %84 = arith.maximumf %83, %82 : vector<16x128xf32>
    %85 = vector.broadcast %cst_20 : f32 to vector<16x128xf32>
    %86 = arith.minimumf %85, %84 : vector<16x128xf32>
    %c0_21 = arith.constant 0 : index
    %c0_22 = arith.constant 0 : index
    %c128 = arith.constant 128 : index
    %87 = vector.load %arg9[%c0_21, %c0_22, %c128] : memref<1x16x384xf32, #tpu.memory_space<vmem>>, vector<1x16x128xf32>
    %88 = vector.shape_cast %87 : vector<1x16x128xf32> to vector<16x128xf32>
    %89 = vector.shape_cast %86 : vector<16x128xf32> to vector<1x16x128xf32>
    tpu.vector_store %arg9[%c0_21, %c0_22, %c128], %89 {strides = array<i32>} : memref<1x16x384xf32, #tpu.memory_space<vmem>>, vector<1x16x128xf32>,
    %c0_23 = arith.constant 0 : index
    %c0_24 = arith.constant 0 : index
    %90 = vector.load %arg6[%c0_23, %c0_24] : memref<25x128xf32, #tpu.memory_space<vmem>>, vector<25x128xf32>
    %cst_25 = arith.constant 0.000000e+00 : f32
    %91 = vector.broadcast %cst_25 : f32 to vector<16x128xf32>
    %92 = vector.extract_strided_slice %5 {offsets = [0, 0], sizes = [16, 128], strides = [1, 1]} : vector<20x128xf32> to vector<16x128xf32>
    %93 = vector.extract_strided_slice %90 {offsets = [0, 0], sizes = [1, 128], strides = [1, 1]} : vector<25x128xf32> to vector<1x128xf32>
    %94 = vector.broadcast %93 : vector<1x128xf32> to vector<16x128xf32>
    %95 = arith.mulf %92, %94 : vector<16x128xf32>
    %96 = arith.addf %91, %95 : vector<16x128xf32>
    %97 = vector.extract_strided_slice %6 {offsets = [0, 0], sizes = [16, 128], strides = [1, 1]} : vector<20x128xf32> to vector<16x128xf32>
    %98 = vector.extract_strided_slice %90 {offsets = [1, 0], sizes = [1, 128], strides = [1, 1]} : vector<25x128xf32> to vector<1x128xf32>
    %99 = vector.broadcast %98 : vector<1x128xf32> to vector<16x128xf32>
    %100 = arith.mulf %97, %99 : vector<16x128xf32>
    %101 = arith.addf %96, %100 : vector<16x128xf32>
    %102 = vector.extract_strided_slice %7 {offsets = [0, 0], sizes = [16, 128], strides = [1, 1]} : vector<20x128xf32> to vector<16x128xf32>
    %103 = vector.extract_strided_slice %90 {offsets = [2, 0], sizes = [1, 128], strides = [1, 1]} : vector<25x128xf32> to vector<1x128xf32>
    %104 = vector.broadcast %103 : vector<1x128xf32> to vector<16x128xf32>
    %105 = arith.mulf %102, %104 : vector<16x128xf32>
    %106 = arith.addf %101, %105 : vector<16x128xf32>
    %107 = vector.extract_strided_slice %8 {offsets = [0, 0], sizes = [16, 128], strides = [1, 1]} : vector<20x128xf32> to vector<16x128xf32>
    %108 = vector.extract_strided_slice %90 {offsets = [3, 0], sizes = [1, 128], strides = [1, 1]} : vector<25x128xf32> to vector<1x128xf32>
    %109 = vector.broadcast %108 : vector<1x128xf32> to vector<16x128xf32>
    %110 = arith.mulf %107, %109 : vector<16x128xf32>
    %111 = arith.addf %106, %110 : vector<16x128xf32>
    %112 = vector.extract_strided_slice %9 {offsets = [0, 0], sizes = [16, 128], strides = [1, 1]} : vector<20x128xf32> to vector<16x128xf32>
    %113 = vector.extract_strided_slice %90 {offsets = [4, 0], sizes = [1, 128], strides = [1, 1]} : vector<25x128xf32> to vector<1x128xf32>
    %114 = vector.broadcast %113 : vector<1x128xf32> to vector<16x128xf32>
    %115 = arith.mulf %112, %114 : vector<16x128xf32>
    %116 = arith.addf %111, %115 : vector<16x128xf32>
    %117 = vector.extract_strided_slice %5 {offsets = [1, 0], sizes = [16, 128], strides = [1, 1]} : vector<20x128xf32> to vector<16x128xf32>
    %118 = vector.extract_strided_slice %90 {offsets = [5, 0], sizes = [1, 128], strides = [1, 1]} : vector<25x128xf32> to vector<1x128xf32>
    %119 = vector.broadcast %118 : vector<1x128xf32> to vector<16x128xf32>
    %120 = arith.mulf %117, %119 : vector<16x128xf32>
    %121 = arith.addf %116, %120 : vector<16x128xf32>
    %122 = vector.extract_strided_slice %90 {offsets = [6, 0], sizes = [1, 128], strides = [1, 1]} : vector<25x128xf32> to vector<1x128xf32>
    %123 = vector.broadcast %122 : vector<1x128xf32> to vector<16x128xf32>
    %124 = arith.mulf %33, %123 : vector<16x128xf32>
    %125 = arith.addf %121, %124 : vector<16x128xf32>
    %126 = vector.extract_strided_slice %90 {offsets = [7, 0], sizes = [1, 128], strides = [1, 1]} : vector<25x128xf32> to vector<1x128xf32>
    %127 = vector.broadcast %126 : vector<1x128xf32> to vector<16x128xf32>
    %128 = arith.mulf %38, %127 : vector<16x128xf32>
    %129 = arith.addf %125, %128 : vector<16x128xf32>
    %130 = vector.extract_strided_slice %90 {offsets = [8, 0], sizes = [1, 128], strides = [1, 1]} : vector<25x128xf32> to vector<1x128xf32>
    %131 = vector.broadcast %130 : vector<1x128xf32> to vector<16x128xf32>
    %132 = arith.mulf %43, %131 : vector<16x128xf32>
    %133 = arith.addf %129, %132 : vector<16x128xf32>
    %134 = vector.extract_strided_slice %9 {offsets = [1, 0], sizes = [16, 128], strides = [1, 1]} : vector<20x128xf32> to vector<16x128xf32>
    %135 = vector.extract_strided_slice %90 {offsets = [9, 0], sizes = [1, 128], strides = [1, 1]} : vector<25x128xf32> to vector<1x128xf32>
    %136 = vector.broadcast %135 : vector<1x128xf32> to vector<16x128xf32>
    %137 = arith.mulf %134, %136 : vector<16x128xf32>
    %138 = arith.addf %133, %137 : vector<16x128xf32>
    %139 = vector.extract_strided_slice %5 {offsets = [2, 0], sizes = [16, 128], strides = [1, 1]} : vector<20x128xf32> to vector<16x128xf32>
    %140 = vector.extract_strided_slice %90 {offsets = [10, 0], sizes = [1, 128], strides = [1, 1]} : vector<25x128xf32> to vector<1x128xf32>
    %141 = vector.broadcast %140 : vector<1x128xf32> to vector<16x128xf32>
    %142 = arith.mulf %139, %141 : vector<16x128xf32>
    %143 = arith.addf %138, %142 : vector<16x128xf32>
    %144 = vector.extract_strided_slice %90 {offsets = [11, 0], sizes = [1, 128], strides = [1, 1]} : vector<25x128xf32> to vector<1x128xf32>
    %145 = vector.broadcast %144 : vector<1x128xf32> to vector<16x128xf32>
    %146 = arith.mulf %48, %145 : vector<16x128xf32>
    %147 = arith.addf %143, %146 : vector<16x128xf32>
    %148 = vector.extract_strided_slice %90 {offsets = [12, 0], sizes = [1, 128], strides = [1, 1]} : vector<25x128xf32> to vector<1x128xf32>
    %149 = vector.broadcast %148 : vector<1x128xf32> to vector<16x128xf32>
    %150 = arith.mulf %14, %149 : vector<16x128xf32>
    %151 = arith.addf %147, %150 : vector<16x128xf32>
    %152 = vector.extract_strided_slice %90 {offsets = [13, 0], sizes = [1, 128], strides = [1, 1]} : vector<25x128xf32> to vector<1x128xf32>
    %153 = vector.broadcast %152 : vector<1x128xf32> to vector<16x128xf32>
    %154 = arith.mulf %57, %153 : vector<16x128xf32>
    %155 = arith.addf %151, %154 : vector<16x128xf32>
    %156 = vector.extract_strided_slice %9 {offsets = [2, 0], sizes = [16, 128], strides = [1, 1]} : vector<20x128xf32> to vector<16x128xf32>
    %157 = vector.extract_strided_slice %90 {offsets = [14, 0], sizes = [1, 128], strides = [1, 1]} : vector<25x128xf32> to vector<1x128xf32>
    %158 = vector.broadcast %157 : vector<1x128xf32> to vector<16x128xf32>
    %159 = arith.mulf %156, %158 : vector<16x128xf32>
    %160 = arith.addf %155, %159 : vector<16x128xf32>
    %161 = vector.extract_strided_slice %5 {offsets = [3, 0], sizes = [16, 128], strides = [1, 1]} : vector<20x128xf32> to vector<16x128xf32>
    %162 = vector.extract_strided_slice %90 {offsets = [15, 0], sizes = [1, 128], strides = [1, 1]} : vector<25x128xf32> to vector<1x128xf32>
    %163 = vector.broadcast %162 : vector<1x128xf32> to vector<16x128xf32>
    %164 = arith.mulf %161, %163 : vector<16x128xf32>
    %165 = arith.addf %160, %164 : vector<16x128xf32>
    %166 = vector.extract_strided_slice %90 {offsets = [16, 0], sizes = [1, 128], strides = [1, 1]} : vector<25x128xf32> to vector<1x128xf32>
    %167 = vector.broadcast %166 : vector<1x128xf32> to vector<16x128xf32>
    %168 = arith.mulf %62, %167 : vector<16x128xf32>
    %169 = arith.addf %165, %168 : vector<16x128xf32>
    %170 = vector.extract_strided_slice %90 {offsets = [17, 0], sizes = [1, 128], strides = [1, 1]} : vector<25x128xf32> to vector<1x128xf32>
    %171 = vector.broadcast %170 : vector<1x128xf32> to vector<16x128xf32>
    %172 = arith.mulf %67, %171 : vector<16x128xf32>
    %173 = arith.addf %169, %172 : vector<16x128xf32>
    %174 = vector.extract_strided_slice %90 {offsets = [18, 0], sizes = [1, 128], strides = [1, 1]} : vector<25x128xf32> to vector<1x128xf32>
    %175 = vector.broadcast %174 : vector<1x128xf32> to vector<16x128xf32>
    %176 = arith.mulf %72, %175 : vector<16x128xf32>
    %177 = arith.addf %173, %176 : vector<16x128xf32>
    %178 = vector.extract_strided_slice %9 {offsets = [3, 0], sizes = [16, 128], strides = [1, 1]} : vector<20x128xf32> to vector<16x128xf32>
    %179 = vector.extract_strided_slice %90 {offsets = [19, 0], sizes = [1, 128], strides = [1, 1]} : vector<25x128xf32> to vector<1x128xf32>
    %180 = vector.broadcast %179 : vector<1x128xf32> to vector<16x128xf32>
    %181 = arith.mulf %178, %180 : vector<16x128xf32>
    %182 = arith.addf %177, %181 : vector<16x128xf32>
    %183 = vector.extract_strided_slice %5 {offsets = [4, 0], sizes = [16, 128], strides = [1, 1]} : vector<20x128xf32> to vector<16x128xf32>
    %184 = vector.extract_strided_slice %90 {offsets = [20, 0], sizes = [1, 128], strides = [1, 1]} : vector<25x128xf32> to vector<1x128xf32>
    %185 = vector.broadcast %184 : vector<1x128xf32> to vector<16x128xf32>
    %186 = arith.mulf %183, %185 : vector<16x128xf32>
    %187 = arith.addf %182, %186 : vector<16x128xf32>
    %188 = vector.extract_strided_slice %6 {offsets = [4, 0], sizes = [16, 128], strides = [1, 1]} : vector<20x128xf32> to vector<16x128xf32>
    %189 = vector.extract_strided_slice %90 {offsets = [21, 0], sizes = [1, 128], strides = [1, 1]} : vector<25x128xf32> to vector<1x128xf32>
    %190 = vector.broadcast %189 : vector<1x128xf32> to vector<16x128xf32>
    %191 = arith.mulf %188, %190 : vector<16x128xf32>
    %192 = arith.addf %187, %191 : vector<16x128xf32>
    %193 = vector.extract_strided_slice %7 {offsets = [4, 0], sizes = [16, 128], strides = [1, 1]} : vector<20x128xf32> to vector<16x128xf32>
    %194 = vector.extract_strided_slice %90 {offsets = [22, 0], sizes = [1, 128], strides = [1, 1]} : vector<25x128xf32> to vector<1x128xf32>
    %195 = vector.broadcast %194 : vector<1x128xf32> to vector<16x128xf32>
    %196 = arith.mulf %193, %195 : vector<16x128xf32>
    %197 = arith.addf %192, %196 : vector<16x128xf32>
    %198 = vector.extract_strided_slice %8 {offsets = [4, 0], sizes = [16, 128], strides = [1, 1]} : vector<20x128xf32> to vector<16x128xf32>
    %199 = vector.extract_strided_slice %90 {offsets = [23, 0], sizes = [1, 128], strides = [1, 1]} : vector<25x128xf32> to vector<1x128xf32>
    %200 = vector.broadcast %199 : vector<1x128xf32> to vector<16x128xf32>
    %201 = arith.mulf %198, %200 : vector<16x128xf32>
    %202 = arith.addf %197, %201 : vector<16x128xf32>
    %203 = vector.extract_strided_slice %9 {offsets = [4, 0], sizes = [16, 128], strides = [1, 1]} : vector<20x128xf32> to vector<16x128xf32>
    %204 = vector.extract_strided_slice %90 {offsets = [24, 0], sizes = [1, 128], strides = [1, 1]} : vector<25x128xf32> to vector<1x128xf32>
    %205 = vector.broadcast %204 : vector<1x128xf32> to vector<16x128xf32>
    %206 = arith.mulf %203, %205 : vector<16x128xf32>
    %207 = arith.addf %202, %206 : vector<16x128xf32>
    %208 = vector.extract_strided_slice %10 {offsets = [2, 0], sizes = [1, 128], strides = [1, 1]} : vector<3x128xf32> to vector<1x128xf32>
    %209 = vector.broadcast %208 : vector<1x128xf32> to vector<16x128xf32>
    %210 = arith.mulf %207, %209 : vector<16x128xf32>
    %211 = vector.extract_strided_slice %11 {offsets = [2, 0], sizes = [1, 128], strides = [1, 1]} : vector<3x128xf32> to vector<1x128xf32>
    %212 = vector.broadcast %211 : vector<1x128xf32> to vector<16x128xf32>
    %213 = arith.addf %210, %212 : vector<16x128xf32>
    %cst_26 = arith.constant 0.000000e+00 : f32
    %cst_27 = arith.constant 6.000000e+00 : f32
    %214 = vector.broadcast %cst_26 : f32 to vector<16x128xf32>
    %215 = arith.maximumf %214, %213 : vector<16x128xf32>
    %216 = vector.broadcast %cst_27 : f32 to vector<16x128xf32>
    %217 = arith.minimumf %216, %215 : vector<16x128xf32>
    %c0_28 = arith.constant 0 : index
    %c0_29 = arith.constant 0 : index
    %c256 = arith.constant 256 : index
    %218 = vector.load %arg9[%c0_28, %c0_29, %c256] : memref<1x16x384xf32, #tpu.memory_space<vmem>>, vector<1x16x128xf32>
    %219 = vector.shape_cast %218 : vector<1x16x128xf32> to vector<16x128xf32>
    %220 = vector.shape_cast %217 : vector<16x128xf32> to vector<1x16x128xf32>
    tpu.vector_store %arg9[%c0_28, %c0_29, %c256], %220 {strides = array<i32>} : memref<1x16x384xf32, #tpu.memory_space<vmem>>, vector<1x16x128xf32>,
    return
  }
  func.func @transform_0(%arg0: i32, %arg1: i32) -> (i32, i32, i32) {
    %c0_i32 = arith.constant 0 : i32
    %c0_i32_0 = arith.constant 0 : i32
    return %arg0, %arg1, %c0_i32 : i32, i32, i32
  }
  func.func @transform_1(%arg0: i32, %arg1: i32) -> (i32, i32, i32) {
    %c1_i32 = arith.constant 1 : i32
    %0 = arith.addi %arg1, %c1_i32 : i32
    %c2_i32 = arith.constant 2 : i32
    %1 = arith.muli %0, %c2_i32 : i32
    %c0_i32 = arith.constant 0 : i32
    %c0_i32_0 = arith.constant 0 : i32
    return %arg0, %1, %c0_i32 : i32, i32, i32
  }
  func.func @transform_2(%arg0: i32, %arg1: i32) -> (i32, i32) {
    %c0_i32 = arith.constant 0 : i32
    %c0_i32_0 = arith.constant 0 : i32
    %c0_i32_1 = arith.constant 0 : i32
    return %c0_i32, %c0_i32_0 : i32, i32
  }
  func.func @transform_3(%arg0: i32, %arg1: i32) -> (i32, i32) {
    %c0_i32 = arith.constant 0 : i32
    %c0_i32_0 = arith.constant 0 : i32
    %c0_i32_1 = arith.constant 0 : i32
    return %c0_i32, %c0_i32_0 : i32, i32
  }
  func.func @transform_4(%arg0: i32, %arg1: i32) -> (i32, i32) {
    %c0_i32 = arith.constant 0 : i32
    %c0_i32_0 = arith.constant 0 : i32
    %c0_i32_1 = arith.constant 0 : i32
    return %c0_i32, %c0_i32_0 : i32, i32
  }
  func.func @transform_5(%arg0: i32, %arg1: i32) -> (i32, i32) {
    %c0_i32 = arith.constant 0 : i32
    %c0_i32_0 = arith.constant 0 : i32
    %c0_i32_1 = arith.constant 0 : i32
    return %c0_i32, %c0_i32_0 : i32, i32
  }
  func.func @transform_6(%arg0: i32, %arg1: i32) -> (i32, i32) {
    %c0_i32 = arith.constant 0 : i32
    %c0_i32_0 = arith.constant 0 : i32
    %c0_i32_1 = arith.constant 0 : i32
    return %c0_i32, %c0_i32_0 : i32, i32
  }
  func.func @transform_7(%arg0: i32, %arg1: i32) -> (i32, i32, i32) {
    %c0_i32 = arith.constant 0 : i32
    %c0_i32_0 = arith.constant 0 : i32
    return %arg0, %arg1, %c0_i32 : i32, i32, i32
  }
}

</mosaic_0001>

<bundles_post_ra>
// kernel: tile.29
= control target key start
LH: loop header
LB: loop body
LE: loop exit
PB: predicated region body
PF: predicated region fallthrough
CT: control target
= control target key end

     0   :  { %vm6_vm0 = vcmask 1043458   ;;  %vm10_vm1 = vcmask 1045508   ;;  %vm14_vm2 = vcmask 1047558   ;;  %s24_s6 = smov 3  ;;  %s27_s7 = smov 12  ;;  %vm16_vm3 = vcmask 64512   ;;  %s974_s0 = inlined_call_operand.vmem [shape: f32[9,16,1,1,8], index: 0, kind: input, shape index: {}]   ;;  %s975_s1 = inlined_call_operand.vmem [shape: f32[9,128], index: 1, kind: output, shape index: {}]  }
   0x1   :  { %v460_v0 = vld [vmem:[%s974_s0 + $0xf] ss:$16 sm:%s24_s6]   ;;  %s32_s12 = smov 48  ;;  %s37_s13 = smov 192  ;;  %v470_v26 = vld [vmem:[%s974_s0 + $0x8e] sm:$0x1]  }
   0x2   :  { %v461_v1 = vld [vmem:[%s974_s0 + $0xf] ss:$16 sm:%s27_s7]   ;;  %s53_s18 = smov 3  ;;  %s56_s21 = smov 12  ;;  %v476_v32 = vld [vmem:[%s974_s0 + $0x8d] sm:$0x1]  }
   0x3   :  { %v30_v2 = vsel %vm6_vm0, %v461_v1, %v460_v0  ;;  %v462_v3 = vld [vmem:[%s974_s0 + $0xf] ss:$16 sm:%s32_s12]   ;;  %v466_v6 = vld [vmem:[%s974_s0 + $0xe] ss:$16 sm:%s53_s18]   ;;  %s61_s22 = smov 48  ;;  %s66_s27 = smov 192 }
   0x4   :  { %v463_v4 = vld [vmem:[%s974_s0 + $0xf] ss:$16 sm:%s37_s13]   ;;  %v35_v5 = vsel %vm10_vm1, %v462_v3, %v30_v2  ;;  %v467_v8 = vld [vmem:[%s974_s0 + $0xe] ss:$16 sm:%s56_s21]   ;;  %s565_s28 = smov 120   ;;  %s111_s2 = smov 3 }
   0x5   :  { %v40_v7 = vsel %vm14_vm2, %v463_v4, %v35_v5  ;;  %v468_v9 = vld [vmem:[%s974_s0 + $0xe] ss:$16 sm:%s61_s22]   ;;  %v59_v10 = vsel %vm6_vm0, %v467_v8, %v466_v6  ;;  %s114_s3 = smov 12  ;;  %v478_v14 = vld [vmem:[%s974_s0 + $0xc] ss:$16 sm:%s111_s2]   ;;  %s119_s6 = smov 48 }
   0x6   :  { %41 = vrot.lane.b32.xlu0 %v40_v7, %s565_s28  ;;  %v469_v11 = vld [vmem:[%s974_s0 + $0xe] ss:$16 sm:%s66_s27]   ;;  %v64_v12 = vsel %vm10_vm1, %v468_v9, %v59_v10  ;;  %s566_s7 = smov 112   ;;  %v464_v15 = vld [vmem:[%s974_s0 + $0x8f] sm:$0x1]   ;;  %s82_s12 = smov 3 }
   0x7   :  { %v69_v13 = vsel %vm14_vm2, %v469_v11, %v64_v12  ;;  %v479_v16 = vld [vmem:[%s974_s0 + $0xc] ss:$16 sm:%s114_s3]   ;;  %s85_s13 = smov 12  ;;  %v472_v17 = vld [vmem:[%s974_s0 + $0xd] ss:$16 sm:%s82_s12]   ;;  %s90_s18 = smov 48 }
   0x8   :  { %70 = vrot.lane.b32.xlu1 %v69_v13, %s566_s7  ;;  %v473_v18 = vld [vmem:[%s974_s0 + $0xd] ss:$16 sm:%s85_s13]   ;;  %s95_s19 = smov 192  ;;  %v117_v23 = vsel %vm6_vm0, %v479_v16, %v478_v14  ;;  %s124_s26 = smov 192  ;;  %v482_v37 = vld [vmem:[%s974_s0 + $0x8c] sm:$0x1]  }
   0x9   :  { %v88_v19 = vsel %vm6_vm0, %v473_v18, %v472_v17  ;;  %v474_v20 = vld [vmem:[%s974_s0 + $0xd] ss:$16 sm:%s90_s18]   ;;  %v480_v24 = vld [vmem:[%s974_s0 + $0xc] ss:$16 sm:%s119_s6]   ;;  %s567_s29 = smov 104   ;;  %s169_s3 = smov 3 }
   0xa   :  { %v475_v21 = vld [vmem:[%s974_s0 + $0xd] ss:$16 sm:%s95_s19]   ;;  %v93_v22 = vsel %vm10_vm1, %v474_v20, %v88_v19  ;;  %v122_v27 = vsel %vm10_vm1, %v480_v24, %v117_v23  ;;  %v481_v28 = vld [vmem:[%s974_s0 + $0xc] ss:$16 sm:%s124_s26]   ;;  %s140_s4 = smov 3  ;;  %s143_s5 = smov 12 }
   0xb   :  { %v98_v25 = vsel %vm14_vm2, %v475_v21, %v93_v22  ;;  %s172_s6 = smov 12  ;;  %v484_v29 = vld [vmem:[%s974_s0 + $0xb] ss:$16 sm:%s140_s4]   ;;  %s148_s11 = smov 48  ;;  %v127_v31 = vsel %vm14_vm2, %v481_v28, %v122_v27  ;;  %v490_v33 = vld [vmem:[%s974_s0 + $0xa] ss:$16 sm:%s169_s3]  }
   0xc   :  { %99 = vrot.lane.b32.xlu2 %v98_v25, %s567_s29  ;;  %v485_v30 = vld [vmem:[%s974_s0 + $0xb] ss:$16 sm:%s143_s5]   ;;  %s177_s18 = smov 48  ;;  %s153_s21 = smov 192  ;;  %v494_v56 = vld [vmem:[%s974_s0 + $0x8a] sm:$0x1]  }
   0xd   :  { %v491_v34 = vld [vmem:[%s974_s0 + $0xa] ss:$16 sm:%s172_s6]   ;;  %v146_v35 = vsel %vm6_vm0, %v485_v30, %v484_v29  ;;  %v486_v36 = vld [vmem:[%s974_s0 + $0xb] ss:$16 sm:%s148_s11]   ;;  %s568_s22 = smov 96   ;;  %s198_s25 = smov 3 }
   0xe   :  { %47 = vrot.lane.b32.xlu0 %v464_v15, %s565_s28  ;;  %s201_s26 = smov 12  ;;  %v175_v38 = vsel %vm6_vm0, %v491_v34, %v490_v33  ;;  %v492_v39 = vld [vmem:[%s974_s0 + $0xa] ss:$16 sm:%s177_s18]   ;;  %v151_v40 = vsel %vm10_vm1, %v486_v36, %v146_v35  ;;  %v488_v44 = vld [vmem:[%s974_s0 + $0x8b] sm:$0x1]   ;;  %s211_s14 = smov 192 }
   0xf   :  { %v487_v41 = vld [vmem:[%s974_s0 + $0xb] ss:$16 sm:%s153_s21]   ;;  %v496_v42 = vld [vmem:[%s974_s0 + $0x9] ss:$16 sm:%s198_s25]   ;;  %v180_v45 = vsel %vm10_vm1, %v492_v39, %v175_v38  ;;  %s569_s15 = smov 88   ;;  %s227_s16 = smov 3 }
  0x10   :  { %76 = vrot.lane.b32.xlu1 %v470_v26, %s566_s7  ;;  %v497_v43 = vld [vmem:[%s974_s0 + $0x9] ss:$16 sm:%s201_s26]   ;;  %s206_s7 = smov 48  ;;  %v156_v47 = vsel %vm14_vm2, %v487_v41, %v151_v40  ;;  %s230_s17 = smov 12  ;;  %v506_v4 = vld [vmem:[%s974_s0 + $0x88] sm:$0x1]  }
  0x11   :  { %v204_v48 = vsel %vm6_vm0, %v497_v43, %v496_v42  ;;  %v498_v49 = vld [vmem:[%s974_s0 + $0x9] ss:$16 sm:%s206_s7]   ;;  %s570_s20 = smov 80   ;;  %s256_s21 = smov 3  ;;  %v502_v53 = vld [vmem:[%s974_s0 + $0x8] ss:$16 sm:%s227_s16]  }
  0x12   :  { %v209_v51 = vsel %vm10_vm1, %v498_v49, %v204_v48  ;;  %v499_v52 = vld [vmem:[%s974_s0 + $0x9] ss:$16 sm:%s211_s14]   ;;  %v503_v54 = vld [vmem:[%s974_s0 + $0x8] ss:$16 sm:%s230_s17]   ;;  %s235_s27 = smov 48  ;;  %s264_s5 = smov 48 }
  0x13   :  { %v214_v55 = vsel %vm14_vm2, %v499_v52, %v209_v51  ;;  %v508_v57 = vld [vmem:[%s974_s0 + $0x7] ss:$16 sm:%s256_s21]   ;;  %v233_v59 = vsel %vm6_vm0, %v503_v54, %v502_v53  ;;  %v504_v60 = vld [vmem:[%s974_s0 + $0x8] ss:$16 sm:%s235_s27]   ;;  %s240_s8 = smov 192  ;;  %s571_s9 = smov 72  }
  0x14   :  { %105 = vrot.lane.b32.xlu2 %v476_v32, %s567_s29  ;;  %s182_s29 = smov 192  ;;  %v500_v61 = vld [vmem:[%s974_s0 + $0x89] sm:$0x1]   ;;  %s285_s12 = smov 3  ;;  %v510_v63 = vld [vmem:[%s974_s0 + $0x7] ss:$16 sm:%s264_s5]   ;;  %v238_v0 = vsel %vm10_vm1, %v504_v60, %v233_v59 }
  0x15   :  { %v493_v46 = vld [vmem:[%s974_s0 + $0xa] ss:$16 sm:%s182_s29]   ;;  %s288_s13 = smov 12  ;;  %s269_s16 = smov 192  ;;  %v505_v1 = vld [vmem:[%s974_s0 + $0x8] ss:$16 sm:%s240_s8]  }
  0x16   :  { %128 = vrot.lane.b32.xlu0 %v127_v31, %s568_s22  ;;  %v185_v50 = vsel %vm14_vm2, %v493_v46, %v180_v45  ;;  %v514_v2 = vld [vmem:[%s974_s0 + $0x6] ss:$16 sm:%s285_s12]   ;;  %s293_s23 = smov 48  ;;  %v243_v7 = vsel %vm14_vm2, %v505_v1, %v238_v0  ;;  %s298_s30 = smov 192  ;;  %v512_v16 = vld [vmem:[%s974_s0 + $0x87] sm:$0x1]  }
  0x17   :  { %v515_v3 = vld [vmem:[%s974_s0 + $0x6] ss:$16 sm:%s288_s13]   ;;  %v511_v6 = vld [vmem:[%s974_s0 + $0x7] ss:$16 sm:%s269_s16]   ;;  %s572_s2 = smov 64   ;;  %s314_s3 = smov 3 }
  0x18   :  { %134 = vrot.lane.b32.xlu1 %v482_v37, %s568_s22  ;;  %s259_s22 = smov 12  ;;  %v291_v8 = vsel %vm6_vm0, %v515_v3, %v514_v2  ;;  %v516_v9 = vld [vmem:[%s974_s0 + $0x6] ss:$16 sm:%s293_s23]   ;;  %s317_s4 = smov 12  ;;  %v524_v28 = vld [vmem:[%s974_s0 + $0x85] sm:$0x1]  }
  0x19   :  { %v509_v58 = vld [vmem:[%s974_s0 + $0x7] ss:$16 sm:%s259_s22]   ;;  %v296_v11 = vsel %vm10_vm1, %v516_v9, %v291_v8  ;;  %v517_v12 = vld [vmem:[%s974_s0 + $0x6] ss:$16 sm:%s298_s30]   ;;  %s573_s7 = smov 56   ;;  %s343_s8 = smov 3 }
  0x1a   :  { %v262_v62 = vsel %vm6_vm0, %v509_v58, %v508_v57  ;;  %v520_v13 = vld [vmem:[%s974_s0 + $0x5] ss:$16 sm:%s314_s3]   ;;  %s322_s14 = smov 48  ;;  %v301_v15 = vsel %vm14_vm2, %v517_v12, %v296_v11  ;;  %v526_v17 = vld [vmem:[%s974_s0 + $0x4] ss:$16 sm:%s343_s8]   ;;  %s351_s21 = smov 48 }
  0x1b   :  { %v267_v5 = vsel %vm10_vm1, %v510_v63, %v262_v62  ;;  %v521_v14 = vld [vmem:[%s974_s0 + $0x5] ss:$16 sm:%s317_s4]   ;;  %s327_s24 = smov 192  ;;  %s574_s25 = smov 48   ;;  %v518_v21 = vld [vmem:[%s974_s0 + $0x86] sm:$0x1]  }
  0x1c   :  { %157 = vrot.lane.b32.xlu2 %v156_v47, %s569_s15  ;;  %v272_v10 = vsel %vm14_vm2, %v511_v6, %v267_v5  ;;  %v320_v19 = vsel %vm6_vm0, %v521_v14, %v520_v13  ;;  %v522_v20 = vld [vmem:[%s974_s0 + $0x5] ss:$16 sm:%s322_s14]   ;;  %s372_s28 = smov 3  ;;  %s375_s29 = smov 12  ;;  %v530_v40 = vld [vmem:[%s974_s0 + $0x84] sm:$0x1]  }
  0x1d   :  { %v528_v23 = vld [vmem:[%s974_s0 + $0x4] ss:$16 sm:%s351_s21]   ;;  %s356_s3 = smov 192  ;;  %v325_v24 = vsel %vm10_vm1, %v522_v20, %v320_v19  ;;  %v523_v25 = vld [vmem:[%s974_s0 + $0x5] ss:$16 sm:%s327_s24]   ;;  %s380_s10 = smov 48 }
  0x1e   :  { %163 = vrot.lane.b32.xlu0 %v488_v44, %s569_s15  ;;  %v532_v26 = vld [vmem:[%s974_s0 + $0x3] ss:$16 sm:%s372_s28]   ;;  %v330_v31 = vsel %vm14_vm2, %v523_v25, %v325_v24  ;;  %s385_s17 = smov 192  ;;  %s575_s18 = smov 40   ;;  %v458_v63 = vld [vmem:[%s974_s0 + $0x80] sm:$0x1]  }
  0x1f   :  { %v533_v27 = vld [vmem:[%s974_s0 + $0x3] ss:$16 sm:%s375_s29]   ;;  %v529_v30 = vld [vmem:[%s974_s0 + $0x4] ss:$16 sm:%s356_s3]   ;;  %s401_s19 = smov 3  ;;  %s576_s23 = smov 32  }
  0x20   :  { %186 = vrot.lane.b32.xlu1 %v185_v50, %s570_s20  ;;  %v378_v32 = vsel %vm6_vm0, %v533_v27, %v532_v26  ;;  %v534_v33 = vld [vmem:[%s974_s0 + $0x3] ss:$16 sm:%s380_s10]   ;;  %s430_s24 = smov 3  ;;  %s409_s30 = smov 48  ;;  %v542_v50 = vld [vmem:[%s974_s0 + $0x82] sm:$0x1]  }
  0x21   :  { %v383_v35 = vsel %vm10_vm1, %v534_v33, %v378_v32  ;;  %v535_v36 = vld [vmem:[%s974_s0 + $0x3] ss:$16 sm:%s385_s17]   ;;  %v538_v37 = vld [vmem:[%s974_s0 + $0x2] ss:$16 sm:%s401_s19]   ;;  %s438_s8 = smov 48  ;;  %s414_s11 = smov 192 }
  0x22   :  { %v388_v39 = vsel %vm14_vm2, %v535_v36, %v383_v35  ;;  %v544_v41 = vld [vmem:[%s974_s0 + $0x1] ss:$16 sm:%s430_s24]   ;;  %v540_v44 = vld [vmem:[%s974_s0 + $0x2] ss:$16 sm:%s409_s30]   ;;  %s577_s12 = smov 24   ;;  %s443_s17 = smov 192 }
  0x23   :  { %v536_v45 = vld [vmem:[%s974_s0 + $0x83] sm:$0x1]   ;;  %v546_v47 = vld [vmem:[%s974_s0 + $0x1] ss:$16 sm:%s438_s8]   ;;  %s578_s24 = smov 16   ;;  %s2_s28 = smov 3 }
  0x24   :  { %192 = vrot.lane.b32.xlu2 %v494_v56, %s570_s20  ;;  %s404_s20 = smov 12  ;;  %v541_v49 = vld [vmem:[%s974_s0 + $0x2] ss:$16 sm:%s414_s11]   ;;  %s4_s29 = smov 12  ;;  %459 = vst.msk [vmem:[%s975_s1 + $0x8] sm:$0x1] %vm16_vm3, %v458_v63  }
  0x25   :  { %v539_v38 = vld [vmem:[%s974_s0 + $0x2] ss:$16 sm:%s404_s20]   ;;  %v547_v52 = vld [vmem:[%s974_s0 + $0x1] ss:$16 sm:%s443_s17]   ;;  %s8_s30 = smov 48  ;;  %vm43_vm4 = vcmask 1048512  }
  0x26   :  { %215 = vrot.lane.b32.xlu0 %v214_v55, %s571_s9  ;;  %v407_v43 = vsel %vm6_vm0, %v539_v38, %v538_v37  ;;  %v548_v55 = vld [vmem:[%s974_s0 + $0x81] sm:$0x1]   ;;  %v3_v56 = vld [vmem:[%s974_s0] ss:$16 sm:%s2_s28]   ;;  %vm72_vm5 = vcmask 982912   ;;  %vm101_vm6 = vcmask 917312  }
  0x27   :  { %v412_v48 = vsel %vm10_vm1, %v540_v44, %v407_v43  ;;  %v5_v57 = vld [vmem:[%s974_s0] ss:$16 sm:%s4_s29]   ;;  %vm130_vm7 = vcmask 851712   ;;  %vm159_vm8 = vcmask 786112   ;;  %vm188_vm9 = vcmask 720512  }
  0x28   :  { %221 = vrot.lane.b32.xlu1 %v500_v61, %s571_s9  ;;  %s346_s9 = smov 12  ;;  %v417_v53 = vsel %vm14_vm2, %v541_v49, %v412_v48  ;;  %v9_v58 = vld [vmem:[%s974_s0] ss:$16 sm:%s8_s30]   ;;  %v7_v59 = vsel %vm6_vm0, %v5_v57, %v3_v56  ;;  %vm217_vm10 = vcmask 654912   ;;  %vm246_vm11 = vcmask 589312  }
  0x29   :  { %v527_v18 = vld [vmem:[%s974_s0 + $0x4] ss:$16 sm:%s346_s9]   ;;  %v11_v61 = vsel %vm10_vm1, %v9_v58, %v7_v59  ;;  %vm275_vm12 = vcmask 523712   ;;  %vm304_vm13 = vcmask 458112   ;;  %vm333_vm14 = vcmask 392512  }
  0x2a   :  { %v349_v22 = vsel %vm6_vm0, %v527_v18, %v526_v17  ;;  %vm362_vm15 = vcmask 326912  }
  0x2b   :  { %v354_v29 = vsel %vm10_vm1, %v528_v23, %v349_v22 }
  0x2c   :  { %244 = vrot.lane.b32.xlu2 %v243_v7, %s572_s2  ;;  %v359_v34 = vsel %vm14_vm2, %v529_v30, %v354_v29 }
  0x2e   :  { %250 = vrot.lane.b32.xlu0 %v506_v4, %s572_s2  ;;  %s12_s2 = smov 192 }
  0x2f   :  { %v13_v60 = vld [vmem:[%s974_s0] ss:$16 sm:%s12_s2]  }
  0x30   :  { %273 = vrot.lane.b32.xlu1 %v272_v10, %s573_s7  ;;  %v15_v62 = vsel %vm14_vm2, %v13_v60, %v11_v61 }
  0x31   :  { %17 = vst.msk [vmem:[%s975_s1] sm:$0xff] %vm16_vm3, %v15_v62  }
  0x34   :  { %279 = vrot.lane.b32.xlu2 %v512_v16, %s573_s7 }
  0x36   :  { %302 = vrot.lane.b32.xlu0 %v301_v15, %s574_s25 }
  0x38   :  { %308 = vrot.lane.b32.xlu1 %v518_v21, %s574_s25  ;;  %s433_s25 = smov 12 }
  0x39   :  { %v545_v42 = vld [vmem:[%s974_s0 + $0x1] ss:$16 sm:%s433_s25]   ;;  %s579_s25 = smov 8  }
  0x3a   :  { %v436_v46 = vsel %vm6_vm0, %v545_v42, %v544_v41  ;;  %vm391_vm0 = vcmask 261312  }
  0x3b   :  { %v441_v51 = vsel %vm10_vm1, %v546_v47, %v436_v46  ;;  %vm420_vm1 = vcmask 195712  }
  0x3c   :  { %331 = vrot.lane.b32.xlu2 %v330_v31, %s575_s18  ;;  %v446_v54 = vsel %vm14_vm2, %v547_v52, %v441_v51  ;;  %vm449_vm2 = vcmask 130112  }
  0x3e   :  { %337 = vrot.lane.b32.xlu0 %v524_v28, %s575_s18 }
  0x40   :  { %360 = vrot.lane.b32.xlu1 %v359_v34, %s576_s23 }
  0x44   :  { %366 = vrot.lane.b32.xlu2 %v530_v40, %s576_s23 }
  0x46   :  { %389 = vrot.lane.b32.xlu0 %v388_v39, %s577_s12 }
  0x48   :  { %395 = vrot.lane.b32.xlu1 %v536_v45, %s577_s12 }
  0x4c   :  { %418 = vrot.lane.b32.xlu2 %v417_v53, %s578_s24 }
  0x4e   :  { %424 = vrot.lane.b32.xlu0 %v542_v50, %s578_s24 }
  0x50   :  { %447 = vrot.lane.b32.xlu1 %v446_v54, %s579_s25 }
  0x54   :  { %453 = vrot.lane.b32.xlu2 %v548_v55, %s579_s25 }
  0x66   :  { %v100_v0 = vpop.permute.xlu2 %99  }
  0x6e   :  { %v106_v1 = vpop.permute.xlu2 %105  }
  0x76   :  { %v158_v3 = vpop.permute.xlu2 %157  }
  0x78   :  { %v42_v2 = vpop.permute.xlu0 %41  }
  0x79   :  { %44 = vst.msk [vmem:[%s975_s1] sm:$0xff] %vm43_vm4, %v42_v2  }
  0x7a   :  { %v71_v4 = vpop.permute.xlu1 %70  }
  0x7b   :  { %73 = vst.msk [vmem:[%s975_s1] sm:$0xff] %vm72_vm5, %v71_v4  }
  0x7c   :  { %102 = vst.msk [vmem:[%s975_s1] sm:$0xff] %vm101_vm6, %v100_v0  }
  0x7e   :  { %v193_v6 = vpop.permute.xlu2 %192  }
  0x80   :  { %v48_v5 = vpop.permute.xlu0 %47  }
  0x81   :  { %465 = vst.msk [vmem:[%s975_s1 + $0x8] sm:$0x1] %vm43_vm4, %v48_v5  }
  0x82   :  { %v77_v7 = vpop.permute.xlu1 %76  }
  0x83   :  { %471 = vst.msk [vmem:[%s975_s1 + $0x8] sm:$0x1] %vm72_vm5, %v77_v7  }
  0x84   :  { %477 = vst.msk [vmem:[%s975_s1 + $0x8] sm:$0x1] %vm101_vm6, %v106_v1  }
  0x86   :  { %v245_v9 = vpop.permute.xlu2 %244  }
  0x88   :  { %v129_v8 = vpop.permute.xlu0 %128  }
  0x89   :  { %131 = vst.msk [vmem:[%s975_s1] sm:$0xff] %vm130_vm7, %v129_v8  }
  0x8a   :  { %160 = vst.msk [vmem:[%s975_s1] sm:$0xff] %vm159_vm8, %v158_v3   ;;  %v135_v10 = vpop.permute.xlu1 %134  }
  0x8b   :  { %483 = vst.msk [vmem:[%s975_s1 + $0x8] sm:$0x1] %vm130_vm7, %v135_v10  }
  0x8e   :  { %v280_v12 = vpop.permute.xlu2 %279  }
  0x90   :  { %v164_v11 = vpop.permute.xlu0 %163  }
  0x91   :  { %489 = vst.msk [vmem:[%s975_s1 + $0x8] sm:$0x1] %vm159_vm8, %v164_v11  }
  0x92   :  { %495 = vst.msk [vmem:[%s975_s1 + $0x8] sm:$0x1] %vm188_vm9, %v193_v6   ;;  %v187_v13 = vpop.permute.xlu1 %186  }
  0x93   :  { %189 = vst.msk [vmem:[%s975_s1] sm:$0xff] %vm188_vm9, %v187_v13  }
  0x96   :  { %v332_v15 = vpop.permute.xlu2 %331  }
  0x98   :  { %v216_v14 = vpop.permute.xlu0 %215  }
  0x99   :  { %218 = vst.msk [vmem:[%s975_s1] sm:$0xff] %vm217_vm10, %v216_v14  }
  0x9a   :  { %247 = vst.msk [vmem:[%s975_s1] sm:$0xff] %vm246_vm11, %v245_v9   ;;  %v222_v16 = vpop.permute.xlu1 %221  }
  0x9b   :  { %501 = vst.msk [vmem:[%s975_s1 + $0x8] sm:$0x1] %vm217_vm10, %v222_v16  }
  0x9e   :  { %v367_v18 = vpop.permute.xlu2 %366  }
  0xa0   :  { %v251_v17 = vpop.permute.xlu0 %250  }
  0xa1   :  { %507 = vst.msk [vmem:[%s975_s1 + $0x8] sm:$0x1] %vm246_vm11, %v251_v17  }
  0xa2   :  { %513 = vst.msk [vmem:[%s975_s1 + $0x8] sm:$0x1] %vm275_vm12, %v280_v12   ;;  %v274_v19 = vpop.permute.xlu1 %273  }
  0xa3   :  { %276 = vst.msk [vmem:[%s975_s1] sm:$0xff] %vm275_vm12, %v274_v19  }
  0xa6   :  { %v419_v21 = vpop.permute.xlu2 %418  }
  0xa8   :  { %v303_v20 = vpop.permute.xlu0 %302  }
  0xa9   :  { %305 = vst.msk [vmem:[%s975_s1] sm:$0xff] %vm304_vm13, %v303_v20  }
  0xaa   :  { %334 = vst.msk [vmem:[%s975_s1] sm:$0xff] %vm333_vm14, %v332_v15   ;;  %v309_v22 = vpop.permute.xlu1 %308  }
  0xab   :  { %519 = vst.msk [vmem:[%s975_s1 + $0x8] sm:$0x1] %vm304_vm13, %v309_v22  }
  0xae   :  { %v454_v24 = vpop.permute.xlu2 %453  }
  0xb0   :  { %v338_v23 = vpop.permute.xlu0 %337  }
  0xb1   :  { %525 = vst.msk [vmem:[%s975_s1 + $0x8] sm:$0x1] %vm333_vm14, %v338_v23  }
  0xb2   :  { %531 = vst.msk [vmem:[%s975_s1 + $0x8] sm:$0x1] %vm362_vm15, %v367_v18   ;;  %v361_v25 = vpop.permute.xlu1 %360  }
  0xb3   :  { %363 = vst.msk [vmem:[%s975_s1] sm:$0xff] %vm362_vm15, %v361_v25  }
  0xb8   :  { %v390_v26 = vpop.permute.xlu0 %389  }
  0xb9   :  { %392 = vst.msk [vmem:[%s975_s1] sm:$0xff] %vm391_vm0, %v390_v26  }
  0xba   :  { %421 = vst.msk [vmem:[%s975_s1] sm:$0xff] %vm420_vm1, %v419_v21   ;;  %v396_v27 = vpop.permute.xlu1 %395  }
  0xbb   :  { %537 = vst.msk [vmem:[%s975_s1 + $0x8] sm:$0x1] %vm391_vm0, %v396_v27  }
  0xc0   :  { %v425_v28 = vpop.permute.xlu0 %424  }
  0xc1   :  { %543 = vst.msk [vmem:[%s975_s1 + $0x8] sm:$0x1] %vm420_vm1, %v425_v28  }
  0xc2   :  { %549 = vst.msk [vmem:[%s975_s1 + $0x8] sm:$0x1] %vm449_vm2, %v454_v24   ;;  %v448_v29 = vpop.permute.xlu1 %447  }
  0xc3   :  { %450 = vst.msk [vmem:[%s975_s1] sm:$0xff] %vm449_vm2, %v448_v29  }

// kernel: tile.41
= control target key start
LH: loop header
LB: loop body
LE: loop exit
PB: predicated region body
PF: predicated region fallthrough
CT: control target
= control target key end

     0   :  { %vm6_vm0 = vcmask 1042434   ;;  %s11_s6 = smov 3  ;;  %s33_s11 = smov 3  ;;  %vm8_vm1 = vcmask 64512   ;;  %vm19_vm2 = vcmask 1048512   ;;  %vm30_vm3 = vcmask 982912   ;;  %s367_s0 = inlined_call_operand.vmem [shape: f32[3,16,1,1,8], index: 0, kind: input, shape index: {}]   ;;  %s368_s1 = inlined_call_operand.vmem [shape: f32[3,128], index: 1, kind: output, shape index: {}]  }
   0x1   :  { %v183_v0 = vld [vmem:[%s367_s0 + $0x2d] sm:$0x4]   ;;  %v187_v2 = vld [vmem:[%s367_s0 + $0x2b] sm:$0x4]   ;;  %s22_s16 = smov 3  ;;  %s227_s17 = smov 120  }
   0x2   :  { %v182_v1 = vld [vmem:[%s367_s0 + $0xf] ss:$16 sm:%s11_s6]   ;;  %v186_v4 = vld [vmem:[%s367_s0 + $0xd] ss:$16 sm:%s33_s11]   ;;  %s44_s18 = smov 3  ;;  %s228_s19 = smov 104  }
   0x3   :  { %v16_v3 = vsel %vm6_vm0, %v183_v0, %v182_v1  ;;  %v38_v5 = vsel %vm6_vm0, %v187_v2, %v186_v4  ;;  %v184_v6 = vld [vmem:[%s367_s0 + $0xe] ss:$16 sm:%s22_s16]   ;;  %v188_v8 = vld [vmem:[%s367_s0 + $0xc] ss:$16 sm:%s44_s18]   ;;  %s55_s28 = smov 3  ;;  %s77_s2 = smov 3 }
   0x4   :  { %17 = vrot.lane.b32.xlu0 %v16_v3, %s227_s17  ;;  %39 = vrot.lane.b32.xlu1 %v38_v5, %s228_s19  ;;  %v185_v7 = vld [vmem:[%s367_s0 + $0x2c] sm:$0x4]   ;;  %v189_v9 = vld [vmem:[%s367_s0 + $0x2a] sm:$0x4]   ;;  %s229_s5 = smov 112   ;;  %s88_s6 = smov 3 }
   0x5   :  { %v27_v10 = vsel %vm6_vm0, %v185_v7, %v184_v6  ;;  %v191_v11 = vld [vmem:[%s367_s0 + $0x29] sm:$0x4]   ;;  %v49_v12 = vsel %vm6_vm0, %v189_v9, %v188_v8  ;;  %s230_s7 = smov 88   ;;  %s66_s8 = smov 3  ;;  %v194_v15 = vld [vmem:[%s367_s0 + $0x9] ss:$16 sm:%s77_s2]  }
   0x6   :  { %v190_v13 = vld [vmem:[%s367_s0 + $0xb] ss:$16 sm:%s55_s28]   ;;  %s231_s9 = smov 96   ;;  %v195_v16 = vld [vmem:[%s367_s0 + $0x27] sm:$0x4]   ;;  %s110_s22 = smov 3 }
   0x7   :  { %v60_v14 = vsel %vm6_vm0, %v191_v11, %v190_v13  ;;  %v192_v17 = vld [vmem:[%s367_s0 + $0xa] ss:$16 sm:%s66_s8]   ;;  %v196_v19 = vld [vmem:[%s367_s0 + $0x8] ss:$16 sm:%s88_s6]   ;;  %v82_v21 = vsel %vm6_vm0, %v195_v16, %v194_v15  ;;  %s99_s23 = smov 3  ;;  %s232_s24 = smov 72  }
   0x8   :  { %61 = vrot.lane.b32.xlu2 %v60_v14, %s230_s7  ;;  %v193_v18 = vld [vmem:[%s367_s0 + $0x28] sm:$0x4]   ;;  %v197_v20 = vld [vmem:[%s367_s0 + $0x26] sm:$0x4]   ;;  %s121_s25 = smov 3  ;;  %s233_s26 = smov 80  }
   0x9   :  { %v71_v22 = vsel %vm6_vm0, %v193_v18, %v192_v17  ;;  %v93_v23 = vsel %vm6_vm0, %v197_v20, %v196_v19  ;;  %s234_s27 = smov 64   ;;  %v200_v24 = vld [vmem:[%s367_s0 + $0x6] ss:$16 sm:%s110_s22]   ;;  %v198_v26 = vld [vmem:[%s367_s0 + $0x7] ss:$16 sm:%s99_s23]   ;;  %s143_s11 = smov 3 }
   0xa   :  { %v201_v25 = vld [vmem:[%s367_s0 + $0x24] sm:$0x4]   ;;  %v199_v27 = vld [vmem:[%s367_s0 + $0x25] sm:$0x4]   ;;  %v202_v28 = vld [vmem:[%s367_s0 + $0x5] ss:$16 sm:%s121_s25]  }
   0xb   :  { %v203_v29 = vld [vmem:[%s367_s0 + $0x23] sm:$0x4]   ;;  %v115_v30 = vsel %vm6_vm0, %v201_v25, %v200_v24  ;;  %v104_v31 = vsel %vm6_vm0, %v199_v27, %v198_v26  ;;  %s132_s12 = smov 3  ;;  %s235_s13 = smov 48   ;;  %v206_v33 = vld [vmem:[%s367_s0 + $0x3] ss:$16 sm:%s143_s11]  }
   0xc   :  { %28 = vrot.lane.b32.xlu0 %v27_v10, %s229_s5  ;;  %50 = vrot.lane.b32.xlu1 %v49_v12, %s231_s9  ;;  %v126_v32 = vsel %vm6_vm0, %v203_v29, %v202_v28  ;;  %s154_s14 = smov 3  ;;  %s236_s15 = smov 56   ;;  %v207_v34 = vld [vmem:[%s367_s0 + $0x21] sm:$0x4]   ;;  %v205_v36 = vld [vmem:[%s367_s0 + $0x22] sm:$0x4]  }
   0xd   :  { %s237_s16 = smov 40   ;;  %v204_v35 = vld [vmem:[%s367_s0 + $0x4] ss:$16 sm:%s132_s12]   ;;  %v208_v37 = vld [vmem:[%s367_s0 + $0x2] ss:$16 sm:%s154_s14]   ;;  %v148_v39 = vsel %vm6_vm0, %v207_v34, %v206_v33  ;;  %s165_s29 = smov 3 }
   0xe   :  { %v209_v38 = vld [vmem:[%s367_s0 + $0x20] sm:$0x4]   ;;  %v137_v40 = vsel %vm6_vm0, %v205_v36, %v204_v35  ;;  %s238_s30 = smov 24   ;;  %s239_s2 = smov 32   ;;  %v210_v42 = vld [vmem:[%s367_s0 + $0x1] ss:$16 sm:%s165_s29]  }
   0xf   :  { %v159_v41 = vsel %vm6_vm0, %v209_v38, %v208_v37  ;;  %s240_s3 = smov 16   ;;  %v211_v43 = vld [vmem:[%s367_s0 + $0x1f] sm:$0x4]   ;;  %s241_s8 = smov 8   ;;  %v181_v46 = vld [vmem:[%s367_s0 + $0x1e] sm:$0x4]  }
  0x10   :  { %72 = vrot.lane.b32.xlu2 %v71_v22, %s233_s26  ;;  %v170_v44 = vsel %vm6_vm0, %v211_v43, %v210_v42  ;;  %s2_s9 = smov 3  ;;  %vm41_vm4 = vcmask 917312   ;;  %vm52_vm5 = vcmask 851712   ;;  %vm63_vm6 = vcmask 786112  }
  0x11   :  { %v3_v45 = vld [vmem:[%s367_s0] ss:$16 sm:%s2_s9]   ;;  %vm74_vm7 = vcmask 720512   ;;  %vm85_vm8 = vcmask 654912   ;;  %vm96_vm9 = vcmask 589312   ;;  %vm107_vm10 = vcmask 523712  }
  0x12   :  { %v7_v47 = vsel %vm6_vm0, %v181_v46, %v3_v45  ;;  %vm118_vm11 = vcmask 458112   ;;  %vm129_vm12 = vcmask 392512   ;;  %vm140_vm13 = vcmask 326912  }
  0x13   :  { %9 = vst.msk [vmem:[#allocation0] sm:$0x7] %vm8_vm1, %v7_v47   ;;  %vm151_vm14 = vcmask 261312   ;;  %vm162_vm15 = vcmask 195712   ;;  %vm173_vm0 = vcmask 130112  }
  0x14   :  { %83 = vrot.lane.b32.xlu0 %v82_v21, %s232_s24  ;;  %94 = vrot.lane.b32.xlu1 %v93_v23, %s234_s27 }
  0x18   :  { %105 = vrot.lane.b32.xlu2 %v104_v31, %s236_s15 }
  0x1c   :  { %116 = vrot.lane.b32.xlu0 %v115_v30, %s235_s13  ;;  %127 = vrot.lane.b32.xlu1 %v126_v32, %s237_s16 }
  0x20   :  { %138 = vrot.lane.b32.xlu2 %v137_v40, %s239_s2 }
  0x24   :  { %149 = vrot.lane.b32.xlu0 %v148_v39, %s238_s30  ;;  %160 = vrot.lane.b32.xlu1 %v159_v41, %s240_s3 }
  0x28   :  { %171 = vrot.lane.b32.xlu2 %v170_v44, %s241_s8 }
  0x62   :  { %v62_v48 = vpop.permute.xlu2 %61  }
  0x6a   :  { %v73_v49 = vpop.permute.xlu2 %72  }
  0x72   :  { %v106_v51 = vpop.permute.xlu2 %105  }
  0x76   :  { %v18_v50 = vpop.permute.xlu0 %17   ;;  %v40_v52 = vpop.permute.xlu1 %39  }
  0x77   :  { %20 = vst.msk [vmem:[#allocation0] sm:$0x7] %vm19_vm2, %v18_v50  }
  0x7a   :  { %v139_v54 = vpop.permute.xlu2 %138  }
  0x7e   :  { %v29_v53 = vpop.permute.xlu0 %28   ;;  %v51_v55 = vpop.permute.xlu1 %50  }
  0x7f   :  { %31 = vst.msk [vmem:[#allocation0] sm:$0x7] %vm30_vm3, %v29_v53  }
  0x80   :  { %42 = vst.msk [vmem:[#allocation0] sm:$0x7] %vm41_vm4, %v40_v52  }
  0x81   :  { %53 = vst.msk [vmem:[#allocation0] sm:$0x7] %vm52_vm5, %v51_v55  }
  0x82   :  { %64 = vst.msk [vmem:[#allocation0] sm:$0x7] %vm63_vm6, %v62_v48   ;;  %v172_v57 = vpop.permute.xlu2 %171  }
  0x83   :  { %75 = vst.msk [vmem:[#allocation0] sm:$0x7] %vm74_vm7, %v73_v49  }
  0x86   :  { %v84_v56 = vpop.permute.xlu0 %83   ;;  %v95_v58 = vpop.permute.xlu1 %94  }
  0x87   :  { %86 = vst.msk [vmem:[#allocation0] sm:$0x7] %vm85_vm8, %v84_v56  }
  0x88   :  { %97 = vst.msk [vmem:[#allocation0] sm:$0x7] %vm96_vm9, %v95_v58  }
  0x89   :  { %108 = vst.msk [vmem:[#allocation0] sm:$0x7] %vm107_vm10, %v106_v51  }
  0x8e   :  { %v117_v59 = vpop.permute.xlu0 %116   ;;  %v128_v60 = vpop.permute.xlu1 %127  }
  0x8f   :  { %119 = vst.msk [vmem:[#allocation0] sm:$0x7] %vm118_vm11, %v117_v59  }
  0x90   :  { %130 = vst.msk [vmem:[#allocation0] sm:$0x7] %vm129_vm12, %v128_v60  }
  0x91   :  { %141 = vst.msk [vmem:[#allocation0] sm:$0x7] %vm140_vm13, %v139_v54  }
  0x96   :  { %v150_v61 = vpop.permute.xlu0 %149   ;;  %v161_v62 = vpop.permute.xlu1 %160  }
  0x97   :  { %152 = vst.msk [vmem:[#allocation0] sm:$0x7] %vm151_vm14, %v150_v61  }
  0x98   :  { %163 = vst.msk [vmem:[#allocation0] sm:$0x7] %vm162_vm15, %v161_v62  }
  0x99   :  { %174 = vst.msk [vmem:[#allocation0] sm:$0x7] %vm173_vm0, %v172_v57  }
  0xa0   :  { %v177_v63 = vld [vmem:[#allocation0] sm:$0xf] }
  0xa1   :  { %180 = vst [vmem:[%s368_s1] sm:$0xf] %v177_v63 }

// kernel: msdc_forward.3
= control target key start
LH: loop header
LB: loop body
LE: loop exit
PB: predicated region body
PF: predicated region fallthrough
CT: control target
= control target key end

     0   :  { %s2055_s24 = smov 0   ;;  %s2057_s25 = smov 0   ;;  %s2952_s0 = inlined_call_operand.vmem [shape: f32[2,24,160], index: 0, kind: input, shape index: {}, may-alias: {0,1}]   ;;  %s2953_s1 = inlined_call_operand.vmem [shape: f32[2,24,160], index: 1, kind: input, shape index: {}, may-alias: {0,1}]   ;;  %s2954_s2 = inlined_call_operand.vmem [shape: f32[1,128], index: 2, kind: input, shape index: {}]   ;;  %s2955_s3 = inlined_call_operand.vmem [shape: f32[9,128], index: 3, kind: input, shape index: {}]   ;;  %s2956_s4 = inlined_call_operand.vmem [shape: f32[25,128], index: 4, kind: input, shape index: {}]   ;;  %s2957_s5 = inlined_call_operand.vmem [shape: f32[3,128], index: 5, kind: input, shape index: {}]   ;;  %s2958_s6 = inlined_call_operand.vmem [shape: f32[3,128], index: 6, kind: input, shape index: {}]   ;;  %s2959_s7 = inlined_call_operand.vmem [shape: f32[2,16,384], index: 7, kind: output, shape index: {}]  }
   0x1   :  { %s2059_s26 = smov 0  }
   0x2 LB: > { %s29_s27 = sadd.s32 1, %s2001_s25  ;;  %p1929_p0 = scmp.ge.s32.totalorder %s2005_s26, 1  ;;  %s2005_s26 = sphi %s2059_s26, %s17_s26   ;;  %s2001_s25 = sphi %s2057_s25, %s2961_s25   ;;  %s1997_s24 = sphi %s2055_s24, %s2960_s24  }
   0x3   : > { %p31_p1 = scmp.ge.s32.totalorder %s29_s27, 2  ;;  %p293_p2 = scmp.lt.s32.totalorder %s2005_s26, 3 }
   0x5   : > { %s2963_s27 = smov (%p31_p1, %s29_s27), 0  ;;  %p294_p3 = pnand %p1929_p0, %p293_p2 }
   0x6   : > { %s2007_s11 = smov (!%p294_p3), 16   ;;  %p357_p4 = scmp.lt.s32.totalorder (!%p294_p3), %s1997_s24, 1 }
   0x7   : > { %297 = sbr.rel (%p294_p3) target bundleno = 2108 (0x83c), region = 48  ;;  %s2008_s14 = smov (!%p294_p3), 8  }
   0x8   : > { %s2009_s15 = smov (!%p294_p3), 24   ;;  %s2010_s29 = smov (!%p294_p3), 120  }
   0x9   : > { %s2011_s30 = smov (!%p294_p3), 112   ;;  %s2012_s16 = smov (!%p294_p3), 104  }
   0xa   : > { %s2013_s17 = smov (!%p294_p3), 32  }
   0xc   : > { %v488_v0 = vld [vmem:[%s2955_s3] sm:$0xff]  ;;  %s2965_s24 = smov (!%p357_p4, %s1997_s24), 1  ;;  %v1973_v14 = vld [vmem:[%s2955_s3 + $0x8] ss:$0 sm:$0xff]  ;;  %vm613_vm0 = vcmask 1046528   ;;  %vm462_vm1 = vcmask 1045504  }
   0xd   : > { %v1972_v1 = vld [vmem:[%s2954_s2] ss:$0 sm:$0xff]  ;;  %v507_v2 = vperm.slane %v488_v0, 1  ;;  %v636_v7 = vperm.slane %v488_v0, 4  ;;  %v490_v8 = vperm.slane %v488_v0, 0  ;;  %v552_v9 = vperm.slane %v488_v0, 2 }
   0xe   : > { %v2082_v3 = vld [vmem:[%s2958_s6] sm:$0x7]  ;;  %407 = vrot.lane.b32.xlu0 %v1972_v1, %s2007_s11  ;;  %v783_v10 = vperm.slane %v488_v0, 7  ;;  %v596_v11 = vperm.slane %v488_v0, 3  ;;  %v690_v12 = vperm.slane %v488_v0, 5  ;;  %v744_v13 = vperm.slane %v488_v0, 6 }
   0xf   : > { %v433_v4 = vperm.slane %v2082_v3, 0  ;;  %509 = vrot.lane.b32.xlu2 %v507_v2, %s2007_s11  ;;  %v2090_v5 = vld [vmem:[%s2957_s5] sm:$0x7]  ;;  %s2106_s18 = smul.u32 48, %s2965_s24  ;;  %vm536_vm2 = vcmask 982016   ;;  %vm481_vm3 = vcmask 916480  }
  0x10   : > { %v422_v6 = vperm.slane %v2090_v5, 0  ;;  %vm1039_vm4 = vcmask 850944   ;;  %vm1067_vm5 = vcmask 785408   ;;  %vm1441_vm6 = vcmask 1044480  }
  0x11   : > { %435 = vrot.lane.b32.xlu1 %v433_v4, %s2007_s11  ;;  %s2112_s21 = scalar_lea.vmem %s2952_s0, %s2106_s18  ;;  %s1936_s22 = sadd.s32 32, %s2106_s18  ;;  %vm1622_vm7 = vcmask 1043456  }
  0x12   : > { %v2115_v15 = vld [vmem:[%s2112_s21 + $0x8] sm:$0xff]  ;;  %v2118_v16 = vld [vmem:[%s2112_s21] sm:$0xff]  ;;  %v2122_v17 = vld [vmem:[%s2112_s21 + $0x10] sm:$0xff]  ;;  %s2129_s28 = scalar_lea.vmem %s2953_s1, %s1936_s22  ;;  %s2383_s13 = scalar_lea.vmem %s2959_s7, %s2106_s18 }
  0x13   : > { %v2135_v22 = vld [vmem:[%s2129_s28] sm:$0xf]  ;;  %v2138_v23 = vld [vmem:[%s2112_s21 + $0x18] sm:$0xff]  ;;  %v2142_v24 = vld [vmem:[%s2129_s28 + $0x8] sm:$0xf]  ;;  %s2014_s18 = smov 96  }
  0x16   : > { %424 = vrot.lane.b32.xlu0 %v422_v6, %s2007_s11 }
  0x17   : > { %638 = vrot.lane.b32.xlu2 %v636_v7, %s2007_s11 }
  0x19   : > { %492 = vrot.lane.b32.xlu1 %v490_v8, %s2008_s14 }
  0x1e   : > { %554 = vrot.lane.b32.xlu0 %v552_v9, %s2009_s15 }
  0x1f   : > { %785 = vrot.lane.b32.xlu2 %v783_v10, %s2007_s11 }
  0x21   : > { %598 = vrot.lane.b32.xlu1 %v596_v11, %s2008_s14 }
  0x26   : > { %692 = vrot.lane.b32.xlu0 %v690_v12, %s2009_s15 }
  0x29   : > { %746 = vrot.lane.b32.xlu1 %v744_v13, %s2008_s14 }
  0x2e   : > { %839 = vrot.lane.b32.xlu0 %v1973_v14, %s2009_s15 }
  0x69   : > { %v510_v18 = vpop.permute.xlu2 %509 }
  0x6a   : > { %v513_v19 = vmul.f32 %v510_v18, %v2115_v15  ;;  %v512_v20 = vmul.f32 %v510_v18, %v2118_v16  ;;  %v514_v21 = vmul.f32 %v510_v18, %v2122_v17  ;;  %v516_v25 = vmul.f32 %v510_v18, %v2135_v22 }
  0x6b   : > { %v515_v26 = vmul.f32 %v510_v18, %v2138_v23  ;;  %v517_v27 = vmul.f32 %v510_v18, %v2142_v24 }
  0x6c   : > { %526 = vrot.lane.b32.xlu1 %v513_v19, %s2010_s29  ;;  %524 = vrot.lane.b32.xlu0 %v512_v20, %s2010_s29 }
  0x6d   : > { %528 = vrot.lane.b32.xlu2 %v514_v21, %s2010_s29 }
  0x71   : > { %v639_v34 = vpop.permute.xlu2 %638 }
  0x72   : > { %v646_v39 = vmul.f32 %v639_v34, %v2142_v24  ;;  %v645_v40 = vmul.f32 %v639_v34, %v2135_v22  ;;  %v641_v46 = vmul.f32 %v639_v34, %v2118_v16  ;;  %v643_v49 = vmul.f32 %v639_v34, %v2122_v17 }
  0x73   : > { %v642_v54 = vmul.f32 %v639_v34, %v2115_v15  ;;  %v644_v55 = vmul.f32 %v639_v34, %v2138_v23 }
  0x74   : > { %532 = vrot.lane.b32.xlu1 %v516_v25, %s2010_s29  ;;  %530 = vrot.lane.b32.xlu0 %v515_v26, %s2010_s29  ;;  %v661_v42 = vrot.slane %v646_v39, 1  ;;  %v659_v43 = vrot.slane %v645_v40, 1  ;;  %v653_v52 = vrot.slane %v641_v46, 1  ;;  %v654_v53 = vrot.slane %v643_v49, 1 }
  0x75   : > { %534 = vrot.lane.b32.xlu2 %v517_v27, %s2010_s29  ;;  %v656_v58 = vrot.slane %v642_v54, 1  ;;  %v657_v59 = vrot.slane %v644_v55, 1 }
  0x76   : > { %v655_v56 = vsel %vm613_vm0, %v653_v52, %v654_v53  ;;  %v660_v21 = vsel %vm613_vm0, %v654_v53, %v659_v43 }
  0x77   : > { %v658_v0 = vsel %vm613_vm0, %v656_v58, %v657_v59  ;;  %v662_v1 = vsel %vm613_vm0, %v657_v59, %v661_v42 }
  0x79   : > { %v786_v45 = vpop.permute.xlu2 %785 }
  0x7a   : > { %v2178_v48 = vmul.f32 %v786_v45, %v2135_v22  ;;  %v793_v57 = vmul.f32 %v786_v45, %v2142_v24  ;;  %v788_v12 = vmul.f32 %v786_v45, %v2118_v16  ;;  %v790_v13 = vmul.f32 %v786_v45, %v2122_v17 }
  0x7b   : > { %v789_v27 = vmul.f32 %v786_v45, %v2115_v15 }
  0x7c   : > { %v806_v51 = vrot.slane %v2178_v48, 2  ;;  %v808_v63 = vrot.slane %v793_v57, 2  ;;  %v800_v18 = vrot.slane %v788_v12, 2  ;;  %v801_v19 = vrot.slane %v790_v13, 2 }
  0x80   : > { %v2150_v28 = vpop.permute.xlu0 %407 }
  0x81   : > { %v412_v53 = vmul.f32 %v2150_v28, %v2122_v17 }
  0x83   : > { %v2205_v8 = vpop.permute.xlu1 %435 }
  0x88   : > { %v2152_v29 = vpop.permute.xlu0 %424 }
  0x8b   : > { %v2216_v20 = vpop.permute.xlu1 %492 }
  0x90   : > { %v555_v30 = vpop.permute.xlu0 %554 }
  0x91   : > { %v558_v31 = vmul.f32 %v555_v30, %v2115_v15  ;;  %v557_v32 = vmul.f32 %v555_v30, %v2118_v16  ;;  %v559_v33 = vmul.f32 %v555_v30, %v2122_v17  ;;  %v561_v35 = vmul.f32 %v555_v30, %v2135_v22 }
  0x92   : > { %v560_v36 = vmul.f32 %v555_v30, %v2138_v23  ;;  %v562_v38 = vmul.f32 %v555_v30, %v2142_v24  ;;  %v791_v30 = vmul.f32 %v786_v45, %v2138_v23  ;;  %v410_v45 = vmul.f32 %v2150_v28, %v2118_v16 }
  0x93   : > { %571 = vrot.lane.b32.xlu2 %v558_v31, %s2011_s30  ;;  %569 = vrot.lane.b32.xlu1 %v557_v32, %s2011_s30  ;;  %v802_v31 = vsel %vm462_vm1, %v800_v18, %v801_v19  ;;  %v413_v32 = vmul.f32 %v2150_v28, %v2138_v23 }
  0x94   : > { %573 = vrot.lane.b32.xlu0 %v559_v33, %s2011_s30  ;;  %v415_v33 = vmul.f32 %v2150_v28, %v2142_v24  ;;  %v427_v55 = vmul.f32 %v2152_v29, %v410_v45 }
  0x98   : > { %v2162_v37 = vpop.permute.xlu0 %692 }
  0x99   : > { %v700_v41 = vmul.f32 %v2162_v37, %v2142_v24  ;;  %v699_v47 = vmul.f32 %v2162_v37, %v2135_v22  ;;  %v695_v61 = vmul.f32 %v2162_v37, %v2118_v16  ;;  %v697_v62 = vmul.f32 %v2162_v37, %v2122_v17 }
  0x9a   : > { %v698_v11 = vmul.f32 %v2162_v37, %v2138_v23  ;;  %v696_v26 = vmul.f32 %v2162_v37, %v2115_v15  ;;  %v430_v37 = vmul.f32 %v2152_v29, %v413_v32 }
  0x9b   : > { %577 = vrot.lane.b32.xlu2 %v561_v35, %s2011_s30  ;;  %575 = vrot.lane.b32.xlu1 %v560_v36, %s2011_s30  ;;  %v715_v44 = vrot.slane %v700_v41, 1  ;;  %v713_v50 = vrot.slane %v699_v47, 1  ;;  %v707_v4 = vrot.slane %v695_v61, 1  ;;  %v708_v6 = vrot.slane %v697_v62, 1 }
  0x9c   : > { %579 = vrot.lane.b32.xlu0 %v562_v38, %s2011_s30  ;;  %v711_v14 = vrot.slane %v698_v11, 1  ;;  %v710_v34 = vrot.slane %v696_v26, 1  ;;  %v803_v35 = vrot.slane %v789_v27, 2  ;;  %v804_v36 = vrot.slane %v791_v30, 2 }
  0x9d   : > { %v709_v9 = vsel %vm613_vm0, %v707_v4, %v708_v6  ;;  %v714_v10 = vsel %vm613_vm0, %v708_v6, %v713_v50  ;;  %v432_v38 = vmul.f32 %v2152_v29, %v415_v33  ;;  %v441_v47 = vadd.f32 %v2205_v8, %v430_v37 }
  0x9e   : > { %v716_v25 = vsel %vm613_vm0, %v711_v14, %v715_v44  ;;  %v712_v41 = vsel %vm613_vm0, %v710_v34, %v711_v14  ;;  %v809_v46 = vsel %vm462_vm1, %v804_v36, %v808_v63  ;;  %v807_v61 = vsel %vm462_vm1, %v801_v19, %v806_v51 }
  0x9f   : > { %v443_v49 = vadd.f32 %v2205_v8, %v432_v38  ;;  %v447_v57 = vmax.f32 %v441_v47, 0.0 }
  0xa0   : > { %v2192_v60 = vpop.permute.xlu0 %839 }
  0xa1   : > { %v846_v2 = vmul.f32 %v2192_v60, %v2135_v22  ;;  %v842_v39 = vmul.f32 %v2192_v60, %v2118_v16  ;;  %v844_v40 = vmul.f32 %v2192_v60, %v2122_v17  ;;  %v449_v58 = vmax.f32 %v443_v49, 0.0 }
  0xa2   : > { %v847_v4 = vmul.f32 %v2192_v60, %v2142_v24  ;;  %v453_v48 = vmin.f32 %v447_v57, 6.0 }
  0xa3   : > { %673 = vrot.lane.b32.xlu2 %v661_v42, %s2010_s29  ;;  %671 = vrot.lane.b32.xlu1 %v659_v43, %s2010_s29  ;;  %v860_v7 = vrot.slane %v846_v2, 2  ;;  %v805_v42 = vsel %vm462_vm1, %v803_v35, %v804_v36  ;;  %v2240_v43 = vpop.permute.xlu1 %598  ;;  %v855_v52 = vrot.slane %v844_v40, 2  ;;  %v845_v2 = vmul.f32 %v2192_v60, %v2138_v23 }
  0xa4   : > { %727 = vrot.lane.b32.xlu0 %v715_v44, %s2011_s30  ;;  %v411_v44 = vmul.f32 %v2150_v28, %v2115_v15  ;;  %v862_v14 = vrot.slane %v847_v4, 2  ;;  %v467_v19 = vrot.slane %v453_v48, 2  ;;  %v498_v48 = vmul.f32 %v2216_v20, %v2138_v23 }
  0xa5   : > { %v861_v62 = vsel %vm462_vm1, %v855_v52, %v860_v7  ;;  %v858_v13 = vrot.slane %v845_v2, 2 }
  0xa6   : > { %v428_v54 = vmul.f32 %v2152_v29, %v411_v44 }
  0xab   : > { %725 = vrot.lane.b32.xlu2 %v713_v50, %s2011_s30  ;;  %818 = vrot.lane.b32.xlu1 %v806_v51, %s2010_s29  ;;  %v854_v50 = vrot.slane %v842_v39, 2  ;;  %v455_v51 = vmin.f32 %v449_v58, 6.0  ;;  %v902_v58 = vperm.slane %v2082_v3, 1  ;;  %v500_v3 = vmul.f32 %v2216_v20, %v2142_v24 }
  0xac   : > { %663 = vrot.lane.b32.xlu0 %v655_v56, %s2010_s29  ;;  %v429_v56 = vmul.f32 %v2152_v29, %v412_v53 }
  0xad   : > { %v856_v59 = vsel %vm462_vm1, %v854_v50, %v855_v52  ;;  %v891_v50 = vperm.slane %v2090_v5, 1  ;;  %v496_v52 = vmul.f32 %v2216_v20, %v2115_v15 }
  0xae   : > { %v440_v6 = vadd.f32 %v2205_v8, %v429_v56 }
  0xb0   : > { %v446_v18 = vmax.f32 %v440_v6, 0.0 }
  0xb3   : > { %820 = vrot.lane.b32.xlu2 %v808_v63, %s2010_s29  ;;  %665 = vrot.lane.b32.xlu1 %v658_v0, %s2010_s29  ;;  %v439_v63 = vadd.f32 %v2205_v8, %v428_v54  ;;  %v438_v0 = vadd.f32 %v2205_v8, %v427_v55  ;;  %v2303_v55 = vld [vmem:[%s2956_s4] sm:$0xff] }
  0xb4   : > { %669 = vrot.lane.b32.xlu0 %v662_v1, %s2010_s29  ;;  %v843_v1 = vmul.f32 %v2192_v60, %v2115_v15  ;;  %v964_v5 = vperm.slane %v2303_v55, 1 }
  0xb5   : > { %v444_v11 = vmax.f32 %v438_v0, 0.0 }
  0xb6   : > { %v857_v60 = vrot.slane %v843_v1, 2 }
  0xb7   : > { %v450_v30 = vmin.f32 %v444_v11, 6.0 }
  0xb8   : > { %v859_v27 = vsel %vm462_vm1, %v857_v60, %v858_v13 }
  0xbb   : > { %872 = vrot.lane.b32.xlu2 %v860_v7, %s2011_s30  ;;  %717 = vrot.lane.b32.xlu1 %v709_v9, %s2011_s30  ;;  %v414_v7 = vmul.f32 %v2150_v28, %v2135_v22  ;;  %v2276_v9 = vpop.permute.xlu1 %746  ;;  %v863_v28 = vsel %vm462_vm1, %v858_v13, %v862_v14 }
  0xbc   : > { %721 = vrot.lane.b32.xlu0 %v714_v10, %s2011_s30  ;;  %v445_v10 = vmax.f32 %v439_v63, 0.0 }
  0xbd   : > { %v431_v12 = vmul.f32 %v2152_v29, %v414_v7  ;;  %v606_v7 = vmul.f32 %v2240_v43, %v2142_v24 }
  0xbf   : > { %v442_v26 = vadd.f32 %v2205_v8, %v431_v12  ;;  %v463_v8 = vrot.slane %v450_v30, 2 }
  0xc1   : > { %v448_v37 = vmax.f32 %v442_v26, 0.0  ;;  %v605_v26 = vmul.f32 %v2240_v43, %v2135_v22 }
  0xc3   : > { %667 = vrot.lane.b32.xlu2 %v660_v21, %s2010_s29  ;;  %723 = vrot.lane.b32.xlu1 %v716_v25, %s2011_s30  ;;  %v471_v21 = vrot.slane %v455_v51, 2  ;;  %v451_v25 = vmin.f32 %v445_v10, 6.0  ;;  %v497_v51 = vmul.f32 %v2216_v20, %v2122_v17  ;;  %v499_v10 = vmul.f32 %v2216_v20, %v2135_v22 }
  0xc4   : > { %810 = vrot.lane.b32.xlu0 %v802_v31, %s2010_s29  ;;  %v452_v31 = vmin.f32 %v446_v18, 6.0 }
  0xc5   : > { %v472_v29 = vsel %vm462_vm1, %v467_v19, %v471_v21  ;;  %v466_v35 = vrot.slane %v451_v25, 2 }
  0xc6   : > { %v464_v36 = vrot.slane %v452_v31, 2 }
  0xc7   : > { %v529_v32 = vpop.permute.xlu2 %528  ;;  %v468_v39 = vsel %vm462_vm1, %v466_v35, %v467_v19 }
  0xc8   : > { %v465_v40 = vsel %vm462_vm1, %v463_v8, %v464_v36 }
  0xcb   : > { %719 = vrot.lane.b32.xlu2 %v712_v41, %s2011_s30  ;;  %812 = vrot.lane.b32.xlu1 %v805_v42, %s2010_s29  ;;  %v454_v41 = vmin.f32 %v448_v37, 6.0 }
  0xcc   : > { %816 = vrot.lane.b32.xlu0 %v809_v46, %s2010_s29 }
  0xcd   : > { %v469_v46 = vrot.slane %v454_v41, 2 }
  0xcf   : > { %v535_v42 = vpop.permute.xlu2 %534  ;;  %v470_v53 = vsel %vm462_vm1, %v464_v36, %v469_v46 }
  0xd0   : > { %v551_v12 = vadd.f32 %v535_v42, %v500_v3 }
  0xd3   : > { %814 = vrot.lane.b32.xlu2 %v807_v61, %s2010_s29  ;;  %864 = vrot.lane.b32.xlu1 %v856_v59, %s2011_s30 }
  0xd4   : > { %868 = vrot.lane.b32.xlu0 %v861_v62, %s2011_s30  ;;  %v495_v62 = vmul.f32 %v2216_v20, %v2118_v16 }
  0xdb   : > { %866 = vrot.lane.b32.xlu2 %v859_v27, %s2011_s30  ;;  %870 = vrot.lane.b32.xlu1 %v863_v28, %s2011_s30  ;;  %v622_v28 = vrot.slane %v606_v7, 1 }
  0xdc   : > { %479 = vrot.lane.b32.xlu0 %v472_v29, %s2011_s30  ;;  %v620_v29 = vrot.slane %v605_v26, 1 }
  0xde   : > { %v527_v33 = vpop.permute.xlu1 %526  ;;  %v525_v34 = vpop.permute.xlu0 %524 }
  0xdf   : > { %v537_v38 = vsel %vm536_vm2, %v525_v34, %v527_v33  ;;  %v547_v54 = vadd.f32 %v527_v33, %v496_v52  ;;  %v2330_v34 = vmul.f32 %v2276_v9, %v2142_v24 }
  0xe0   : > { %v546_v63 = vadd.f32 %v537_v38, %v495_v62 }
  0xe1   : > { %v769_v41 = vrot.slane %v2330_v34, 2 }
  0xe3   : > { %475 = vrot.lane.b32.xlu2 %v468_v39, %s2011_s30  ;;  %473 = vrot.lane.b32.xlu1 %v465_v40, %s2011_s30  ;;  %v2337_v39 = vmul.f32 %v2276_v9, %v2135_v22 }
  0xe4   : > { %874 = vrot.lane.b32.xlu0 %v862_v14, %s2011_s30 }
  0xe6   : > { %v533_v44 = vpop.permute.xlu1 %532  ;;  %v531_v45 = vpop.permute.xlu0 %530 }
  0xe7   : > { %v539_v47 = vsel %vm536_vm2, %v533_v44, %v535_v42  ;;  %v538_v49 = vsel %vm536_vm2, %v529_v32, %v531_v45  ;;  %v549_v11 = vadd.f32 %v531_v45, %v498_v48 }
  0xe8   : > { %v548_v60 = vadd.f32 %v538_v49, %v497_v51  ;;  %v550_v18 = vadd.f32 %v539_v47, %v499_v10  ;;  %v767_v47 = vrot.slane %v2337_v39, 2  ;;  %v602_v49 = vmul.f32 %v2240_v43, %v2115_v15 }
  0xeb   : > { %477 = vrot.lane.b32.xlu2 %v470_v53, %s2011_s30  ;;  %893 = vrot.lane.b32.xlu1 %v891_v50, %s2008_s14  ;;  %v604_v50 = vmul.f32 %v2240_v43, %v2138_v23  ;;  %v601_v53 = vmul.f32 %v2240_v43, %v2118_v16 }
  0xed   : > { %v572_v56 = vpop.permute.xlu2 %571 }
  0xee   : > { %v2305_v57 = vadd.f32 %v572_v56, %v547_v54  ;;  %v603_v54 = vmul.f32 %v2240_v43, %v2122_v17 }
  0xf3   : > { %966 = vrot.lane.b32.xlu1 %v964_v5, %s2008_s14  ;;  %904 = vrot.lane.b32.xlu2 %v902_v58, %s2008_s14 }
  0xf5   : > { %v578_v59 = vpop.permute.xlu2 %577 }
  0xfd   : > { %v674_v61 = vpop.permute.xlu2 %673 }
 0x105   : > { %v726_v0 = vpop.permute.xlu2 %725  ;;  %v570_v1 = vpop.permute.xlu1 %569 }
 0x106   : > { %v581_v2 = vsel %vm481_vm3, %v570_v1, %v572_v56  ;;  %v574_v4 = vpop.permute.xlu0 %573  ;;  %v614_v1 = vrot.slane %v601_v53, 1 }
 0x107   : > { %v590_v6 = vadd.f32 %v581_v2, %v546_v63  ;;  %v617_v63 = vrot.slane %v602_v49, 1  ;;  %v615_v2 = vrot.slane %v603_v54, 1 }
 0x109   : > { %v616_v3 = vsel %vm613_vm0, %v614_v1, %v615_v2  ;;  %v621_v10 = vsel %vm613_vm0, %v615_v2, %v620_v29 }
 0x10a   : > { %v630_v7 = vadd.f32 %v616_v3, %v590_v6 }
 0x10d   : > { %v821_v13 = vpop.permute.xlu2 %820  ;;  %v576_v14 = vpop.permute.xlu1 %575 }
 0x10e   : > { %v582_v19 = vsel %vm481_vm3, %v574_v4, %v576_v14  ;;  %v593_v21 = vadd.f32 %v576_v14, %v549_v11  ;;  %v580_v25 = vpop.permute.xlu0 %579 }
 0x10f   : > { %v592_v27 = vadd.f32 %v582_v19, %v548_v60  ;;  %v583_v30 = vsel %vm481_vm3, %v578_v59, %v580_v25  ;;  %v595_v31 = vadd.f32 %v580_v25, %v551_v12 }
 0x110   : > { %v594_v32 = vadd.f32 %v583_v30, %v550_v18 }
 0x111   : > { %v635_v20 = vadd.f32 %v622_v28, %v595_v31  ;;  %v632_v14 = vadd.f32 %v621_v10, %v592_v27  ;;  %v749_v27 = vmul.f32 %v2276_v9, %v2118_v16 }
 0x112   : > { %v634_v36 = vadd.f32 %v620_v29, %v594_v32  ;;  %v752_v29 = vmul.f32 %v2276_v9, %v2138_v23 }
 0x113   : > { %v689_v33 = vadd.f32 %v674_v61, %v635_v20 }
 0x115   : > { %v2332_v35 = vpop.permute.xlu2 %872  ;;  %v672_v8 = vpop.permute.xlu1 %671 }
 0x116   : > { %v677_v37 = vsel %vm536_vm2, %v672_v8, %v674_v61  ;;  %v728_v38 = vpop.permute.xlu0 %727 }
 0x117   : > { %v688_v40 = vadd.f32 %v677_v37, %v634_v36  ;;  %v731_v42 = vsel %vm481_vm3, %v726_v0, %v728_v38  ;;  %v743_v44 = vadd.f32 %v728_v38, %v689_v33  ;;  %v618_v0 = vrot.slane %v604_v50, 1 }
 0x118   : > { %v751_v33 = vmul.f32 %v2276_v9, %v2122_v17 }
 0x119   : > { %v742_v45 = vadd.f32 %v731_v42, %v688_v40  ;;  %v782_v46 = vadd.f32 %v769_v41, %v743_v44  ;;  %v619_v4 = vsel %vm613_vm0, %v617_v63, %v618_v0  ;;  %v623_v43 = vsel %vm613_vm0, %v618_v0, %v622_v28 }
 0x11a   : > { %v631_v48 = vadd.f32 %v619_v4, %v2305_v57  ;;  %v633_v11 = vadd.f32 %v623_v43, %v593_v21  ;;  %v750_v21 = vmul.f32 %v2276_v9, %v2115_v15  ;;  %v765_v40 = vrot.slane %v752_v29, 2 }
 0x11b   : > { %v2346_v52 = vadd.f32 %v821_v13, %v782_v46  ;;  %v781_v58 = vadd.f32 %v767_v47, %v742_v45  ;;  %v761_v42 = vrot.slane %v749_v27, 2  ;;  %v762_v44 = vrot.slane %v751_v33, 2 }
 0x11c   : > { %v764_v39 = vrot.slane %v750_v21, 2  ;;  %v770_v53 = vsel %vm462_vm1, %v765_v40, %v769_v41 }
 0x11d   : > { %v668_v56 = vpop.permute.xlu2 %667  ;;  %v819_v5 = vpop.permute.xlu1 %818  ;;  %v763_v49 = vsel %vm462_vm1, %v761_v42, %v762_v44 }
 0x11e   : > { %v824_v59 = vsel %vm536_vm2, %v819_v5, %v821_v13  ;;  %v664_v61 = vpop.permute.xlu0 %663  ;;  %v766_v46 = vsel %vm462_vm1, %v764_v39, %v765_v40 }
 0x11f   : > { %v2353_v62 = vadd.f32 %v824_v59, %v781_v58 }
 0x125   : > { %v666_v51 = vpop.permute.xlu1 %665  ;;  %v720_v12 = vpop.permute.xlu2 %719 }
 0x126   : > { %v675_v60 = vsel %vm536_vm2, %v664_v61, %v666_v51  ;;  %v685_v13 = vadd.f32 %v666_v51, %v631_v48  ;;  %v670_v18 = vpop.permute.xlu0 %669 }
 0x127   : > { %v684_v19 = vadd.f32 %v675_v60, %v630_v7  ;;  %v676_v25 = vsel %vm536_vm2, %v668_v56, %v670_v18  ;;  %v687_v26 = vadd.f32 %v670_v18, %v633_v11  ;;  %v768_v56 = vsel %vm462_vm1, %v762_v44, %v767_v47 }
 0x128   : > { %v739_v30 = vadd.f32 %v720_v12, %v685_v13  ;;  %v686_v31 = vadd.f32 %v676_v25, %v632_v14 }
 0x12a   : > { %v778_v50 = vadd.f32 %v766_v46, %v739_v30 }
 0x12d   : > { %v718_v57 = vpop.permute.xlu1 %717  ;;  %v815_v20 = vpop.permute.xlu2 %814 }
 0x12e   : > { %v729_v28 = vsel %vm481_vm3, %v718_v57, %v720_v12  ;;  %v722_v32 = vpop.permute.xlu0 %721 }
 0x12f   : > { %v738_v6 = vadd.f32 %v729_v28, %v684_v19 }
 0x131   : > { %v777_v9 = vadd.f32 %v763_v49, %v738_v6 }
 0x135   : > { %v724_v34 = vpop.permute.xlu1 %723  ;;  %v867_v45 = vpop.permute.xlu2 %866 }
 0x136   : > { %v730_v8 = vsel %vm481_vm3, %v722_v32, %v724_v34  ;;  %v741_v36 = vadd.f32 %v724_v34, %v687_v26  ;;  %v811_v37 = vpop.permute.xlu0 %810 }
 0x137   : > { %v740_v38 = vadd.f32 %v730_v8, %v686_v31 }
 0x138   : > { %v780_v5 = vadd.f32 %v770_v53, %v741_v36 }
 0x139   : > { %v779_v61 = vadd.f32 %v768_v56, %v740_v38 }
 0x13d   : > { %v813_v54 = vpop.permute.xlu1 %812  ;;  %v476_v48 = vpop.permute.xlu2 %475 }
 0x13e   : > { %v822_v58 = vsel %vm536_vm2, %v811_v37, %v813_v54  ;;  %v832_v59 = vadd.f32 %v813_v54, %v778_v50  ;;  %v817_v63 = vpop.permute.xlu0 %816 }
 0x13f   : > { %v831_v0 = vadd.f32 %v822_v58, %v777_v9  ;;  %v823_v1 = vsel %vm536_vm2, %v815_v20, %v817_v63  ;;  %v834_v2 = vadd.f32 %v817_v63, %v780_v5 }
 0x140   : > { %v886_v4 = vadd.f32 %v867_v45, %v832_v59  ;;  %v833_v3 = vadd.f32 %v823_v1, %v779_v61 }
 0x145   : > { %v865_v43 = vpop.permute.xlu1 %864  ;;  %v478_v10 = vpop.permute.xlu2 %477 }
 0x146   : > { %v876_v41 = vsel %vm481_vm3, %v865_v43, %v867_v45  ;;  %v869_v51 = vpop.permute.xlu0 %868  ;;  %v991_v43 = vperm.slane %v2303_v55, 2 }
 0x147   : > { %v885_v7 = vadd.f32 %v876_v41, %v831_v0 }
 0x14d   : > { %v871_v47 = vpop.permute.xlu1 %870  ;;  %v905_v28 = vpop.permute.xlu2 %904 }
 0x14e   : > { %v877_v11 = vsel %vm481_vm3, %v869_v51, %v871_v47  ;;  %v888_v12 = vadd.f32 %v871_v47, %v834_v2  ;;  %v480_v60 = vpop.permute.xlu0 %479 }
 0x14f   : > { %v887_v13 = vadd.f32 %v877_v11, %v833_v3  ;;  %v483_v14 = vsel %vm481_vm3, %v478_v10, %v480_v60 }
 0x150   : > { %487 = vst [vmem:[%s2383_s13 + $0x18] sm:$0xff] %v483_v14 }
 0x155   : > { %v474_v18 = vpop.permute.xlu1 %473 }
 0x156   : > { %v875_v19 = vpop.permute.xlu0 %874  ;;  %v482_v25 = vsel %vm481_vm3, %v474_v18, %v476_v48 }
 0x157   : > { %v878_v26 = vsel %vm481_vm3, %v2332_v35, %v875_v19  ;;  %486 = vst [vmem:[%s2383_s13] sm:$0xff] %v482_v25  ;;  %v890_v31 = vadd.f32 %v875_v19, %v2346_v52 }
 0x158   : > { %v889_v30 = vadd.f32 %v878_v26, %v2353_v62 }
 0x15d   : > { %v894_v57 = vpop.permute.xlu1 %893 }
 0x15e   : > { %v899_v32 = vmul.f32 %v894_v57, %v888_v12  ;;  %v901_v6 = vmul.f32 %v894_v57, %v890_v31  ;;  %v896_v20 = vmul.f32 %v894_v57, %v885_v7  ;;  %v898_v21 = vmul.f32 %v894_v57, %v887_v13 }
 0x15f   : > { %v897_v29 = vmul.f32 %v894_v57, %v886_v4  ;;  %v900_v27 = vmul.f32 %v894_v57, %v889_v30  ;;  %v1018_v13 = vperm.slane %v2303_v55, 3  ;;  %v959_v57 = vperm.slane %v2303_v55, 0 }
 0x160   : > { %v910_v33 = vadd.f32 %v905_v28, %v899_v32  ;;  %v912_v34 = vadd.f32 %v905_v28, %v901_v6  ;;  %v907_v8 = vadd.f32 %v905_v28, %v896_v20  ;;  %v909_v36 = vadd.f32 %v905_v28, %v898_v21 }
 0x161   : > { %v908_v37 = vadd.f32 %v905_v28, %v897_v29  ;;  %v911_v38 = vadd.f32 %v905_v28, %v900_v27  ;;  %v1046_v32 = vperm.slane %v2303_v55, 4  ;;  %v960_v20 = vmul.f32 %v959_v57, %v2118_v16 }
 0x162   : > { %v916_v35 = vmax.f32 %v910_v33, 0.0  ;;  %v918_v39 = vmax.f32 %v912_v34, 0.0  ;;  %v913_v40 = vmax.f32 %v907_v8, 0.0  ;;  %v915_v62 = vmax.f32 %v909_v36, 0.0 }
 0x163   : > { %v914_v42 = vmax.f32 %v908_v37, 0.0  ;;  %v917_v52 = vmax.f32 %v911_v38, 0.0 }
 0x164   : > { %v922_v44 = vmin.f32 %v916_v35, 6.0  ;;  %v924_v45 = vmin.f32 %v918_v39, 6.0  ;;  %v919_v46 = vmin.f32 %v913_v40, 6.0  ;;  %v921_v49 = vmin.f32 %v915_v62, 6.0 }
 0x165   : > { %v967_v50 = vpop.permute.xlu1 %966  ;;  %v920_v53 = vmin.f32 %v914_v42, 6.0  ;;  %v923_v54 = vmin.f32 %v917_v52, 6.0  ;;  %v1090_v52 = vperm.slane %v2303_v55, 6 }
 0x166   : > { %v971_v9 = vmul.f32 %v967_v50, %v2122_v17  ;;  %v970_v56 = vmul.f32 %v967_v50, %v2115_v15  ;;  %v969_v5 = vmul.f32 %v967_v50, %v2118_v16  ;;  %v935_v58 = vrot.slane %v922_v44, 1 }
 0x167   : > { %v939_v59 = vrot.slane %v924_v45, 1  ;;  %v931_v61 = vrot.slane %v919_v46, 1  ;;  %v932_v63 = vrot.slane %v921_v49, 1  ;;  %v934_v0 = vrot.slane %v920_v53, 1 }
 0x168   : > { %981 = vrot.lane.b32.xlu1 %v971_v9, %s2010_s29  ;;  %979 = vrot.lane.b32.xlu0 %v970_v56, %s2010_s29  ;;  %v937_v1 = vrot.slane %v923_v54, 1  ;;  %v972_v41 = vmul.f32 %v967_v50, %v2138_v23 }
 0x169   : > { %977 = vrot.lane.b32.xlu2 %v969_v5, %s2010_s29  ;;  %v2401_v2 = vsel %vm613_vm0, %v935_v58, %v939_v59  ;;  %v2404_v4 = vsel %vm613_vm0, %v931_v61, %v932_v63  ;;  %v2407_v3 = vsel %vm613_vm0, %v934_v0, %v935_v58 }
 0x16a   : > { %v2410_v48 = vsel %vm613_vm0, %v932_v63, %v937_v1 }
 0x170   : > { %993 = vrot.lane.b32.xlu0 %v991_v43, %s2007_s11 }
 0x171   : > { %983 = vrot.lane.b32.xlu2 %v972_v41, %s2010_s29 }
 0x1c3   : > { %v978_v51 = vpop.permute.xlu2 %977 }
 0x1cb   : > { %v2427_v18 = vpop.permute.xlu2 %983 }
 0x1da   : > { %v980_v7 = vpop.permute.xlu0 %979  ;;  %v2436_v28 = vpop.permute.xlu1 %981 }
 0x1db   : > { %v985_v47 = vsel %vm536_vm2, %v978_v51, %v980_v7 }
 0x1dc   : > { %v989_v21 = vadd.f32 %v985_v47, %v960_v20 }
 0x1e2   : > { %v994_v10 = vpop.permute.xlu0 %993 }
 0x1e3   : > { %v998_v11 = vmul.f32 %v994_v10, %v2122_v17  ;;  %v996_v12 = vmul.f32 %v994_v10, %v2118_v16  ;;  %v997_v60 = vmul.f32 %v994_v10, %v2115_v15  ;;  %v999_v14 = vmul.f32 %v994_v10, %v2138_v23 }
 0x1e5   : > { %1008 = vrot.lane.b32.xlu0 %v998_v11, %s2011_s30  ;;  %1004 = vrot.lane.b32.xlu1 %v996_v12, %s2011_s30  ;;  %v1131_v11 = vperm.slane %v2303_v55, 7 }
 0x1e6   : > { %1006 = vrot.lane.b32.xlu2 %v997_v60, %s2011_s30 }
 0x1ed   : > { %1010 = vrot.lane.b32.xlu1 %v999_v14, %s2011_s30 }
 0x1ee   : > { %1020 = vrot.lane.b32.xlu2 %v1018_v13, %s2009_s15 }
 0x240   : > { %v1007_v19 = vpop.permute.xlu2 %1006 }
 0x248   : > { %v1021_v25 = vpop.permute.xlu2 %1020 }
 0x249   : > { %v1025_v26 = vmul.f32 %v1021_v25, %v2122_v17  ;;  %v1024_v30 = vmul.f32 %v1021_v25, %v2115_v15  ;;  %v1023_v31 = vmul.f32 %v1021_v25, %v2118_v16  ;;  %v1026_v6 = vmul.f32 %v1021_v25, %v2138_v23 }
 0x24b   : > { %1035 = vrot.lane.b32.xlu2 %v1025_v26, %s2012_s16  ;;  %1033 = vrot.lane.b32.xlu1 %v1024_v30, %s2012_s16 }
 0x24c   : > { %1031 = vrot.lane.b32.xlu0 %v1023_v31, %s2012_s16 }
 0x253   : > { %1048 = vrot.lane.b32.xlu1 %v1046_v32, %s2013_s17 }
 0x254   : > { %1037 = vrot.lane.b32.xlu0 %v1026_v6, %s2012_s16  ;;  %v2490_v6 = vperm.slane %v2303_v55, 5 }
 0x257   : > { %v1005_v29 = vpop.permute.xlu1 %1004  ;;  %v2448_v8 = vpop.permute.xlu0 %1008 }
 0x258   : > { %v1012_v27 = vsel %vm481_vm3, %v1005_v29, %v1007_v19 }
 0x259   : > { %v1016_v33 = vadd.f32 %v1012_v27, %v989_v21 }
 0x25f   : > { %v2446_v34 = vpop.permute.xlu1 %1010 }
 0x2a5   : > { %v2461_v45 = vpop.permute.xlu2 %1035 }
 0x2bd   : > { %v1034_v36 = vpop.permute.xlu1 %1033 }
 0x2be   : > { %v1032_v37 = vpop.permute.xlu0 %1031 }
 0x2bf   : > { %v1040_v38 = vsel %vm1039_vm4, %v1032_v37, %v1034_v36 }
 0x2c0   : > { %v1044_v35 = vadd.f32 %v1040_v38, %v1016_v33 }
 0x2c5   : > { %v1049_v39 = vpop.permute.xlu1 %1048 }
 0x2c6   : > { %v1053_v40 = vmul.f32 %v1049_v39, %v2122_v17  ;;  %v1051_v62 = vmul.f32 %v1049_v39, %v2118_v16  ;;  %v1052_v42 = vmul.f32 %v1049_v39, %v2115_v15  ;;  %v1054_v44 = vmul.f32 %v1049_v39, %v2138_v23  ;;  %v2463_v46 = vpop.permute.xlu0 %1037 }
 0x2c7   : > { %v2502_v39 = vmul.f32 %v2490_v6, %v2122_v17 }
 0x2c8   : > { %1063 = vrot.lane.b32.xlu1 %v1053_v40, %s2014_s18  ;;  %1059 = vrot.lane.b32.xlu2 %v1051_v62, %s2014_s18  ;;  %v2508_v40 = vld [vmem:[%s2956_s4 + $0x8] sm:$0xff] }
 0x2c9   : > { %1061 = vrot.lane.b32.xlu0 %v1052_v42, %s2014_s18 }
 0x2d0   : > { %1065 = vrot.lane.b32.xlu2 %v1054_v44, %s2014_s18  ;;  %v1172_v44 = vperm.slane %v2508_v40, 0 }
 0x2d1   : > { %1092 = vrot.lane.b32.xlu0 %v1090_v52, %s2008_s14  ;;  %v1082_v52 = vrot.slane %v2502_v39, 1 }
 0x322   : > { %v1060_v49 = vpop.permute.xlu2 %1059 }
 0x32a   : > { %v2482_v13 = vpop.permute.xlu2 %1065 }
 0x33b   : > { %v1062_v50 = vpop.permute.xlu0 %1061 }
 0x33c   : > { %v1068_v53 = vsel %vm1067_vm5, %v1060_v49, %v1062_v50 }
 0x33d   : > { %v1072_v54 = vadd.f32 %v1068_v53, %v1044_v35  ;;  %v1075_v35 = vmul.f32 %v2490_v6, %v2118_v16 }
 0x33f   : > { %v1081_v42 = vrot.slane %v1075_v35, 1  ;;  %v2561_v35 = vld [vmem:[%s2129_s28] sm:$0xf] }
 0x341   : > { %v1083_v49 = vsel %vm613_vm0, %v1081_v42, %v1082_v52 }
 0x342   : > { %v1088_v50 = vadd.f32 %v1083_v49, %v1072_v54 }
 0x343   : > { %v1093_v9 = vpop.permute.xlu0 %1092 }
 0x344   : > { %v1097_v56 = vmul.f32 %v1093_v9, %v2122_v17  ;;  %v1099_v5 = vmul.f32 %v1093_v9, %v2135_v22  ;;  %v1096_v58 = vmul.f32 %v1093_v9, %v2115_v15  ;;  %v1098_v59 = vmul.f32 %v1093_v9, %v2138_v23 }
 0x345   : > { %v1095_v61 = vmul.f32 %v1093_v9, %v2118_v16  ;;  %v1100_v10 = vmul.f32 %v1093_v9, %v2142_v24 }
 0x346   : > { %v1108_v63 = vrot.slane %v1097_v56, 1  ;;  %v1113_v0 = vrot.slane %v1099_v5, 1  ;;  %v1110_v1 = vrot.slane %v1096_v58, 1  ;;  %v1111_v43 = vrot.slane %v1098_v59, 1 }
 0x347   : > { %v1107_v41 = vrot.slane %v1095_v61, 1  ;;  %v1115_v12 = vrot.slane %v1100_v10, 1 }
 0x348   : > { %v1114_v51 = vsel %vm613_vm0, %v1108_v63, %v1113_v0  ;;  %v1112_v7 = vsel %vm613_vm0, %v1110_v1, %v1111_v43 }
 0x349   : > { %1121 = vrot.lane.b32.xlu0 %v1114_v51, %s2010_s29  ;;  %1119 = vrot.lane.b32.xlu2 %v1112_v7, %s2010_s29  ;;  %v1109_v47 = vsel %vm613_vm0, %v1107_v41, %v1108_v63  ;;  %v1116_v60 = vsel %vm613_vm0, %v1111_v43, %v1115_v12  ;;  %v2529_v41 = vld [vmem:[%s2112_s21 + $0x8] sm:$0xff] }
 0x34a   : > { %1117 = vrot.lane.b32.xlu1 %v1109_v47, %s2010_s29  ;;  %v2534_v47 = vld [vmem:[%s2112_s21] sm:$0xff] }
 0x351   : > { %1133 = vrot.lane.b32.xlu2 %v1131_v11, %s2007_s11 }
 0x352   : > { %1123 = vrot.lane.b32.xlu1 %v1116_v60, %s2010_s29 }
 0x3a3   : > { %v1120_v14 = vpop.permute.xlu2 %1119 }
 0x3ab   : > { %v1134_v19 = vpop.permute.xlu2 %1133 }
 0x3ac   : > { %v1138_v25 = vmul.f32 %v1134_v19, %v2122_v17  ;;  %v1140_v26 = vmul.f32 %v1134_v19, %v2135_v22  ;;  %v1136_v30 = vmul.f32 %v1134_v19, %v2118_v16  ;;  %v1137_v31 = vmul.f32 %v1134_v19, %v2115_v15 }
 0x3ad   : > { %v1139_v32 = vmul.f32 %v1134_v19, %v2138_v23  ;;  %v1141_v38 = vmul.f32 %v1134_v19, %v2142_v24  ;;  %v2510_v24 = vpop.permute.xlu1 %1063 }
 0x3ae   : > { %v1149_v20 = vrot.slane %v1138_v25, 1  ;;  %v1154_v21 = vrot.slane %v1140_v26, 1  ;;  %v1148_v29 = vrot.slane %v1136_v30, 1  ;;  %v1151_v27 = vrot.slane %v1137_v31, 1  ;;  %v2542_v26 = vld [vmem:[%s2129_s28 + $0x8] sm:$0xf] }
 0x3af   : > { %v1152_v33 = vrot.slane %v1139_v32, 1  ;;  %v1156_v62 = vrot.slane %v1141_v38, 1  ;;  %v1213_v31 = vperm.slane %v2508_v40, 1  ;;  %v2557_v38 = vld [vmem:[%s2112_s21 + $0x10] sm:$0xff] }
 0x3b0   : > { %v1155_v36 = vsel %vm613_vm0, %v1149_v20, %v1154_v21  ;;  %v1150_v37 = vsel %vm613_vm0, %v1148_v29, %v1149_v20 }
 0x3b1   : > { %1162 = vrot.lane.b32.xlu2 %v1155_v36, %s2011_s30  ;;  %1158 = vrot.lane.b32.xlu0 %v1150_v37, %s2011_s30  ;;  %v1153_v15 = vsel %vm613_vm0, %v1151_v27, %v1152_v33  ;;  %v1157_v16 = vsel %vm613_vm0, %v1152_v33, %v1156_v62 }
 0x3b2   : > { %1160 = vrot.lane.b32.xlu1 %v1153_v15, %s2011_s30 }
 0x3b9   : > { %1164 = vrot.lane.b32.xlu0 %v1157_v16, %s2011_s30  ;;  %v2567_v16 = vld [vmem:[%s2112_s21 + $0x18] sm:$0xff] }
 0x3ba   : > { %1174 = vrot.lane.b32.xlu1 %v1172_v44, %s2009_s15 }
 0x3bb   : > { %v2521_v5 = vpop.permute.xlu0 %1121 }
 0x3bc   : > { %v1118_v53 = vpop.permute.xlu1 %1117 }
 0x3bd   : > { %v1125_v9 = vsel %vm536_vm2, %v1118_v53, %v1120_v14 }
 0x3be   : > { %v1129_v56 = vadd.f32 %v1125_v9, %v1088_v50 }
 0x3c4   : > { %v2523_v58 = vpop.permute.xlu1 %1123 }
 0x40b   : > { %v2551_v20 = vpop.permute.xlu2 %1162 }
 0x423   : > { %v1159_v59 = vpop.permute.xlu0 %1158 }
 0x424   : > { %v1161_v61 = vpop.permute.xlu1 %1160 }
 0x425   : > { %v1166_v63 = vsel %vm481_vm3, %v1159_v59, %v1161_v61 }
 0x426   : > { %v1170_v0 = vadd.f32 %v1166_v63, %v1129_v56 }
 0x42b   : > { %v2553_v21 = vpop.permute.xlu0 %1164 }
 0x42c   : > { %v1175_v1 = vpop.permute.xlu1 %1174 }
 0x42d   : > { %v1179_v43 = vmul.f32 %v1175_v1, %v2122_v17  ;;  %v1181_v54 = vmul.f32 %v1175_v1, %v2135_v22  ;;  %v1178_v51 = vmul.f32 %v2529_v41, %v1175_v1  ;;  %v1180_v7 = vmul.f32 %v1175_v1, %v2138_v23 }
 0x42e   : > { %v1177_v10 = vmul.f32 %v2534_v47, %v1175_v1  ;;  %v1182_v23 = vmul.f32 %v2542_v26, %v1175_v1 }
 0x42f   : > { %v1190_v11 = vrot.slane %v1179_v43, 1  ;;  %v1195_v12 = vrot.slane %v1181_v54, 1  ;;  %v1192_v60 = vrot.slane %v1178_v51, 1  ;;  %v1193_v14 = vrot.slane %v1180_v7, 1 }
 0x430   : > { %v1189_v19 = vrot.slane %v1177_v10, 1  ;;  %v1197_v30 = vrot.slane %v1182_v23, 1  ;;  %v1270_v54 = vperm.slane %v2508_v40, 3 }
 0x431   : > { %v1196_v17 = vsel %vm613_vm0, %v1190_v11, %v1195_v12  ;;  %v1194_v22 = vsel %vm613_vm0, %v1192_v60, %v1193_v14 }
 0x432   : > { %1203 = vrot.lane.b32.xlu1 %v1196_v17, %s2012_s16  ;;  %v1191_v25 = vsel %vm613_vm0, %v1189_v19, %v1190_v11  ;;  %1201 = vrot.lane.b32.xlu0 %v1194_v22, %s2012_s16  ;;  %v1198_v32 = vsel %vm613_vm0, %v1193_v14, %v1197_v30 }
 0x433   : > { %1199 = vrot.lane.b32.xlu2 %v1191_v25, %s2012_s16 }
 0x43a   : > { %1215 = vrot.lane.b32.xlu0 %v1213_v31, %s2013_s17 }
 0x43b   : > { %1205 = vrot.lane.b32.xlu2 %v1198_v32, %s2012_s16 }
 0x48d   : > { %v1200_v29 = vpop.permute.xlu2 %1199 }
 0x495   : > { %v2589_v7 = vpop.permute.xlu2 %1205 }
 0x4a4   : > { %v1202_v27 = vpop.permute.xlu0 %1201  ;;  %v2602_v32 = vpop.permute.xlu1 %1203 }
 0x4a5   : > { %v1207_v33 = vsel %vm1039_vm4, %v1200_v29, %v1202_v27  ;;  %v1311_v29 = vperm.slane %v2508_v40, 4 }
 0x4a6   : > { %v1211_v36 = vadd.f32 %v1207_v33, %v1170_v0 }
 0x4ac   : > { %v1216_v37 = vpop.permute.xlu0 %1215 }
 0x4ad   : > { %v1220_v15 = vmul.f32 %v2557_v38, %v1216_v37  ;;  %v1222_v62 = vmul.f32 %v2561_v35, %v1216_v37  ;;  %v1218_v42 = vmul.f32 %v2534_v47, %v1216_v37  ;;  %v1219_v44 = vmul.f32 %v2529_v41, %v1216_v37 }
 0x4ae   : > { %v1221_v49 = vmul.f32 %v2567_v16, %v1216_v37  ;;  %v1223_v0 = vmul.f32 %v2542_v26, %v1216_v37 }
 0x4af   : > { %v1231_v50 = vrot.slane %v1220_v15, 1  ;;  %v1236_v53 = vrot.slane %v1222_v62, 1  ;;  %v1230_v9 = vrot.slane %v1218_v42, 1  ;;  %v1233_v56 = vrot.slane %v1219_v44, 1 }
 0x4b0   : > { %v1234_v59 = vrot.slane %v1221_v49, 1  ;;  %v1238_v43 = vrot.slane %v1223_v0, 1 }
 0x4b1   : > { %v1237_v61 = vsel %vm613_vm0, %v1231_v50, %v1236_v53  ;;  %v1232_v63 = vsel %vm613_vm0, %v1230_v9, %v1231_v50 }
 0x4b2   : > { %1244 = vrot.lane.b32.xlu0 %v1237_v61, %s2014_s18  ;;  %1240 = vrot.lane.b32.xlu1 %v1232_v63, %s2014_s18  ;;  %v1235_v1 = vsel %vm613_vm0, %v1233_v56, %v1234_v59  ;;  %v1239_v51 = vsel %vm613_vm0, %v1234_v59, %v1238_v43  ;;  %v2618_v63 = vperm.slane %v2508_v40, 2 }
 0x4b3   : > { %1242 = vrot.lane.b32.xlu2 %v1235_v1, %s2014_s18 }
 0x4b4   : > { %v2624_v0 = vmul.f32 %v2557_v38, %v2618_v63 }
 0x4b6   : > { %v1262_v43 = vrot.slane %v2624_v0, 2 }
 0x4ba   : > { %947 = vrot.lane.b32.xlu0 %v2401_v2, %s2010_s29  ;;  %1246 = vrot.lane.b32.xlu1 %v1239_v51, %s2014_s18 }
 0x4bb   : > { %1272 = vrot.lane.b32.xlu2 %v1270_v54, %s2008_s14 }
 0x4c2   : > { %941 = vrot.lane.b32.xlu0 %v2404_v4, %s2010_s29  ;;  %943 = vrot.lane.b32.xlu1 %v2407_v3, %s2010_s29 }
 0x4c3   : > { %945 = vrot.lane.b32.xlu2 %v2410_v48, %s2010_s29 }
 0x50d   : > { %v1243_v10 = vpop.permute.xlu2 %1242 }
 0x515   : > { %v1273_v11 = vpop.permute.xlu2 %1272 }
 0x516   : > { %v1277_v12 = vmul.f32 %v2557_v38, %v1273_v11  ;;  %v1279_v2 = vmul.f32 %v2561_v35, %v1273_v11  ;;  %v1276_v60 = vmul.f32 %v2529_v41, %v1273_v11  ;;  %v1278_v14 = vmul.f32 %v2567_v16, %v1273_v11 }
 0x517   : > { %v1275_v4 = vmul.f32 %v2534_v47, %v1273_v11  ;;  %v1280_v31 = vmul.f32 %v2542_v26, %v1273_v11 }
 0x518   : > { %v1288_v19 = vrot.slane %v1277_v12, 2  ;;  %v1293_v17 = vrot.slane %v1279_v2, 2  ;;  %v1290_v3 = vrot.slane %v1276_v60, 2  ;;  %v1291_v22 = vrot.slane %v1278_v14, 2 }
 0x519   : > { %v1287_v25 = vrot.slane %v1275_v4, 2  ;;  %v1295_v27 = vrot.slane %v1280_v31, 2 }
 0x51a   : > { %v1294_v48 = vsel %vm462_vm1, %v1288_v19, %v1293_v17  ;;  %v1292_v23 = vsel %vm462_vm1, %v1290_v3, %v1291_v22 }
 0x51b   : > { %1301 = vrot.lane.b32.xlu2 %v1294_v48, %s2010_s29  ;;  %1299 = vrot.lane.b32.xlu1 %v1292_v23, %s2010_s29  ;;  %v1289_v30 = vsel %vm462_vm1, %v1287_v25, %v1288_v19  ;;  %v1296_v33 = vsel %vm462_vm1, %v1291_v22, %v1295_v27 }
 0x51c   : > { %1297 = vrot.lane.b32.xlu0 %v1289_v30, %s2010_s29 }
 0x51d   : > { %v946_v44 = vpop.permute.xlu2 %945 }
 0x523   : > { %1313 = vrot.lane.b32.xlu1 %v1311_v29, %s2007_s11 }
 0x524   : > { %1303 = vrot.lane.b32.xlu0 %v1296_v33, %s2010_s29  ;;  %v1245_v37 = vpop.permute.xlu0 %1244  ;;  %v1241_v15 = vpop.permute.xlu1 %1240 }
 0x525   : > { %v1248_v62 = vsel %vm1067_vm5, %v1241_v15, %v1243_v10  ;;  %v1352_v15 = vperm.slane %v2508_v40, 5 }
 0x526   : > { %v1252_v42 = vadd.f32 %v1248_v62, %v1211_v36  ;;  %v1255_v36 = vmul.f32 %v2534_v47, %v2618_v63 }
 0x528   : > { %v1261_v1 = vrot.slane %v1255_v36, 2 }
 0x52a   : > { %v1263_v54 = vsel %vm462_vm1, %v1261_v1, %v1262_v43 }
 0x52b   : > { %v1268_v10 = vadd.f32 %v1263_v54, %v1252_v42 }
 0x52c   : > { %v948_v49 = vpop.permute.xlu0 %947  ;;  %v1247_v50 = vpop.permute.xlu1 %1246 }
 0x52d   : > { %v950_v53 = vsel %vm536_vm2, %v946_v44, %v948_v49  ;;  %v2612_v9 = vsel %vm1067_vm5, %v1245_v37, %v1247_v50 }
 0x52e   : > { %954 = vst [vmem:[%s2383_s13 + $0x20] sm:$0xff] %v950_v53 }
 0x534   : > { %v942_v56 = vpop.permute.xlu0 %941  ;;  %v944_v59 = vpop.permute.xlu1 %943 }
 0x535   : > { %v949_v61 = vsel %vm536_vm2, %v942_v56, %v944_v59 }
 0x536   : > { %953 = vst [vmem:[%s2383_s13 + $0x8] sm:$0xff] %v949_v61 }
 0x575   : > { %v2647_v42 = vpop.permute.xlu2 %1301 }
 0x58d   : > { %v1300_v51 = vpop.permute.xlu1 %1299 }
 0x58e   : > { %v1298_v11 = vpop.permute.xlu0 %1297 }
 0x58f   : > { %v1305_v12 = vsel %vm536_vm2, %v1298_v11, %v1300_v51 }
 0x590   : > { %v1309_v2 = vadd.f32 %v1305_v12, %v1268_v10 }
 0x595   : > { %v1314_v60 = vpop.permute.xlu1 %1313 }
 0x596   : > { %v1318_v14 = vmul.f32 %v2557_v38, %v1314_v60  ;;  %v1320_v4 = vmul.f32 %v2561_v35, %v1314_v60  ;;  %v1316_v19 = vmul.f32 %v2534_v47, %v1314_v60  ;;  %v1317_v17 = vmul.f32 %v2529_v41, %v1314_v60  ;;  %v2649_v44 = vpop.permute.xlu0 %1303 }
 0x597   : > { %v1319_v3 = vmul.f32 %v2567_v16, %v1314_v60  ;;  %v1321_v27 = vmul.f32 %v2542_v26, %v1314_v60 }
 0x598   : > { %v1329_v22 = vrot.slane %v1318_v14, 2  ;;  %v1334_v25 = vrot.slane %v1320_v4, 2  ;;  %v1328_v48 = vrot.slane %v1316_v19, 2  ;;  %v1331_v23 = vrot.slane %v1317_v17, 2 }
 0x599   : > { %v1332_v30 = vrot.slane %v1319_v3, 2  ;;  %v1336_v37 = vrot.slane %v1321_v27, 2  ;;  %v1393_v3 = vperm.slane %v2508_v40, 6 }
 0x59a   : > { %v1335_v31 = vsel %vm462_vm1, %v1329_v22, %v1334_v25  ;;  %v1330_v29 = vsel %vm462_vm1, %v1328_v48, %v1329_v22 }
 0x59b   : > { %1342 = vrot.lane.b32.xlu1 %v1335_v31, %s2011_s30  ;;  %1338 = vrot.lane.b32.xlu2 %v1330_v29, %s2011_s30  ;;  %v1333_v33 = vsel %vm462_vm1, %v1331_v23, %v1332_v30  ;;  %v1337_v62 = vsel %vm462_vm1, %v1332_v30, %v1336_v37 }
 0x59c   : > { %1340 = vrot.lane.b32.xlu0 %v1333_v33, %s2011_s30 }
 0x5a3   : > { %1344 = vrot.lane.b32.xlu2 %v1337_v62, %s2011_s30 }
 0x5a4   : > { %1354 = vrot.lane.b32.xlu0 %v1352_v15, %s2009_s15 }
 0x5f5   : > { %v1339_v49 = vpop.permute.xlu2 %1338 }
 0x5fd   : > { %v2668_v48 = vpop.permute.xlu2 %1344 }
 0x60e   : > { %v1341_v50 = vpop.permute.xlu0 %1340 }
 0x60f   : > { %v1346_v53 = vsel %vm481_vm3, %v1339_v49, %v1341_v50 }
 0x610   : > { %v1350_v56 = vadd.f32 %v1346_v53, %v1309_v2 }
 0x616   : > { %v1355_v59 = vpop.permute.xlu0 %1354 }
 0x617   : > { %v1359_v61 = vmul.f32 %v2557_v38, %v1355_v59  ;;  %v1361_v36 = vmul.f32 %v2561_v35, %v1355_v59  ;;  %v1358_v1 = vmul.f32 %v2529_v41, %v1355_v59  ;;  %v1360_v54 = vmul.f32 %v2567_v16, %v1355_v59 }
 0x618   : > { %v1357_v51 = vmul.f32 %v2534_v47, %v1355_v59  ;;  %v1362_v17 = vmul.f32 %v2542_v26, %v1355_v59 }
 0x619   : > { %v1370_v10 = vrot.slane %v1359_v61, 2  ;;  %v1375_v11 = vrot.slane %v1361_v36, 2  ;;  %v1372_v12 = vrot.slane %v1358_v1, 2  ;;  %v1373_v60 = vrot.slane %v1360_v54, 2  ;;  %v2685_v54 = vld [vmem:[%s2956_s4 + $0x10] sm:$0xff] }
 0x61a   : > { %v1369_v14 = vrot.slane %v1357_v51, 2  ;;  %v1377_v22 = vrot.slane %v1362_v17, 2  ;;  %v2687_v51 = vpop.permute.xlu1 %1342 }
 0x61b   : > { %v1376_v4 = vsel %vm462_vm1, %v1370_v10, %v1375_v11  ;;  %v1374_v2 = vsel %vm462_vm1, %v1372_v12, %v1373_v60 }
 0x61c   : > { %1383 = vrot.lane.b32.xlu0 %v1376_v4, %s2012_s16  ;;  %1381 = vrot.lane.b32.xlu2 %v1374_v2, %s2012_s16  ;;  %v1371_v19 = vsel %vm462_vm1, %v1369_v14, %v1370_v10  ;;  %v1378_v25 = vsel %vm462_vm1, %v1373_v60, %v1377_v22  ;;  %v1451_v10 = vperm.slane %v2685_v54, 0 }
 0x61d   : > { %1379 = vrot.lane.b32.xlu1 %v1371_v19, %s2012_s16 }
 0x624   : > { %1395 = vrot.lane.b32.xlu2 %v1393_v3, %s2013_s17 }
 0x625   : > { %1385 = vrot.lane.b32.xlu1 %v1378_v25, %s2012_s16 }
 0x676   : > { %v1382_v23 = vpop.permute.xlu2 %1381 }
 0x67e   : > { %v1396_v30 = vpop.permute.xlu2 %1395 }
 0x67f   : > { %v1400_v31 = vmul.f32 %v2557_v38, %v1396_v30  ;;  %v1402_v29 = vmul.f32 %v2561_v35, %v1396_v30  ;;  %v1399_v27 = vmul.f32 %v2529_v41, %v1396_v30  ;;  %v1401_v33 = vmul.f32 %v2567_v16, %v1396_v30 }
 0x680   : > { %v1398_v37 = vmul.f32 %v2534_v47, %v1396_v30  ;;  %v1403_v1 = vmul.f32 %v2542_v26, %v1396_v30 }
 0x681   : > { %v1411_v15 = vrot.slane %v1400_v31, 2  ;;  %v1416_v62 = vrot.slane %v1402_v29, 2  ;;  %v1413_v49 = vrot.slane %v1399_v27, 2  ;;  %v1414_v50 = vrot.slane %v1401_v33, 2 }
 0x682   : > { %v1410_v53 = vrot.slane %v1398_v37, 2  ;;  %v1418_v11 = vrot.slane %v1403_v1, 2  ;;  %v1533_v1 = vperm.slane %v2685_v54, 2 }
 0x683   : > { %v1417_v59 = vsel %vm462_vm1, %v1411_v15, %v1416_v62  ;;  %v1415_v61 = vsel %vm462_vm1, %v1413_v49, %v1414_v50 }
 0x684   : > { %1424 = vrot.lane.b32.xlu2 %v1417_v59, %s2014_s18  ;;  %1422 = vrot.lane.b32.xlu1 %v1415_v61, %s2014_s18  ;;  %v1412_v36 = vsel %vm462_vm1, %v1410_v53, %v1411_v15  ;;  %v1419_v12 = vsel %vm462_vm1, %v1414_v50, %v1418_v11  ;;  %v1492_v61 = vperm.slane %v2685_v54, 1  ;;  %v1632_v11 = vperm.slane %v2685_v54, 5 }
 0x685   : > { %1420 = vrot.lane.b32.xlu0 %v1412_v36, %s2014_s18  ;;  %v1574_v36 = vperm.slane %v2685_v54, 3 }
 0x68c   : > { %1453 = vrot.lane.b32.xlu1 %v1451_v10, %s2008_s14  ;;  %v1714_v10 = vperm.slane %v2685_v54, 7 }
 0x68d   : > { %1426 = vrot.lane.b32.xlu0 %v1419_v12, %s2014_s18  ;;  %v1673_v12 = vperm.slane %v2685_v54, 6 }
 0x68e   : > { %v2696_v19 = vpop.permute.xlu0 %1383 }
 0x68f   : > { %v1380_v60 = vpop.permute.xlu1 %1379 }
 0x690   : > { %v1387_v14 = vsel %vm1039_vm4, %v1380_v60, %v1382_v23 }
 0x691   : > { %v1391_v4 = vadd.f32 %v1387_v14, %v1350_v56 }
 0x697   : > { %v2694_v2 = vpop.permute.xlu1 %1385 }
 0x6f6   : > { %v1423_v17 = vpop.permute.xlu1 %1422 }
 0x6f7   : > { %v1421_v3 = vpop.permute.xlu0 %1420 }
 0x6f8   : > { %v1428_v22 = vsel %vm1067_vm5, %v1421_v3, %v1423_v17  ;;  %v2731_v3 = vpop.permute.xlu2 %1424 }
 0x6f9   : > { %v2699_v25 = vadd.f32 %v1428_v22, %v1391_v4  ;;  %v1974_v4 = vld [vmem:[%s2956_s4 + $0x18] ss:$0 sm:$0xff] }
 0x6fe   : > { %v1454_v30 = vpop.permute.xlu1 %1453 }
 0x6ff   : > { %v1458_v31 = vmul.f32 %v2557_v38, %v1454_v30  ;;  %v1460_v29 = vmul.f32 %v2561_v35, %v1454_v30  ;;  %v1456_v27 = vmul.f32 %v2534_v47, %v1454_v30  ;;  %v1457_v23 = vmul.f32 %v2529_v41, %v1454_v30 }
 0x700   : > { %v1459_v56 = vmul.f32 %v2567_v16, %v1454_v30  ;;  %v1461_v60 = vmul.f32 %v2542_v26, %v1454_v30  ;;  %v961_v30 = vmul.f32 %v2557_v38, %v959_v57  ;;  %v1077_v57 = vmul.f32 %v2561_v35, %v2490_v6 }
 0x701   : > { %v1469_v33 = vrot.slane %v1458_v31, 3  ;;  %v1474_v37 = vrot.slane %v1460_v29, 3  ;;  %v1468_v15 = vrot.slane %v1456_v27, 3  ;;  %v1471_v62 = vrot.slane %v1457_v23, 3 }
 0x702   : > { %v1472_v49 = vrot.slane %v1459_v56, 3  ;;  %v1476_v14 = vrot.slane %v1461_v60, 3  ;;  %v986_v31 = vsel %vm536_vm2, %v2436_v28, %v2427_v18  ;;  %v1013_v27 = vsel %vm481_vm3, %v2448_v8, %v2446_v34 }
 0x703   : > { %v1475_v50 = vsel %vm1441_vm6, %v1469_v33, %v1474_v37  ;;  %v1470_v53 = vsel %vm1441_vm6, %v1468_v15, %v1469_v33  ;;  %v990_v29 = vadd.f32 %v986_v31, %v961_v30  ;;  %v2751_v28 = vperm.slane %v2508_v40, 7 }
 0x704   : > { %1482 = vrot.lane.b32.xlu1 %v1475_v50, %s2010_s29  ;;  %1478 = vrot.lane.b32.xlu2 %v1470_v53, %s2010_s29  ;;  %v1473_v59 = vsel %vm1441_vm6, %v1471_v62, %v1472_v49  ;;  %v1477_v17 = vsel %vm1441_vm6, %v1472_v49, %v1476_v14  ;;  %v1041_v50 = vsel %vm1039_vm4, %v2461_v45, %v2463_v46  ;;  %v1084_v40 = vrot.slane %v1077_v57, 1 }
 0x705   : > { %1480 = vrot.lane.b32.xlu0 %v1473_v59, %s2010_s29  ;;  %v1017_v59 = vadd.f32 %v1013_v27, %v990_v29  ;;  %v1069_v6 = vsel %vm1067_vm5, %v2510_v24, %v2482_v13  ;;  %v1435_v45 = vmul.f32 %v2534_v47, %v2751_v28  ;;  %v2768_v46 = vmul.f32 %v2557_v38, %v2751_v28 }
 0x706   : > { %v1167_v31 = vsel %vm481_vm3, %v2551_v20, %v2553_v21  ;;  %v1257_v29 = vmul.f32 %v2561_v35, %v2618_v63  ;;  %v1208_v27 = vsel %vm1039_vm4, %v2602_v32, %v2589_v7  ;;  %v1306_v32 = vsel %vm536_vm2, %v2647_v42, %v2649_v44 }
 0x707   : > { %v1442_v60 = vrot.slane %v1435_v45, 3  ;;  %v1443_v14 = vrot.slane %v2768_v46, 3 }
 0x708   : > { %v1264_v21 = vrot.slane %v1257_v29, 2 }
 0x709   : > { %v1444_v39 = vsel %vm1441_vm6, %v1442_v60, %v1443_v14 }
 0x70c   : > { %1494 = vrot.lane.b32.xlu2 %v1492_v61, %s2007_s11  ;;  %1576 = vrot.lane.b32.xlu1 %v1574_v36, %s2013_s17 }
 0x70d   : > { %1535 = vrot.lane.b32.xlu0 %v1533_v1, %s2009_s15 }
 0x714   : > { %1716 = vrot.lane.b32.xlu1 %v1714_v10, %s2009_s15  ;;  %1634 = vrot.lane.b32.xlu2 %v1632_v11, %s2008_s14  ;;  %v1045_v10 = vadd.f32 %v1041_v50, %v1017_v59  ;;  %v1427_v11 = vpop.permute.xlu0 %1426 }
 0x715   : > { %1675 = vrot.lane.b32.xlu0 %v1673_v12, %s2007_s11  ;;  %v1085_v12 = vsel %vm613_vm0, %v1082_v52, %v1084_v40  ;;  %v1437_v40 = vmul.f32 %v2561_v35, %v2751_v28 }
 0x716   : > { %v1073_v24 = vadd.f32 %v1069_v6, %v1045_v10  ;;  %v1347_v6 = vsel %vm481_vm3, %v2687_v51, %v2668_v48 }
 0x718   : > { %v1089_v30 = vadd.f32 %v1085_v12, %v1073_v24 }
 0x71c   : > { %1757 = vrot.lane.b32.xlu2 %v1974_v4, %s2013_s17 }
 0x71d   : > { %1484 = vrot.lane.b32.xlu0 %v1477_v17, %s2010_s29  ;;  %v1126_v17 = vsel %vm536_vm2, %v2521_v5, %v2523_v58 }
 0x71e   : > { %v1130_v52 = vadd.f32 %v1126_v17, %v1089_v30 }
 0x720   : > { %v1171_v58 = vadd.f32 %v1167_v31, %v1130_v52 }
 0x75e   : > { %v1479_v22 = vpop.permute.xlu2 %1478 }
 0x766   : > { %v1495_v23 = vpop.permute.xlu2 %1494 }
 0x767   : > { %v1497_v56 = vmul.f32 %v2534_v47, %v1495_v23  ;;  %v1499_v33 = vmul.f32 %v2557_v38, %v1495_v23  ;;  %v1498_v37 = vmul.f32 %v2529_v41, %v1495_v23  ;;  %v1500_v55 = vmul.f32 %v2567_v16, %v1495_v23 }
 0x768   : > { %v1502_v15 = vmul.f32 %v2542_v26, %v1495_v23  ;;  %v1501_v18 = vmul.f32 %v2561_v35, %v1495_v23  ;;  %v1449_v23 = vadd.f32 %v1444_v39, %v2699_v25 }
 0x769   : > { %v1509_v34 = vrot.slane %v1497_v56, 3  ;;  %v1510_v8 = vrot.slane %v1499_v33, 3  ;;  %v1512_v62 = vrot.slane %v1498_v37, 3  ;;  %v1513_v49 = vrot.slane %v1500_v55, 3 }
 0x76a   : > { %v1515_v53 = vrot.slane %v1501_v18, 3  ;;  %v1517_v13 = vrot.slane %v1502_v15, 3  ;;  %v1212_v56 = vadd.f32 %v1208_v27, %v1171_v58  ;;  %v1265_v55 = vsel %vm462_vm1, %v1262_v43, %v1264_v21 }
 0x76b   : > { %v1511_v61 = vsel %vm1441_vm6, %v1509_v34, %v1510_v8  ;;  %v1514_v36 = vsel %vm1441_vm6, %v1512_v62, %v1513_v49 }
 0x76c   : > { %1519 = vrot.lane.b32.xlu1 %v1511_v61, %s2011_s30  ;;  %1521 = vrot.lane.b32.xlu2 %v1514_v36, %s2011_s30  ;;  %v1516_v1 = vsel %vm1441_vm6, %v1510_v8, %v1515_v53  ;;  %v1518_v4 = vsel %vm1441_vm6, %v1513_v49, %v1517_v13  ;;  %v1253_v37 = vadd.f32 %v2612_v9, %v1212_v56 }
 0x76d   : > { %1523 = vrot.lane.b32.xlu0 %v1516_v1, %s2011_s30  ;;  %v1388_v1 = vsel %vm1039_vm4, %v2696_v19, %v2694_v2  ;;  %v1429_v2 = vsel %vm1067_vm5, %v2731_v3, %v1427_v11  ;;  %v1445_v19 = vrot.slane %v1437_v40, 3 }
 0x76e   : > { %v1269_v7 = vadd.f32 %v1265_v55, %v1253_v37  ;;  %v1635_v60 = vpop.permute.xlu2 %1634 }
 0x76f   : > { %v1637_v29 = vmul.f32 %v2534_v47, %v1635_v60  ;;  %v1639_v39 = vmul.f32 %v2557_v38, %v1635_v60  ;;  %v1446_v27 = vsel %vm1441_vm6, %v1443_v14, %v1445_v19 }
 0x770   : > { %v1310_v53 = vadd.f32 %v1306_v32, %v1269_v7  ;;  %v1642_v32 = vmul.f32 %v2542_v26, %v1635_v60 }
 0x772   : > { %v1351_v12 = vadd.f32 %v1347_v6, %v1310_v53 }
 0x774   : > { %1525 = vrot.lane.b32.xlu1 %v1518_v4, %s2011_s30  ;;  %v1392_v4 = vadd.f32 %v1388_v1, %v1351_v12 }
 0x776   : > { %v2791_v5 = vpop.permute.xlu1 %1482  ;;  %v1433_v52 = vadd.f32 %v1429_v2, %v1392_v4 }
 0x777   : > { %v1481_v20 = vpop.permute.xlu0 %1480 }
 0x778   : > { %v1486_v63 = vsel %vm536_vm2, %v1479_v22, %v1481_v20  ;;  %v1650_v20 = vrot.slane %v1639_v39, 4  ;;  %v1450_v21 = vadd.f32 %v1446_v27, %v1433_v52 }
 0x779   : > { %v2795_v33 = vadd.f32 %v1486_v63, %v1449_v23  ;;  %v1649_v23 = vrot.slane %v1637_v29, 4 }
 0x77b   : > { %v1651_v55 = vsel %vm1622_vm7, %v1649_v23, %v1650_v20 }
 0x77e   : > { %v1577_v57 = vpop.permute.xlu1 %1576 }
 0x77f   : > { %v1536_v25 = vpop.permute.xlu0 %1535  ;;  %v1580_v15 = vmul.f32 %v2529_v41, %v1577_v57  ;;  %v1582_v43 = vmul.f32 %v2567_v16, %v1577_v57  ;;  %v1579_v8 = vmul.f32 %v2534_v47, %v1577_v57  ;;  %v1581_v62 = vmul.f32 %v2557_v38, %v1577_v57 }
 0x780   : > { %v1540_v22 = vmul.f32 %v2557_v38, %v1536_v25  ;;  %v1542_v18 = vmul.f32 %v2561_v35, %v1536_v25  ;;  %v1539_v34 = vmul.f32 %v2529_v41, %v1536_v25  ;;  %v1541_v9 = vmul.f32 %v2567_v16, %v1536_v25 }
 0x781   : > { %v1538_v0 = vmul.f32 %v2534_v47, %v1536_v25  ;;  %v1543_v10 = vmul.f32 %v2542_v26, %v1536_v25  ;;  %v1594_v48 = vrot.slane %v1580_v15, 3  ;;  %v1595_v51 = vrot.slane %v1582_v43, 3 }
 0x782   : > { %v1551_v42 = vrot.slane %v1540_v22, 3  ;;  %v1556_v44 = vrot.slane %v1542_v18, 3  ;;  %v1553_v49 = vrot.slane %v1539_v34, 3  ;;  %v1554_v50 = vrot.slane %v1541_v9, 3 }
 0x783   : > { %v1550_v59 = vrot.slane %v1538_v0, 3  ;;  %v1591_v13 = vrot.slane %v1579_v8, 3  ;;  %v1592_v24 = vrot.slane %v1581_v62, 3  ;;  %v1558_v17 = vrot.slane %v1543_v10, 3 }
 0x784   : > { %v1557_v61 = vsel %vm1441_vm6, %v1551_v42, %v1556_v44  ;;  %v1555_v36 = vsel %vm1441_vm6, %v1553_v49, %v1554_v50  ;;  %v1596_v30 = vsel %vm1441_vm6, %v1594_v48, %v1595_v51  ;;  %v1584_v58 = vmul.f32 %v2542_v26, %v1577_v57 }
 0x785   : > { %1564 = vrot.lane.b32.xlu1 %v1557_v61, %s2012_s16  ;;  %1562 = vrot.lane.b32.xlu0 %v1555_v36, %s2012_s16  ;;  %v1552_v45 = vsel %vm1441_vm6, %v1550_v59, %v1551_v42  ;;  %v1593_v31 = vsel %vm1441_vm6, %v1591_v13, %v1592_v24  ;;  %v1559_v3 = vsel %vm1441_vm6, %v1554_v50, %v1558_v17  ;;  %v1657_v18 = vrot.slane %v1642_v32, 4  ;;  %v1758_v17 = vpop.permute.xlu2 %1757 }
 0x786   : > { %1560 = vrot.lane.b32.xlu2 %v1552_v45, %s2012_s16  ;;  %v1583_v11 = vmul.f32 %v2561_v35, %v1577_v57  ;;  %v1599_v14 = vrot.slane %v1584_v58, 3  ;;  %v1640_v57 = vmul.f32 %v2567_v16, %v1635_v60  ;;  %v1641_v25 = vmul.f32 %v2561_v35, %v1635_v60  ;;  %v1717_v36 = vpop.permute.xlu1 %1716 }
 0x787   : > { %v2828_v28 = vpop.permute.xlu0 %1675  ;;  %v1638_v15 = vmul.f32 %v2529_v41, %v1635_v60  ;;  %v1720_v1 = vmul.f32 %v2529_v41, %v1717_v36  ;;  %v1722_v45 = vmul.f32 %v2567_v16, %v1717_v36  ;;  %v1721_v13 = vmul.f32 %v2557_v38, %v1717_v36 }
 0x788   : > { %v1597_v37 = vrot.slane %v1583_v11, 3  ;;  %v1600_v7 = vsel %vm1441_vm6, %v1595_v51, %v1599_v14  ;;  %v1653_v22 = vrot.slane %v1640_v57, 4  ;;  %v1655_v34 = vrot.slane %v1641_v25, 4 }
 0x789   : > { %v1652_v9 = vrot.slane %v1638_v15, 4  ;;  %v1680_v0 = vmul.f32 %v2557_v38, %v2828_v28  ;;  %v1682_v43 = vmul.f32 %v2561_v35, %v2828_v28  ;;  %v1679_v8 = vmul.f32 %v2529_v41, %v2828_v28 }
 0x78a   : > { %v1681_v62 = vmul.f32 %v2567_v16, %v2828_v28  ;;  %v1678_v42 = vmul.f32 %v2534_v47, %v2828_v28  ;;  %v1658_v44 = vsel %vm1622_vm7, %v1653_v22, %v1657_v18  ;;  %v1656_v49 = vsel %vm1622_vm7, %v1650_v20, %v1655_v34 }
 0x78b   : > { %v1654_v50 = vsel %vm1622_vm7, %v1652_v9, %v1653_v22  ;;  %v1691_v53 = vrot.slane %v1680_v0, 4  ;;  %v1696_v59 = vrot.slane %v1682_v43, 4  ;;  %v1693_v6 = vrot.slane %v1679_v8, 4 }
 0x78c   : > { %v1694_v61 = vrot.slane %v1681_v62, 4  ;;  %v1690_v40 = vrot.slane %v1678_v42, 4  ;;  %v1719_v51 = vmul.f32 %v2534_v47, %v1717_v36  ;;  %v1683_v12 = vmul.f32 %v2542_v26, %v2828_v28 }
 0x78d   : > { %1603 = vrot.lane.b32.xlu1 %v1596_v30, %s2014_s18  ;;  %1601 = vrot.lane.b32.xlu0 %v1593_v31, %s2014_s18  ;;  %v1697_v10 = vsel %vm1622_vm7, %v1691_v53, %v1696_v59  ;;  %v1734_v60 = vrot.slane %v1720_v1, 4  ;;  %v1735_v2 = vrot.slane %v1722_v45, 4  ;;  %v1732_v4 = vrot.slane %v1721_v13, 4 }
 0x78e   : > { %1566 = vrot.lane.b32.xlu2 %v1559_v3, %s2012_s16  ;;  %v1695_v48 = vsel %vm1622_vm7, %v1693_v6, %v1694_v61  ;;  %v1731_v19 = vrot.slane %v1719_v51, 4  ;;  %v1698_v30 = vrot.slane %v1683_v12, 4  ;;  %v1760_v39 = vmul.f32 %v2534_v47, %v1758_v17 }
 0x78f   : > { %v1485_v63 = vpop.permute.xlu0 %1484  ;;  %v1736_v31 = vsel %vm1622_vm7, %v1734_v60, %v1735_v2  ;;  %v1762_v52 = vmul.f32 %v2557_v38, %v1758_v17  ;;  %v1724_v27 = vmul.f32 %v2542_v26, %v1717_v36  ;;  %v1723_v58 = vmul.f32 %v2561_v35, %v1717_v36 }
 0x790   : > { %v1487_v46 = vsel %vm536_vm2, %v2791_v5, %v1485_v63  ;;  %v1598_v5 = vsel %vm1441_vm6, %v1592_v24, %v1597_v37  ;;  %v1692_v24 = vsel %vm1622_vm7, %v1690_v40, %v1691_v53  ;;  %v1733_v29 = vsel %vm1622_vm7, %v1731_v19, %v1732_v4 }
 0x791   : > { %v2847_v56 = vadd.f32 %v1487_v46, %v1450_v21  ;;  %v1699_v28 = vsel %vm1622_vm7, %v1694_v61, %v1698_v30  ;;  %v1772_v3 = vrot.slane %v1760_v39, 4  ;;  %v1773_v11 = vrot.slane %v1762_v52, 4 }
 0x792   : > { %v1739_v23 = vrot.slane %v1724_v27, 4  ;;  %v1737_v20 = vrot.slane %v1723_v58, 4  ;;  %v1763_v46 = vmul.f32 %v2567_v16, %v1758_v17  ;;  %v1765_v14 = vmul.f32 %v2542_v26, %v1758_v17 }
 0x793   : > { %v1774_v21 = vsel %vm1622_vm7, %v1772_v3, %v1773_v11  ;;  %v1764_v37 = vmul.f32 %v2561_v35, %v1758_v17  ;;  %v1615_v36 = vperm.slane %v2685_v54, 4 }
 0x794   : > { %v1740_v63 = vsel %vm1622_vm7, %v1735_v2, %v1739_v23  ;;  %v1776_v57 = vrot.slane %v1763_v46, 4  ;;  %v1780_v32 = vrot.slane %v1765_v14, 4 }
 0x795   : > { %1659 = vrot.lane.b32.xlu1 %v1651_v55, %s2010_s29  ;;  %1607 = vrot.lane.b32.xlu0 %v1600_v7, %s2014_s18  ;;  %v1738_v55 = vsel %vm1622_vm7, %v1732_v4, %v1737_v20  ;;  %v1761_v7 = vmul.f32 %v2529_v41, %v1758_v17  ;;  %v1778_v25 = vrot.slane %v1764_v37, 4  ;;  %v1616_v45 = vmul.f32 %v2534_v47, %v1615_v36 }
 0x796   : > { %1605 = vrot.lane.b32.xlu2 %v1598_v5, %s2014_s18  ;;  %v1781_v16 = vsel %vm1622_vm7, %v1776_v57, %v1780_v32  ;;  %v1618_v47 = vmul.f32 %v2561_v35, %v1615_v36  ;;  %v1982_v32 = vld [vmem:[%s2958_s6] sm:$0x7] }
 0x797   : > { %v1775_v5 = vrot.slane %v1761_v7, 4  ;;  %v1779_v26 = vsel %vm1622_vm7, %v1773_v11, %v1778_v25  ;;  %v1623_v60 = vrot.slane %v1616_v45, 4  ;;  %v1799_v25 = vperm.slane %v1982_v32, 2 }
 0x799   : > { %v1777_v15 = vsel %vm1622_vm7, %v1775_v5, %v1776_v57 }
 0x79d   : > { %1665 = vrot.lane.b32.xlu1 %v1658_v44, %s2010_s29  ;;  %1663 = vrot.lane.b32.xlu0 %v1656_v49, %s2010_s29 }
 0x79e   : > { %1661 = vrot.lane.b32.xlu2 %v1654_v50, %s2010_s29 }
 0x7a5   : > { %1704 = vrot.lane.b32.xlu1 %v1697_v10, %s2011_s30  ;;  %1702 = vrot.lane.b32.xlu0 %v1695_v48, %s2011_s30  ;;  %v1617_v10 = vmul.f32 %v2557_v38, %v1615_v36 }
 0x7a6   : > { %1700 = vrot.lane.b32.xlu2 %v1692_v24, %s2011_s30 }
 0x7a7   : > { %v1624_v2 = vrot.slane %v1617_v10, 4 }
 0x7a9   : > { %v1625_v30 = vsel %vm1622_vm7, %v1623_v60, %v1624_v2 }
 0x7ad   : > { %1743 = vrot.lane.b32.xlu1 %v1736_v31, %s2012_s16  ;;  %1741 = vrot.lane.b32.xlu0 %v1733_v29, %s2012_s16 }
 0x7ae   : > { %1706 = vrot.lane.b32.xlu2 %v1699_v28, %s2011_s30  ;;  %v1626_v28 = vrot.slane %v1618_v47, 4 }
 0x7b5   : > { %1782 = vrot.lane.b32.xlu1 %v1774_v21, %s2014_s18  ;;  %1747 = vrot.lane.b32.xlu0 %v1740_v63, %s2012_s16  ;;  %v1627_v21 = vsel %vm1622_vm7, %v1624_v2, %v1626_v28 }
 0x7b6   : > { %1745 = vrot.lane.b32.xlu2 %v1738_v55, %s2012_s16 }
 0x7bd   : > { %1788 = vrot.lane.b32.xlu1 %v1781_v16, %s2014_s18  ;;  %1786 = vrot.lane.b32.xlu0 %v1779_v26, %s2014_s18 }
 0x7be   : > { %1784 = vrot.lane.b32.xlu2 %v1777_v15, %s2014_s18 }
 0x7c6   : > { %v1522_v22 = vpop.permute.xlu2 %1521 }
 0x7de   : > { %v1520_v18 = vpop.permute.xlu1 %1519 }
 0x7df   : > { %v1524_v0 = vpop.permute.xlu0 %1523  ;;  %v1527_v1 = vsel %vm481_vm3, %v1520_v18, %v1522_v22 }
 0x7e0   : > { %v1561_v41 = vpop.permute.xlu2 %1560  ;;  %v1531_v24 = vadd.f32 %v1527_v1, %v2795_v33 }
 0x7e6   : > { %v1526_v9 = vpop.permute.xlu1 %1525 }
 0x7e7   : > { %v1528_v17 = vsel %vm481_vm3, %v1524_v0, %v1526_v9 }
 0x7e8   : > { %v1567_v34 = vpop.permute.xlu2 %1566  ;;  %v1532_v33 = vadd.f32 %v1528_v17, %v2847_v56  ;;  %v1981_v56 = vld [vmem:[%s2957_s5] sm:$0x7] }
 0x7e9   : > { %v1796_v14 = vperm.slane %v1981_v56, 2 }
 0x7f0   : > { %v1606_v43 = vpop.permute.xlu2 %1605 }
 0x7f7   : > { %v1565_v8 = vpop.permute.xlu1 %1564  ;;  %v1563_v62 = vpop.permute.xlu0 %1562 }
 0x7f8   : > { %v1662_v42 = vpop.permute.xlu2 %1661  ;;  %v1568_v13 = vsel %vm1039_vm4, %v1561_v41, %v1563_v62  ;;  %v1569_v29 = vsel %vm1039_vm4, %v1565_v8, %v1567_v34 }
 0x7f9   : > { %v1572_v19 = vadd.f32 %v1568_v13, %v1531_v24  ;;  %v1573_v3 = vadd.f32 %v1569_v29, %v1532_v33 }
 0x7ff   : > { %v1604_v44 = vpop.permute.xlu1 %1603  ;;  %v1602_v49 = vpop.permute.xlu0 %1601 }
 0x800   : > { %v1701_v59 = vpop.permute.xlu2 %1700  ;;  %v1609_v12 = vsel %vm1067_vm5, %v1602_v49, %v1604_v44 }
 0x801   : > { %v1613_v54 = vadd.f32 %v1609_v12, %v1572_v19 }
 0x803   : > { %v1630_v52 = vadd.f32 %v1625_v30, %v1613_v54 }
 0x807   : > { %v1660_v50 = vpop.permute.xlu1 %1659  ;;  %v1608_v53 = vpop.permute.xlu0 %1607 }
 0x808   : > { %v1707_v40 = vpop.permute.xlu2 %1706  ;;  %v1667_v39 = vsel %vm536_vm2, %v1660_v50, %v1662_v42  ;;  %v1610_v27 = vsel %vm1067_vm5, %v1606_v43, %v1608_v53 }
 0x809   : > { %v1671_v11 = vadd.f32 %v1667_v39, %v1630_v52  ;;  %v1614_v20 = vadd.f32 %v1610_v27, %v1573_v3 }
 0x80b   : > { %v1631_v5 = vadd.f32 %v1627_v21, %v1614_v20 }
 0x80f   : > { %v1666_v6 = vpop.permute.xlu1 %1665  ;;  %v1664_v61 = vpop.permute.xlu0 %1663 }
 0x810   : > { %v1746_v4 = vpop.permute.xlu2 %1745  ;;  %v1668_v7 = vsel %vm536_vm2, %v1664_v61, %v1666_v6 }
 0x811   : > { %v1672_v15 = vadd.f32 %v1668_v7, %v1631_v5 }
 0x817   : > { %v1705_v48 = vpop.permute.xlu1 %1704  ;;  %v1703_v51 = vpop.permute.xlu0 %1702 }
 0x818   : > { %v1708_v58 = vsel %vm481_vm3, %v1701_v59, %v1703_v51  ;;  %v1785_v63 = vpop.permute.xlu2 %1784  ;;  %v1709_v26 = vsel %vm481_vm3, %v1705_v48, %v1707_v40 }
 0x819   : > { %v1712_v35 = vadd.f32 %v1708_v58, %v1671_v11  ;;  %v1713_v18 = vadd.f32 %v1709_v26, %v1672_v15 }
 0x81f   : > { %v1744_v38 = vpop.permute.xlu1 %1743  ;;  %v1742_v31 = vpop.permute.xlu0 %1741 }
 0x820   : > { %v1749_v23 = vsel %vm1039_vm4, %v1742_v31, %v1744_v38 }
 0x821   : > { %v1753_v46 = vadd.f32 %v1749_v23, %v1712_v35 }
 0x827   : > { %v1783_v37 = vpop.permute.xlu1 %1782  ;;  %v1748_v55 = vpop.permute.xlu0 %1747 }
 0x828   : > { %v1790_v57 = vsel %vm1067_vm5, %v1783_v37, %v1785_v63  ;;  %v1750_v41 = vsel %vm1039_vm4, %v1746_v4, %v1748_v55 }
 0x829   : > { %v1794_v16 = vadd.f32 %v1790_v57, %v1753_v46  ;;  %v1754_v0 = vadd.f32 %v1750_v41, %v1713_v18 }
 0x82b   : > { %v1797_v22 = vmul.f32 %v1796_v14, %v1794_v16 }
 0x82d   : > { %v1800_v34 = vadd.f32 %v1799_v25, %v1797_v22 }
 0x82f   : > { %v1802_v9 = vmax.f32 %v1800_v34, 0.0  ;;  %v1789_v43 = vpop.permute.xlu1 %1788  ;;  %v1787_v8 = vpop.permute.xlu0 %1786 }
 0x830   : > { %v1791_v62 = vsel %vm1067_vm5, %v1787_v8, %v1789_v43 }
 0x831   : > { %v1804_v42 = vmin.f32 %v1802_v9, 6.0  ;;  %v1795_v44 = vadd.f32 %v1791_v62, %v1754_v0 }
 0x833   : > { %1806 = vst [vmem:[%s2383_s13 + $0x10] sm:$0xff] %v1804_v42  ;;  %v1798_v49 = vmul.f32 %v1796_v14, %v1795_v44 }
 0x835   : > { %v1801_v50 = vadd.f32 %v1799_v25, %v1798_v49 }
 0x837   : > { %v1803_v53 = vmax.f32 %v1801_v50, 0.0 }
 0x839   : > { %v1805_v59 = vmin.f32 %v1803_v53, 6.0 }
 0x83b   : > { %1807 = vst [vmem:[%s2383_s13 + $0x28] sm:$0xff] %v1805_v59 }
 0x83c PF: > { %s17_s26 = sadd.s32 1, %s2005_s26   ;;  %s2960_s24 = smov %s2001_s25 }
 0x83d   : > { %p14_p5 = scmp.ge.s32.totalorder %s17_s26, 4   ;;  %s2961_s25 = smov %s2963_s27 }
 0x83f   :  { %16 = sbr.rel (!%p14_p5) target bundleno = 2 (0x2), region = 81 }

// kernel: msdc_forward.2
= control target key start
LH: loop header
LB: loop body
LE: loop exit
PB: predicated region body
PF: predicated region fallthrough
CT: control target
= control target key end

     0   :  { %s2048_s18 = smov 0   ;;  %s2050_s19 = smov 0   ;;  %s2959_s0 = inlined_call_operand.vmem [shape: f32[2,24,160], index: 0, kind: input, shape index: {}, may-alias: {0,1}]   ;;  %s2960_s1 = inlined_call_operand.vmem [shape: f32[2,24,160], index: 1, kind: input, shape index: {}, may-alias: {0,1}]   ;;  %s2961_s2 = inlined_call_operand.vmem [shape: f32[1,128], index: 2, kind: input, shape index: {}]   ;;  %s2962_s3 = inlined_call_operand.vmem [shape: f32[9,128], index: 3, kind: input, shape index: {}]   ;;  %s2963_s4 = inlined_call_operand.vmem [shape: f32[25,128], index: 4, kind: input, shape index: {}]   ;;  %s2964_s5 = inlined_call_operand.vmem [shape: f32[2,6,128], index: 5, kind: output, shape index: {}]  }
   0x1   :  { %s2052_s20 = smov 0  }
   0x2 LB: > { %s27_s21 = sadd.s32 1, %s2003_s19  ;;  %p1931_p0 = scmp.ge.s32.totalorder %s2007_s20, 1  ;;  %s2007_s20 = sphi %s2052_s20, %s15_s20   ;;  %s2003_s19 = sphi %s2050_s19, %s2966_s19   ;;  %s1999_s18 = sphi %s2048_s18, %s2965_s18  }
   0x3   : > { %p29_p1 = scmp.ge.s32.totalorder %s27_s21, 2  ;;  %p241_p2 = scmp.lt.s32.totalorder %s2007_s20, 3 }
   0x5   : > { %s2968_s21 = smov (%p29_p1, %s27_s21), 0  ;;  %p242_p3 = pnand %p1931_p0, %p241_p2 }
   0x6   : > { %s2009_s26 = smov (!%p242_p3), 16   ;;  %s2010_s27 = smov (!%p242_p3), 24  }
   0x7   : > { %245 = sbr.rel (%p242_p3) target bundleno = 2021 (0x7e5), region = 40  ;;  %p295_p4 = scmp.lt.s32.totalorder (!%p242_p3), %s1999_s18, 1 }
   0x8   : > { %s2011_s28 = smov (!%p242_p3), 8   ;;  %s2012_s11 = smov (!%p242_p3), 120  }
   0x9   : > { %s2013_s15 = smov (!%p242_p3), 112   ;;  %s2016_s29 = smov (!%p242_p3), 32  }
   0xa   : > { %s2017_s30 = smov (!%p242_p3), 96  }
   0xc   : > { %v1975_v0 = vld [vmem:[%s2961_s2] ss:$0 sm:$0xff]  ;;  %s2970_s18 = smov (!%p295_p4, %s1999_s18), 1  ;;  %v1976_v8 = vld [vmem:[%s2962_s3 + $0x8] ss:$0 sm:$0xff]  ;;  %vm363_vm0 = vcmask 1045504  }
   0xd   : > { %v464_v1 = vld [vmem:[%s2962_s3] sm:$0xff]  ;;  %341 = vrot.lane.b32.xlu0 %v1975_v0, %s2009_s26  ;;  %s1939_s6 = smul.u32 48, %s2970_s18  ;;  %vm378_vm1 = vcmask 1047680   ;;  %vm589_vm2 = vcmask 1046528   ;;  %vm512_vm3 = vcmask 982016   ;;  %vm404_vm4 = vcmask 916480  }
   0xe   : > { %v528_v2 = vperm.slane %v464_v1, 2  ;;  %v466_v3 = vperm.slane %v464_v1, 0  ;;  %v483_v4 = vperm.slane %v464_v1, 1  ;;  %v666_v5 = vperm.slane %v464_v1, 5  ;;  %s1934_s22 = sshll.u32 %s2970_s18, 3  ;;  %s2015_s18 = smov 104  }
   0xf   : > { %v572_v6 = vperm.slane %v464_v1, 3  ;;  %v612_v7 = vperm.slane %v464_v1, 4  ;;  %v759_v9 = vperm.slane %v464_v1, 7  ;;  %v720_v10 = vperm.slane %v464_v1, 6  ;;  %s2093_s9 = scalar_lea.vmem %s2959_s0, %s1939_s6  ;;  %s1938_s10 = sadd.s32 32, %s1939_s6 }
  0x10   : > { %530 = vrot.lane.b32.xlu1 %v528_v2, %s2010_s27  ;;  %468 = vrot.lane.b32.xlu2 %v466_v3, %s2011_s28  ;;  %v2096_v12 = vld [vmem:[%s2093_s9] sm:$0xff]  ;;  %v2099_v13 = vld [vmem:[%s2093_s9 + $0x8] sm:$0xff]  ;;  %s2112_s14 = scalar_lea.vmem %s2960_s1, %s1938_s10  ;;  %vm388_vm5 = vcmask 130048   ;;  %vm898_vm6 = vcmask 64512   ;;  %vm888_vm7 = vcmask 1047616   ;;  %s2441_s25 = scalar_lea.vmem %s2964_s5, %s1934_s22  ;;  %vm1057_vm8 = vcmask 850944  }
  0x11   : > { %v2102_v14 = vld [vmem:[%s2093_s9 + $0x10] sm:$0xff]  ;;  %v2124_v21 = vld [vmem:[%s2112_s14] sm:$0xf]  ;;  %v2127_v22 = vld [vmem:[%s2112_s14 + $0x8] sm:$0xf]  ;;  %vm1085_vm9 = vcmask 785408  }
  0x12   : > { %v2134_v25 = vld [vmem:[%s2093_s9 + $0x18] sm:$0xff]  ;;  %vm1459_vm10 = vcmask 1044480   ;;  %vm1640_vm11 = vcmask 1043456  }
  0x15   : > { %485 = vrot.lane.b32.xlu0 %v483_v4, %s2009_s26 }
  0x18   : > { %668 = vrot.lane.b32.xlu1 %v666_v5, %s2010_s27  ;;  %574 = vrot.lane.b32.xlu2 %v572_v6, %s2011_s28 }
  0x1d   : > { %614 = vrot.lane.b32.xlu0 %v612_v7, %s2009_s26 }
  0x20   : > { %815 = vrot.lane.b32.xlu1 %v1976_v8, %s2010_s27  ;;  %722 = vrot.lane.b32.xlu2 %v720_v10, %s2011_s28 }
  0x25   : > { %761 = vrot.lane.b32.xlu0 %v759_v9, %s2009_s26 }
  0x7f   : > { %v2087_v11 = vpop.permute.xlu0 %341 }
  0x80   : > { %v2116_v19 = vmul.f32 %v2087_v11, %v2096_v12  ;;  %v2120_v20 = vmul.f32 %v2087_v11, %v2102_v14  ;;  %v2140_v28 = vmul.f32 %v2087_v11, %v2124_v21 }
  0x82   : > { %v410_v23 = vmul.f32 %v2116_v19, %v2116_v19  ;;  %v412_v24 = vmul.f32 %v2120_v20, %v2120_v20  ;;  %v531_v30 = vpop.permute.xlu1 %530  ;;  %v414_v33 = vmul.f32 %v2140_v28, %v2140_v28 }
  0x83   : > { %v534_v34 = vmul.f32 %v531_v30, %v2099_v13  ;;  %v533_v35 = vmul.f32 %v531_v30, %v2096_v12  ;;  %v535_v36 = vmul.f32 %v531_v30, %v2102_v14  ;;  %v537_v44 = vmul.f32 %v531_v30, %v2124_v21 }
  0x84   : > { %v422_v31 = vrot.slane %v410_v23, 2  ;;  %v423_v32 = vrot.slane %v412_v24, 2  ;;  %v428_v38 = vrot.slane %v414_v33, 2  ;;  %v536_v45 = vmul.f32 %v531_v30, %v2134_v25 }
  0x85   : > { %v538_v47 = vmul.f32 %v531_v30, %v2127_v22  ;;  %v2219_v30 = vpop.permute.xlu2 %468 }
  0x86   : > { %v424_v37 = vsel %vm363_vm0, %v422_v31, %v423_v32  ;;  %v429_v40 = vsel %vm363_vm0, %v423_v32, %v428_v38 }
  0x87   : > { %v486_v15 = vpop.permute.xlu0 %485  ;;  %v436_v42 = vsel %vm378_vm1, %v424_v37, 0.0  ;;  %v437_v43 = vsel %vm378_vm1, %v429_v40, 0.0 }
  0x88   : > { %v490_v16 = vmul.f32 %v486_v15, %v2102_v14  ;;  %v489_v17 = vmul.f32 %v486_v15, %v2099_v13  ;;  %v488_v18 = vmul.f32 %v486_v15, %v2096_v12  ;;  %v493_v26 = vmul.f32 %v486_v15, %v2127_v22 }
  0x89   : > { %v492_v27 = vmul.f32 %v486_v15, %v2124_v21  ;;  %v491_v29 = vmul.f32 %v486_v15, %v2134_v25  ;;  %v2160_v46 = vadd.f32 %v437_v43, %v436_v42  ;;  %v364_v42 = vrot.slane %v2116_v19, 2 }
  0x8a   : > { %504 = vrot.lane.b32.xlu0 %v490_v16, %s2012_s11  ;;  %502 = vrot.lane.b32.xlu2 %v489_v17, %s2012_s11  ;;  %v669_v41 = vpop.permute.xlu1 %668 }
  0x8b   : > { %500 = vrot.lane.b32.xlu1 %v488_v18, %s2012_s11  ;;  %v676_v50 = vmul.f32 %v669_v41, %v2127_v22  ;;  %v675_v56 = vmul.f32 %v669_v41, %v2124_v21  ;;  %v671_v9 = vmul.f32 %v669_v41, %v2096_v12  ;;  %v673_v10 = vmul.f32 %v669_v41, %v2102_v14 }
  0x8c   : > { %v672_v31 = vmul.f32 %v669_v41, %v2099_v13 }
  0x8d   : > { %v691_v53 = vrot.slane %v676_v50, 1  ;;  %v689_v59 = vrot.slane %v675_v56, 1  ;;  %v683_v17 = vrot.slane %v671_v9, 1  ;;  %v684_v18 = vrot.slane %v673_v10, 1 }
  0x8f   : > { %v615_v39 = vpop.permute.xlu0 %614  ;;  %v685_v24 = vsel %vm589_vm2, %v683_v17, %v684_v18 }
  0x90   : > { %v622_v48 = vmul.f32 %v615_v39, %v2127_v22  ;;  %v621_v49 = vmul.f32 %v615_v39, %v2124_v21  ;;  %v618_v62 = vmul.f32 %v615_v39, %v2099_v13  ;;  %v620_v63 = vmul.f32 %v615_v39, %v2134_v25 }
  0x91   : > { %v617_v1 = vmul.f32 %v615_v39, %v2096_v12  ;;  %v619_v2 = vmul.f32 %v615_v39, %v2102_v14  ;;  %v686_v39 = vrot.slane %v672_v31, 1  ;;  %v474_v31 = vmul.f32 %v2219_v30, %v2134_v25 }
  0x92   : > { %510 = vrot.lane.b32.xlu0 %v493_v26, %s2012_s11  ;;  %508 = vrot.lane.b32.xlu2 %v492_v27, %s2012_s11  ;;  %v637_v51 = vrot.slane %v622_v48, 1  ;;  %v635_v52 = vrot.slane %v621_v49, 1  ;;  %v2169_v55 = vpop.permute.xlu1 %815  ;;  %v632_v3 = vrot.slane %v618_v62, 1  ;;  %v633_v4 = vrot.slane %v620_v63, 1  ;;  %v2235_v48 = vpop.permute.xlu2 %574 }
  0x93   : > { %506 = vrot.lane.b32.xlu1 %v491_v29, %s2012_s11  ;;  %v2180_v58 = vmul.f32 %v2169_v55, %v2127_v22  ;;  %v629_v6 = vrot.slane %v617_v1, 1  ;;  %v630_v7 = vrot.slane %v619_v2, 1  ;;  %v2209_v16 = vmul.f32 %v2169_v55, %v2124_v21 }
  0x94   : > { %v634_v8 = vsel %vm589_vm2, %v632_v3, %v633_v4  ;;  %v674_v26 = vmul.f32 %v669_v41, %v2134_v25  ;;  %v638_v27 = vsel %vm589_vm2, %v633_v4, %v637_v51  ;;  %v819_v2 = vmul.f32 %v2169_v55, %v2099_v13 }
  0x95   : > { %v838_v61 = vrot.slane %v2180_v58, 2  ;;  %v631_v15 = vsel %vm589_vm2, %v629_v6, %v630_v7  ;;  %v836_v23 = vrot.slane %v2209_v16, 2  ;;  %v636_v32 = vsel %vm589_vm2, %v630_v7, %v635_v52 }
  0x96   : > { %v687_v29 = vrot.slane %v674_v26, 1  ;;  %v821_v3 = vmul.f32 %v2169_v55, %v2134_v25 }
  0x97   : > { %v762_v54 = vpop.permute.xlu0 %761 }
  0x98   : > { %v2175_v57 = vmul.f32 %v762_v54, %v2124_v21  ;;  %v2191_v0 = vmul.f32 %v762_v54, %v2127_v22  ;;  %v692_v33 = vsel %vm589_vm2, %v687_v29, %v691_v53  ;;  %v764_v37 = vmul.f32 %v762_v54, %v2096_v12 }
  0x99   : > { %v766_v38 = vmul.f32 %v762_v54, %v2102_v14  ;;  %v688_v49 = vsel %vm589_vm2, %v686_v39, %v687_v29  ;;  %v834_v7 = vrot.slane %v821_v3, 2  ;;  %v471_v39 = vmul.f32 %v2219_v30, %v2096_v12 }
  0x9a   : > { %547 = vrot.lane.b32.xlu0 %v534_v34, %s2013_s15  ;;  %545 = vrot.lane.b32.xlu2 %v533_v35, %s2013_s15  ;;  %v782_v60 = vrot.slane %v2175_v57, 2  ;;  %v784_v5 = vrot.slane %v2191_v0, 2  ;;  %v765_v34 = vmul.f32 %v762_v54, %v2099_v13  ;;  %v767_v35 = vmul.f32 %v762_v54, %v2134_v25  ;;  %v2264_v6 = vpop.permute.xlu2 %722 }
  0x9b   : > { %549 = vrot.lane.b32.xlu1 %v535_v36, %s2013_s15  ;;  %v690_v36 = vsel %vm589_vm2, %v684_v18, %v689_v59  ;;  %v776_v43 = vrot.slane %v764_v37, 2 }
  0x9c   : > { %v779_v40 = vrot.slane %v765_v34, 2  ;;  %v780_v41 = vrot.slane %v767_v35, 2 }
  0x9e   : > { %v781_v50 = vsel %vm363_vm0, %v779_v40, %v780_v41  ;;  %v785_v4 = vsel %vm363_vm0, %v780_v41, %v784_v5  ;;  %v578_v41 = vmul.f32 %v2235_v48, %v2099_v13 }
  0xa2   : > { %553 = vrot.lane.b32.xlu0 %v537_v44, %s2013_s15  ;;  %551 = vrot.lane.b32.xlu2 %v536_v45, %s2013_s15  ;;  %v777_v44 = vrot.slane %v766_v38, 2  ;;  %v365_v45 = vrot.slane %v2120_v20, 2  ;;  %v472_v38 = vmul.f32 %v2219_v30, %v2099_v13 }
  0xa3   : > { %555 = vrot.lane.b32.xlu1 %v538_v47, %s2013_s15  ;;  %v370_v47 = vrot.slane %v2140_v28, 2 }
  0xa4   : > { %v778_v19 = vsel %vm363_vm0, %v776_v43, %v777_v44  ;;  %v366_v20 = vsel %vm363_vm0, %v364_v42, %v365_v45  ;;  %v783_v63 = vsel %vm363_vm0, %v777_v44, %v782_v60  ;;  %v473_v42 = vmul.f32 %v2219_v30, %v2102_v14 }
  0xa5   : > { %v371_v28 = vsel %vm363_vm0, %v365_v45, %v370_v47  ;;  %v379_v56 = vsel %vm378_vm1, %v366_v20, 0.0  ;;  %v2300_v43 = vmul.f32 %v2235_v48, %v2134_v25 }
  0xaa   : > { %649 = vrot.lane.b32.xlu0 %v637_v51, %s2012_s11  ;;  %647 = vrot.lane.b32.xlu2 %v635_v52, %s2012_s11  ;;  %v818_v51 = vmul.f32 %v2169_v55, %v2096_v12  ;;  %v820_v52 = vmul.f32 %v2169_v55, %v2102_v14  ;;  %v839_v55 = vsel %vm363_vm0, %v834_v7, %v838_v61 }
  0xab   : > { %703 = vrot.lane.b32.xlu1 %v691_v53, %s2013_s15 }
  0xac   : > { %v830_v53 = vrot.slane %v818_v51, 2  ;;  %v831_v54 = vrot.slane %v820_v52, 2 }
  0xae   : > { %v832_v1 = vsel %vm363_vm0, %v830_v53, %v831_v54  ;;  %v837_v0 = vsel %vm363_vm0, %v831_v54, %v836_v23  ;;  %v594_v54 = vrot.slane %v2300_v43, 1 }
  0xb2   : > { %701 = vrot.lane.b32.xlu0 %v689_v59, %s2013_s15  ;;  %794 = vrot.lane.b32.xlu2 %v782_v60, %s2012_s11  ;;  %v380_v59 = vsel %vm378_vm1, %v371_v28, 0.0  ;;  %v833_v60 = vrot.slane %v819_v2, 2 }
  0xb3   : > { %850 = vrot.lane.b32.xlu1 %v838_v61, %s2013_s15  ;;  %v381_v62 = vadd.f32 %v380_v59, %v379_v56  ;;  %v476_v59 = vmul.f32 %v2219_v30, %v2127_v22 }
  0xb4   : > { %v835_v9 = vsel %vm363_vm0, %v833_v60, %v834_v7 }
  0xb5   : > { %v382_v57 = vrot.slane %v381_v62, 4 }
  0xba   : > { %796 = vrot.lane.b32.xlu0 %v784_v5, %s2012_s11  ;;  %641 = vrot.lane.b32.xlu2 %v634_v8, %s2012_s11  ;;  %v383_v8 = vadd.f32 %v382_v57, %v381_v62  ;;  %v2278_v5 = vld [vmem:[%s2963_s4] sm:$0xff] }
  0xbb   : > { %639 = vrot.lane.b32.xlu1 %v631_v15, %s2012_s11  ;;  %v982_v16 = vperm.slane %v2278_v5, 1 }
  0xbc   : > { %v384_v15 = vrot.slane %v383_v8, 2 }
  0xbe   : > { %v385_v58 = vadd.f32 %v384_v15, %v383_v8  ;;  %v582_v8 = vmul.f32 %v2235_v48, %v2127_v22 }
  0xc0   : > { %v386_v17 = vrot.slane %v385_v58, 1  ;;  %v598_v15 = vrot.slane %v582_v8, 1 }
  0xc2   : > { %848 = vrot.lane.b32.xlu0 %v836_v23, %s2013_s15  ;;  %693 = vrot.lane.b32.xlu2 %v685_v24, %s2013_s15  ;;  %v387_v18 = vadd.f32 %v386_v17, %v385_v58 }
  0xc3   : > { %645 = vrot.lane.b32.xlu1 %v638_v27, %s2012_s11 }
  0xca   : > { %643 = vrot.lane.b32.xlu0 %v636_v32, %s2012_s11  ;;  %699 = vrot.lane.b32.xlu2 %v692_v33, %s2013_s15 }
  0xcb   : > { %697 = vrot.lane.b32.xlu1 %v690_v36, %s2013_s15 }
  0xd2   : > { %695 = vrot.lane.b32.xlu0 %v688_v49, %s2013_s15  ;;  %788 = vrot.lane.b32.xlu2 %v781_v50, %s2012_s11  ;;  %v593_v50 = vrot.slane %v578_v41, 1 }
  0xd3   : > { %786 = vrot.lane.b32.xlu1 %v778_v19, %s2012_s11 }
  0xd4   : > { %v595_v62 = vsel %vm589_vm2, %v593_v50, %v594_v54 }
  0xda   : > { %790 = vrot.lane.b32.xlu0 %v783_v63, %s2012_s11  ;;  %840 = vrot.lane.b32.xlu2 %v832_v1, %s2013_s15  ;;  %v475_v63 = vmul.f32 %v2219_v30, %v2124_v21 }
  0xdb   : > { %792 = vrot.lane.b32.xlu1 %v785_v4, %s2012_s11 }
  0xe2   : > { %842 = vrot.lane.b32.xlu0 %v835_v9, %s2013_s15  ;;  %846 = vrot.lane.b32.xlu2 %v839_v55, %s2013_s15 }
  0xe3   : > { %844 = vrot.lane.b32.xlu1 %v837_v0, %s2013_s15  ;;  %v581_v0 = vmul.f32 %v2235_v48, %v2124_v21 }
  0xe4   : > { %v503_v10 = vpop.permute.xlu2 %502 }
  0xe5   : > { %v523_v44 = vadd.f32 %v503_v10, %v472_v38  ;;  %v596_v30 = vrot.slane %v581_v0, 1 }
  0xea   : > { %984 = vrot.lane.b32.xlu0 %v982_v16, %s2011_s28 }
  0xec   : > { %v509_v61 = vpop.permute.xlu2 %508 }
  0xf2   : > { %400 = vrot.lane.b32.xlu0 %v387_v18, %s2013_s15 }
  0xf4   : > { %v546_v23 = vpop.permute.xlu2 %545 }
  0xfc   : > { %v505_v24 = vpop.permute.xlu0 %504  ;;  %v552_v26 = vpop.permute.xlu2 %551 }
  0xfd   : > { %v501_v27 = vpop.permute.xlu1 %500 }
  0xfe   : > { %v513_v29 = vsel %vm512_vm3, %v501_v27, %v503_v10  ;;  %v577_v27 = vmul.f32 %v2235_v48, %v2096_v12 }
  0xff   : > { %v522_v45 = vadd.f32 %v513_v29, %v471_v39  ;;  %v579_v29 = vmul.f32 %v2235_v48, %v2102_v14 }
 0x101   : > { %v591_v38 = vrot.slane %v579_v29, 1 }
 0x104   : > { %v511_v32 = vpop.permute.xlu0 %510  ;;  %v648_v33 = vpop.permute.xlu2 %647 }
 0x105   : > { %v515_v34 = vsel %vm512_vm3, %v509_v61, %v511_v32  ;;  %v507_v35 = vpop.permute.xlu1 %506  ;;  %v527_v2 = vadd.f32 %v511_v32, %v476_v59 }
 0x106   : > { %v514_v36 = vsel %vm512_vm3, %v505_v24, %v507_v35  ;;  %v525_v37 = vadd.f32 %v507_v35, %v474_v31  ;;  %v526_v57 = vadd.f32 %v515_v34, %v475_v63  ;;  %v2326_v31 = vmul.f32 %v2264_v6, %v2127_v22 }
 0x107   : > { %v524_v51 = vadd.f32 %v514_v36, %v473_v42  ;;  %v2330_v34 = vmul.f32 %v2264_v6, %v2124_v21  ;;  %v599_v63 = vsel %vm589_vm2, %v594_v54, %v598_v15  ;;  %v597_v54 = vsel %vm589_vm2, %v591_v38, %v596_v30 }
 0x108   : > { %v2292_v40 = vadd.f32 %v552_v26, %v525_v37  ;;  %v590_v37 = vrot.slane %v577_v27, 1  ;;  %v745_v41 = vrot.slane %v2326_v31, 2 }
 0x109   : > { %v743_v48 = vrot.slane %v2330_v34, 2  ;;  %v439_v34 = vrot.slane %v2160_v46, 4 }
 0x10a   : > { %v592_v42 = vsel %vm589_vm2, %v590_v37, %v591_v38 }
 0x10c   : > { %v548_v47 = vpop.permute.xlu0 %547  ;;  %v795_v49 = vpop.permute.xlu2 %794 }
 0x10d   : > { %v557_v52 = vsel %vm404_vm4, %v546_v23, %v548_v47  ;;  %v567_v19 = vadd.f32 %v548_v47, %v523_v44  ;;  %v550_v20 = vpop.permute.xlu1 %549 }
 0x10e   : > { %v566_v28 = vadd.f32 %v557_v52, %v522_v45  ;;  %v558_v53 = vsel %vm404_vm4, %v550_v20, %v552_v26 }
 0x10f   : > { %v2305_v56 = vadd.f32 %v558_v53, %v524_v51  ;;  %v607_v1 = vadd.f32 %v595_v62, %v567_v19 }
 0x110   : > { %v606_v52 = vadd.f32 %v592_v42, %v566_v28  ;;  %v349_v28 = vmul.f32 %v2087_v11, %v2127_v22 }
 0x112   : > { %v372_v0 = vrot.slane %v349_v28, 2  ;;  %v415_v29 = vmul.f32 %v349_v28, %v349_v28 }
 0x114   : > { %v554_v3 = vpop.permute.xlu0 %553  ;;  %v642_v4 = vpop.permute.xlu2 %641 }
 0x115   : > { %v2312_v60 = vadd.f32 %v642_v4, %v607_v1  ;;  %v556_v7 = vpop.permute.xlu1 %555 }
 0x116   : > { %v559_v9 = vsel %vm404_vm4, %v554_v3, %v556_v7  ;;  %v571_v55 = vadd.f32 %v556_v7, %v527_v2  ;;  %v609_v2 = vadd.f32 %v599_v63, %v2292_v40  ;;  %v345_v3 = vmul.f32 %v2087_v11, %v2099_v13 }
 0x117   : > { %v570_v10 = vadd.f32 %v559_v9, %v526_v57 }
 0x118   : > { %v611_v16 = vadd.f32 %v598_v15, %v571_v55  ;;  %v367_v55 = vrot.slane %v345_v3, 2 }
 0x119   : > { %v610_v61 = vadd.f32 %v596_v30, %v570_v10 }
 0x11c   : > { %v650_v58 = vpop.permute.xlu0 %649  ;;  %v2333_v39 = vpop.permute.xlu2 %693 }
 0x11d   : > { %v653_v17 = vsel %vm512_vm3, %v648_v33, %v650_v58  ;;  %v665_v18 = vadd.f32 %v650_v58, %v611_v16  ;;  %v704_v23 = vpop.permute.xlu1 %703  ;;  %v608_v16 = vadd.f32 %v597_v54, %v2305_v56  ;;  %v411_v58 = vmul.f32 %v345_v3, %v345_v3 }
 0x11e   : > { %v664_v24 = vadd.f32 %v653_v17, %v610_v61  ;;  %v728_v56 = vmul.f32 %v2264_v6, %v2134_v25 }
 0x11f   : > { %v719_v26 = vadd.f32 %v704_v23, %v665_v18 }
 0x120   : > { %v741_v42 = vrot.slane %v728_v56, 2 }
 0x121   : > { %v758_v43 = vadd.f32 %v745_v41, %v719_v26 }
 0x124   : > { %v702_v32 = vpop.permute.xlu0 %701  ;;  %v700_v62 = vpop.permute.xlu2 %699 }
 0x125   : > { %v707_v33 = vsel %vm404_vm4, %v702_v32, %v704_v23  ;;  %v851_v35 = vpop.permute.xlu1 %850  ;;  %v725_v23 = vmul.f32 %v2264_v6, %v2096_v12  ;;  %v727_v32 = vmul.f32 %v2264_v6, %v2102_v14 }
 0x126   : > { %v718_v36 = vadd.f32 %v707_v33, %v664_v24 }
 0x127   : > { %v737_v38 = vrot.slane %v725_v23, 2 }
 0x128   : > { %v757_v45 = vadd.f32 %v743_v48, %v718_v36 }
 0x12c   : > { %v797_v44 = vpop.permute.xlu0 %796  ;;  %v789_v10 = vpop.permute.xlu2 %788 }
 0x12d   : > { %v800_v47 = vsel %vm512_vm3, %v795_v49, %v797_v44  ;;  %v812_v50 = vadd.f32 %v797_v44, %v758_v43  ;;  %v640_v51 = vpop.permute.xlu1 %639  ;;  %v347_v49 = vmul.f32 %v2087_v11, %v2134_v25  ;;  %v726_v11 = vmul.f32 %v2264_v6, %v2099_v13 }
 0x12e   : > { %v811_v19 = vadd.f32 %v800_v47, %v757_v45  ;;  %v651_v20 = vsel %vm512_vm3, %v640_v51, %v642_v4  ;;  %v425_v43 = vrot.slane %v411_v58, 2  ;;  %v430_v45 = vrot.slane %v415_v29, 2 }
 0x12f   : > { %v2344_v53 = vadd.f32 %v851_v35, %v812_v50  ;;  %v660_v59 = vadd.f32 %v651_v20, %v606_v52  ;;  %v368_v40 = vrot.slane %v347_v49, 2  ;;  %v413_v61 = vmul.f32 %v347_v49, %v347_v49 }
 0x130   : > { %v738_v47 = vrot.slane %v727_v32, 2 }
 0x131   : > { %v369_v30 = vsel %vm363_vm0, %v367_v55, %v368_v40  ;;  %v373_v24 = vsel %vm363_vm0, %v368_v40, %v372_v0  ;;  %v426_v44 = vrot.slane %v413_v61, 2 }
 0x132   : > { %v389_v36 = vsel %vm388_vm5, %v369_v30, 0.0  ;;  %v390_v37 = vsel %vm388_vm5, %v373_v24, 0.0 }
 0x133   : > { %v391_v50 = vadd.f32 %v390_v37, %v389_v36  ;;  %v427_v3 = vsel %vm363_vm0, %v425_v43, %v426_v44  ;;  %v431_v49 = vsel %vm363_vm0, %v426_v44, %v430_v45 }
 0x134   : > { %v849_v1 = vpop.permute.xlu0 %848  ;;  %v446_v54 = vsel %vm388_vm5, %v431_v49, 0.0 }
 0x135   : > { %v854_v4 = vsel %vm404_vm4, %v849_v1, %v851_v35  ;;  %v646_v57 = vpop.permute.xlu1 %645  ;;  %v740_v35 = vrot.slane %v726_v11, 2 }
 0x136   : > { %v2355_v7 = vadd.f32 %v854_v4, %v811_v19  ;;  %v663_v8 = vadd.f32 %v646_v57, %v609_v2  ;;  %v841_v19 = vpop.permute.xlu2 %840  ;;  %v392_v4 = vrot.slane %v391_v50, 4 }
 0x137   : > { %v742_v51 = vsel %vm363_vm0, %v740_v35, %v741_v42 }
 0x138   : > { %v717_v9 = vadd.f32 %v700_v62, %v663_v8  ;;  %v746_v8 = vsel %vm363_vm0, %v741_v42, %v745_v41  ;;  %v393_v40 = vadd.f32 %v392_v4, %v391_v50  ;;  %v923_v42 = vmul.f32 %v2355_v7, %v2355_v7 }
 0x13c   : > { %v644_v15 = vpop.permute.xlu0 %643 }
 0x13d   : > { %v652_v17 = vsel %vm512_vm3, %v644_v15, %v646_v57  ;;  %v698_v18 = vpop.permute.xlu1 %697  ;;  %v756_v15 = vadd.f32 %v746_v8, %v717_v9 }
 0x13e   : > { %v662_v26 = vadd.f32 %v652_v17, %v608_v16  ;;  %v706_v27 = vsel %vm404_vm4, %v698_v18, %v700_v62  ;;  %v739_v62 = vsel %vm363_vm0, %v737_v38, %v738_v47  ;;  %v847_v41 = vpop.permute.xlu2 %846  ;;  %v394_v17 = vrot.slane %v393_v40, 2 }
 0x13f   : > { %v924_v18 = vmul.f32 %v2344_v53, %v2344_v53  ;;  %v440_v38 = vadd.f32 %v439_v34, %v2160_v46 }
 0x140   : > { %v716_v33 = vadd.f32 %v706_v27, %v662_v26  ;;  %v395_v26 = vadd.f32 %v394_v17, %v393_v40 }
 0x141   : > { %v939_v27 = vrot.slane %v924_v18, 1  ;;  %v441_v18 = vrot.slane %v440_v38, 2 }
 0x144   : > { %v696_v52 = vpop.permute.xlu0 %695 }
 0x145   : > { %v705_v6 = vsel %vm404_vm4, %v2333_v39, %v696_v52  ;;  %v715_v20 = vadd.f32 %v696_v52, %v2312_v60  ;;  %v787_v63 = vpop.permute.xlu1 %786  ;;  %v445_v60 = vsel %vm388_vm5, %v427_v3, 0.0  ;;  %v880_v52 = vrot.slane %v2355_v7, 1 }
 0x146   : > { %v714_v1 = vadd.f32 %v705_v6, %v660_v59  ;;  %v798_v2 = vsel %vm512_vm3, %v787_v63, %v789_v10  ;;  %v744_v59 = vsel %vm363_vm0, %v738_v47, %v743_v48  ;;  %v447_v16 = vadd.f32 %v446_v54, %v445_v60 }
 0x147   : > { %v754_v28 = vadd.f32 %v742_v51, %v715_v20  ;;  %v755_v11 = vadd.f32 %v744_v59, %v716_v33  ;;  %v882_v48 = vrot.slane %v2344_v53, 1 }
 0x148   : > { %v753_v57 = vadd.f32 %v739_v62, %v714_v1  ;;  %v448_v30 = vrot.slane %v447_v16, 4  ;;  %v937_v1 = vrot.slane %v923_v42, 1 }
 0x149   : > { %v808_v39 = vadd.f32 %v789_v10, %v754_v28 }
 0x14a   : > { %v807_v55 = vadd.f32 %v798_v2, %v753_v57  ;;  %v449_v33 = vadd.f32 %v448_v30, %v447_v16 }
 0x14c   : > { %v791_v0 = vpop.permute.xlu0 %790  ;;  %v450_v17 = vrot.slane %v449_v33, 2 }
 0x14d   : > { %v793_v58 = vpop.permute.xlu1 %792 }
 0x14e   : > { %v799_v31 = vsel %vm512_vm3, %v791_v0, %v793_v58  ;;  %v810_v61 = vadd.f32 %v793_v58, %v756_v15  ;;  %v451_v34 = vadd.f32 %v450_v17, %v449_v33 }
 0x14f   : > { %v809_v10 = vadd.f32 %v799_v31, %v755_v11 }
 0x150   : > { %v864_v23 = vadd.f32 %v847_v41, %v810_v61 }
 0x152   : > { %v878_v24 = vrot.slane %v864_v23, 1  ;;  %v922_v9 = vmul.f32 %v864_v23, %v864_v23  ;;  %v1009_v23 = vperm.slane %v2278_v5, 2 }
 0x154   : > { %v883_v56 = vsel %vm589_vm2, %v878_v24, %v882_v48  ;;  %v935_v29 = vrot.slane %v922_v9, 1  ;;  %v843_v32 = vpop.permute.xlu0 %842  ;;  %v442_v48 = vadd.f32 %v441_v18, %v440_v38  ;;  %v1036_v38 = vperm.slane %v2278_v5, 3 }
 0x155   : > { %v852_v35 = vsel %vm404_vm4, %v841_v19, %v843_v32  ;;  %v862_v36 = vadd.f32 %v843_v32, %v808_v39  ;;  %v845_v37 = vpop.permute.xlu1 %844  ;;  %v900_v49 = vsel %vm898_vm6, %v883_v56, 0.0 }
 0x156   : > { %v940_v53 = vsel %vm589_vm2, %v935_v29, %v939_v27  ;;  %v861_v43 = vadd.f32 %v852_v35, %v807_v55  ;;  %v853_v44 = vsel %vm404_vm4, %v845_v37, %v847_v41  ;;  %v443_v9 = vrot.slane %v442_v48, 1 }
 0x157   : > { %v877_v45 = vrot.slane %v862_v36, 1  ;;  %v920_v47 = vmul.f32 %v862_v36, %v862_v36  ;;  %v863_v50 = vadd.f32 %v853_v44, %v809_v10  ;;  %v955_v51 = vsel %vm898_vm6, %v940_v53, 0.0 }
 0x158   : > { %v874_v19 = vrot.slane %v861_v43, 1  ;;  %v919_v6 = vmul.f32 %v861_v43, %v861_v43  ;;  %v396_v10 = vrot.slane %v395_v26, 1  ;;  %v444_v56 = vadd.f32 %v443_v9, %v442_v48 }
 0x159   : > { %v879_v46 = vsel %vm589_vm2, %v877_v45, %v878_v24  ;;  %v934_v20 = vrot.slane %v920_v47, 1  ;;  %v875_v62 = vrot.slane %v863_v50, 1  ;;  %v921_v63 = vmul.f32 %v863_v50, %v863_v50 }
 0x15a   : > { %v899_v2 = vsel %vm898_vm6, %v879_v46, 0.0  ;;  %v931_v3 = vrot.slane %v919_v6, 1  ;;  %v397_v30 = vadd.f32 %v396_v10, %v395_v26  ;;  %v452_v24 = vrot.slane %v451_v34, 1 }
 0x15b   : > { %v936_v28 = vsel %vm589_vm2, %v934_v20, %v935_v29  ;;  %v876_v4 = vsel %vm589_vm2, %v874_v19, %v875_v62  ;;  %v881_v7 = vsel %vm589_vm2, %v875_v62, %v880_v52  ;;  %v932_v57 = vrot.slane %v921_v63, 1 }
 0x15c   : > { %v954_v8 = vsel %vm898_vm6, %v936_v28, 0.0  ;;  %v889_v39 = vsel %vm888_vm7, %v876_v4, 0.0  ;;  %v890_v60 = vsel %vm888_vm7, %v881_v7, 0.0  ;;  %v985_v54 = vpop.permute.xlu0 %984  ;;  %v2412_v55 = vadd.f32 %v900_v49, %v899_v2 }
 0x15d   : > { %v933_v59 = vsel %vm589_vm2, %v931_v3, %v932_v57  ;;  %v938_v40 = vsel %vm589_vm2, %v932_v57, %v937_v1  ;;  %v988_v0 = vmul.f32 %v985_v54, %v2099_v13  ;;  %v987_v15 = vmul.f32 %v985_v54, %v2096_v12 }
 0x15e   : > { %v945_v16 = vsel %vm888_vm7, %v933_v59, 0.0  ;;  %v946_v11 = vsel %vm888_vm7, %v938_v40, 0.0  ;;  %v989_v58 = vmul.f32 %v985_v54, %v2102_v14  ;;  %v2423_v31 = vadd.f32 %v890_v60, %v889_v39 }
 0x15f   : > { %997 = vrot.lane.b32.xlu2 %v988_v0, %s2012_s11  ;;  %995 = vrot.lane.b32.xlu1 %v987_v15, %s2012_s11  ;;  %v2425_v61 = vadd.f32 %v955_v51, %v954_v8  ;;  %v2427_v41 = vadd.f32 %v946_v11, %v945_v16  ;;  %v453_v27 = vadd.f32 %v452_v24, %v451_v34  ;;  %v2014_v26 = vmov 0.0  }
 0x160   : > { %999 = vrot.lane.b32.xlu0 %v989_v58, %s2012_s11  ;;  %v990_v29 = vmul.f32 %v985_v54, %v2134_v25  ;;  %331 = vst [vmem:[%s2441_s25] sm:$0x3f] %v2014_v26  ;;  %v977_v63 = vperm.slane %v2278_v5, 0  ;;  %v1064_v54 = vperm.slane %v2278_v5, 4 }
 0x162   : > { %v978_v2 = vmul.f32 %v977_v63, %v2096_v12 }
 0x164   : > { %v401_v45 = vpop.permute.xlu0 %400 }
 0x167   : > { %1011 = vrot.lane.b32.xlu2 %v1009_v23, %s2009_s26  ;;  %402 = vrot.lane.b32.xlu1 %v397_v30, %s2013_s15  ;;  %v356_v44 = vld [vmem:[%s2441_s25] sm:$0x1]  ;;  %v409_v52 = vld [vmem:[%s2441_s25 + $0x1] sm:$0x1]  ;;  %v1108_v30 = vperm.slane %v2278_v5, 6 }
 0x16f   : > { %458 = vrot.lane.b32.xlu2 %v453_v27, %s2013_s15  ;;  %456 = vrot.lane.b32.xlu1 %v444_v56, %s2013_s15 }
 0x177   : > { %1001 = vrot.lane.b32.xlu1 %v990_v29, %s2012_s11 }
 0x1b9   : > { %v998_v32 = vpop.permute.xlu2 %997 }
 0x1c1   : > { %v1012_v33 = vpop.permute.xlu2 %1011 }
 0x1c2   : > { %v1016_v35 = vmul.f32 %v1012_v33, %v2102_v14  ;;  %v1015_v36 = vmul.f32 %v1012_v33, %v2099_v13  ;;  %v1014_v37 = vmul.f32 %v1012_v33, %v2096_v12  ;;  %v1017_v42 = vmul.f32 %v1012_v33, %v2134_v25 }
 0x1c4   : > { %1026 = vrot.lane.b32.xlu2 %v1016_v35, %s2013_s15  ;;  %1024 = vrot.lane.b32.xlu1 %v1015_v36, %s2013_s15 }
 0x1c5   : > { %1022 = vrot.lane.b32.xlu0 %v1014_v37, %s2013_s15 }
 0x1c9   : > { %v459_v19 = vpop.permute.xlu2 %458 }
 0x1cc   : > { %1038 = vrot.lane.b32.xlu1 %v1036_v38, %s2010_s27 }
 0x1cd   : > { %1028 = vrot.lane.b32.xlu0 %v1017_v42, %s2013_s15 }
 0x1d1   : > { %v996_v53 = vpop.permute.xlu1 %995 }
 0x1d2   : > { %v1003_v43 = vsel %vm512_vm3, %v996_v53, %v998_v32  ;;  %v2464_v1 = vpop.permute.xlu0 %999 }
 0x1d3   : > { %v1007_v49 = vadd.f32 %v1003_v43, %v978_v2 }
 0x1d9   : > { %v403_v47 = vpop.permute.xlu1 %402 }
 0x1da   : > { %v405_v50 = vsel %vm404_vm4, %v401_v45, %v403_v47  ;;  %v1149_v47 = vperm.slane %v2278_v5, 7 }
 0x1db   : > { %v407_v51 = vadd.f32 %v405_v50, %v356_v44 }
 0x1dd   : > { %408 = vst [vmem:[%s2441_s25] sm:$0x1] %v407_v51 }
 0x1e1   : > { %v457_v6 = vpop.permute.xlu1 %456 }
 0x1e2   : > { %v460_v46 = vsel %vm404_vm4, %v457_v6, %v459_v19  ;;  %v2517_v19 = vperm.slane %v2278_v5, 5 }
 0x1e3   : > { %v462_v20 = vadd.f32 %v460_v46, %v409_v52 }
 0x1e4   : > { %v1093_v6 = vmul.f32 %v2517_v19, %v2096_v12  ;;  %v2523_v46 = vmul.f32 %v2517_v19, %v2102_v14 }
 0x1e5   : > { %463 = vst [vmem:[%s2441_s25 + $0x1] sm:$0x1] %v462_v20 }
 0x1e9   : > { %v2461_v62 = vpop.permute.xlu1 %1001 }
 0x21e   : > { %v2480_v40 = vpop.permute.xlu2 %1026 }
 0x236   : > { %v1025_v3 = vpop.permute.xlu1 %1024 }
 0x237   : > { %v1023_v28 = vpop.permute.xlu0 %1022 }
 0x238   : > { %v1030_v4 = vsel %vm404_vm4, %v1023_v28, %v1025_v3  ;;  %v1099_v3 = vrot.slane %v1093_v6, 1 }
 0x239   : > { %v1034_v7 = vadd.f32 %v1030_v4, %v1007_v49  ;;  %v1100_v49 = vrot.slane %v2523_v46, 1 }
 0x23b   : > { %v1101_v28 = vsel %vm589_vm2, %v1099_v3, %v1100_v49 }
 0x23e   : > { %v1039_v57 = vpop.permute.xlu1 %1038 }
 0x23f   : > { %v1043_v8 = vmul.f32 %v1039_v57, %v2102_v14  ;;  %v1041_v39 = vmul.f32 %v1039_v57, %v2096_v12  ;;  %v1042_v60 = vmul.f32 %v1039_v57, %v2099_v13  ;;  %v1044_v59 = vmul.f32 %v1039_v57, %v2134_v25  ;;  %v2482_v0 = vpop.permute.xlu0 %1028 }
 0x241   : > { %1053 = vrot.lane.b32.xlu1 %v1043_v8, %s2015_s18  ;;  %1049 = vrot.lane.b32.xlu2 %v1041_v39, %s2015_s18  ;;  %v2535_v39 = vld [vmem:[%s2093_s9 + $0x10] sm:$0xff] }
 0x242   : > { %1051 = vrot.lane.b32.xlu0 %v1042_v60, %s2015_s18 }
 0x249   : > { %1055 = vrot.lane.b32.xlu2 %v1044_v59, %s2015_s18  ;;  %v2540_v59 = vld [vmem:[%s2093_s9 + $0x8] sm:$0xff] }
 0x24a   : > { %1066 = vrot.lane.b32.xlu0 %v1064_v54, %s2016_s29 }
 0x29b   : > { %v1050_v15 = vpop.permute.xlu2 %1049 }
 0x2a3   : > { %v2495_v48 = vpop.permute.xlu2 %1055 }
 0x2b4   : > { %v1052_v16 = vpop.permute.xlu0 %1051 }
 0x2b5   : > { %v1058_v11 = vsel %vm1057_vm8, %v1050_v15, %v1052_v16 }
 0x2b6   : > { %v1062_v58 = vadd.f32 %v1058_v11, %v1034_v7  ;;  %v2545_v11 = vld [vmem:[%s2093_s9] sm:$0xff] }
 0x2bc   : > { %v1067_v10 = vpop.permute.xlu0 %1066 }
 0x2bd   : > { %v1071_v17 = vmul.f32 %v1067_v10, %v2102_v14  ;;  %v1070_v18 = vmul.f32 %v1067_v10, %v2099_v13  ;;  %v1069_v23 = vmul.f32 %v1067_v10, %v2096_v12  ;;  %v1072_v34 = vmul.f32 %v1067_v10, %v2134_v25 }
 0x2bf   : > { %1081 = vrot.lane.b32.xlu0 %v1071_v17, %s2017_s30  ;;  %1079 = vrot.lane.b32.xlu2 %v1070_v18, %s2017_s30 }
 0x2c0   : > { %1077 = vrot.lane.b32.xlu1 %v1069_v23, %s2017_s30 }
 0x2c7   : > { %1110 = vrot.lane.b32.xlu2 %v1108_v30, %s2011_s28 }
 0x2c8   : > { %1083 = vrot.lane.b32.xlu1 %v1072_v34, %s2017_s30 }
 0x319   : > { %v1080_v24 = vpop.permute.xlu2 %1079 }
 0x321   : > { %v1111_v9 = vpop.permute.xlu2 %1110 }
 0x322   : > { %v1115_v27 = vmul.f32 %v1111_v9, %v2102_v14  ;;  %v1117_v56 = vmul.f32 %v1111_v9, %v2124_v21  ;;  %v1113_v29 = vmul.f32 %v1111_v9, %v2096_v12  ;;  %v1114_v26 = vmul.f32 %v1111_v9, %v2099_v13  ;;  %v2509_v13 = vpop.permute.xlu1 %1053 }
 0x323   : > { %v1116_v32 = vmul.f32 %v1111_v9, %v2134_v25  ;;  %v1118_v43 = vmul.f32 %v1111_v9, %v2127_v22  ;;  %v2553_v9 = vld [vmem:[%s2112_s14 + $0x8] sm:$0xf] }
 0x324   : > { %v1126_v33 = vrot.slane %v1115_v27, 1  ;;  %v1131_v35 = vrot.slane %v1117_v56, 1  ;;  %v1125_v36 = vrot.slane %v1113_v29, 1  ;;  %v1128_v37 = vrot.slane %v1114_v26, 1  ;;  %v2561_v27 = vld [vmem:[%s2963_s4 + $0x8] sm:$0xff] }
 0x325   : > { %v1129_v38 = vrot.slane %v1116_v32, 1  ;;  %v1133_v45 = vrot.slane %v1118_v43, 1  ;;  %v1190_v29 = vperm.slane %v2561_v27, 0  ;;  %v2574_v43 = vld [vmem:[%s2112_s14] sm:$0xf] }
 0x326   : > { %v1132_v42 = vsel %vm589_vm2, %v1126_v33, %v1131_v35  ;;  %v1127_v53 = vsel %vm589_vm2, %v1125_v36, %v1126_v33 }
 0x327   : > { %1139 = vrot.lane.b32.xlu2 %v1132_v42, %s2012_s11  ;;  %1135 = vrot.lane.b32.xlu0 %v1127_v53, %s2012_s11  ;;  %v1130_v44 = vsel %vm589_vm2, %v1128_v37, %v1129_v38  ;;  %v1134_v50 = vsel %vm589_vm2, %v1129_v38, %v1133_v45 }
 0x328   : > { %1137 = vrot.lane.b32.xlu1 %v1130_v44, %s2012_s11 }
 0x32f   : > { %1141 = vrot.lane.b32.xlu0 %v1134_v50, %s2012_s11  ;;  %v2580_v50 = vld [vmem:[%s2093_s9 + $0x18] sm:$0xff] }
 0x330   : > { %1151 = vrot.lane.b32.xlu1 %v1149_v47, %s2009_s26 }
 0x331   : > { %v2525_v20 = vpop.permute.xlu0 %1081 }
 0x332   : > { %v1078_v22 = vpop.permute.xlu1 %1077 }
 0x333   : > { %v1086_v51 = vsel %vm1085_vm9, %v1078_v22, %v1080_v24 }
 0x334   : > { %v1090_v52 = vadd.f32 %v1086_v51, %v1062_v58 }
 0x336   : > { %v1106_v7 = vadd.f32 %v1101_v28, %v1090_v52 }
 0x33a   : > { %v2527_v2 = vpop.permute.xlu1 %1083 }
 0x33b   : > { %v1087_v5 = vsel %vm1085_vm9, %v2525_v20, %v2527_v2 }
 0x381   : > { %v2567_v32 = vpop.permute.xlu2 %1139 }
 0x399   : > { %v1136_v4 = vpop.permute.xlu0 %1135 }
 0x39a   : > { %v1138_v12 = vpop.permute.xlu1 %1137 }
 0x39b   : > { %v1143_v57 = vsel %vm512_vm3, %v1136_v4, %v1138_v12 }
 0x39c   : > { %v1147_v8 = vadd.f32 %v1143_v57, %v1106_v7 }
 0x3a1   : > { %v2569_v33 = vpop.permute.xlu0 %1141 }
 0x3a2   : > { %v1152_v14 = vpop.permute.xlu1 %1151 }
 0x3a3   : > { %v1156_v60 = vmul.f32 %v2535_v39, %v1152_v14  ;;  %v1158_v54 = vmul.f32 %v1152_v14, %v2124_v21  ;;  %v1155_v15 = vmul.f32 %v2540_v59, %v1152_v14  ;;  %v1157_v16 = vmul.f32 %v1152_v14, %v2134_v25 }
 0x3a4   : > { %v1154_v58 = vmul.f32 %v2545_v11, %v1152_v14  ;;  %v1159_v25 = vmul.f32 %v2553_v9, %v1152_v14  ;;  %v1231_v14 = vperm.slane %v2561_v27, 1 }
 0x3a5   : > { %v1167_v10 = vrot.slane %v1156_v60, 1  ;;  %v1172_v17 = vrot.slane %v1158_v54, 1  ;;  %v1169_v18 = vrot.slane %v1155_v15, 1  ;;  %v1170_v23 = vrot.slane %v1157_v16, 1 }
 0x3a6   : > { %v1166_v30 = vrot.slane %v1154_v58, 1  ;;  %v1174_v56 = vrot.slane %v1159_v25, 1 }
 0x3a7   : > { %v1173_v34 = vsel %vm589_vm2, %v1167_v10, %v1172_v17  ;;  %v1171_v21 = vsel %vm589_vm2, %v1169_v18, %v1170_v23 }
 0x3a8   : > { %1180 = vrot.lane.b32.xlu1 %v1173_v34, %s2013_s15  ;;  %v1168_v24 = vsel %vm589_vm2, %v1166_v30, %v1167_v10  ;;  %1178 = vrot.lane.b32.xlu0 %v1171_v21, %s2013_s15  ;;  %v1175_v26 = vsel %vm589_vm2, %v1170_v23, %v1174_v56 }
 0x3a9   : > { %1176 = vrot.lane.b32.xlu2 %v1168_v24, %s2013_s15 }
 0x3b0   : > { %1192 = vrot.lane.b32.xlu0 %v1190_v29, %s2010_s27 }
 0x3b1   : > { %1182 = vrot.lane.b32.xlu2 %v1175_v26, %s2013_s15 }
 0x403   : > { %v1177_v35 = vpop.permute.xlu2 %1176 }
 0x40b   : > { %v2594_v54 = vpop.permute.xlu2 %1182 }
 0x41a   : > { %v1179_v36 = vpop.permute.xlu0 %1178 }
 0x41b   : > { %v1184_v37 = vsel %vm404_vm4, %v1177_v35, %v1179_v36  ;;  %v2607_v36 = vpop.permute.xlu1 %1180 }
 0x41c   : > { %v1188_v38 = vadd.f32 %v1184_v37, %v1147_v8  ;;  %v1288_v37 = vperm.slane %v2561_v27, 3 }
 0x422   : > { %v1193_v42 = vpop.permute.xlu0 %1192 }
 0x423   : > { %v1197_v53 = vmul.f32 %v2535_v39, %v1193_v42  ;;  %v1199_v44 = vmul.f32 %v2574_v43, %v1193_v42  ;;  %v1195_v45 = vmul.f32 %v2545_v11, %v1193_v42  ;;  %v1196_v47 = vmul.f32 %v2540_v59, %v1193_v42 }
 0x424   : > { %v1198_v22 = vmul.f32 %v2580_v50, %v1193_v42  ;;  %v1200_v12 = vmul.f32 %v2553_v9, %v1193_v42 }
 0x425   : > { %v1208_v51 = vrot.slane %v1197_v53, 1  ;;  %v1213_v52 = vrot.slane %v1199_v44, 1  ;;  %v1207_v6 = vrot.slane %v1195_v45, 1  ;;  %v1210_v3 = vrot.slane %v1196_v47, 1 }
 0x426   : > { %v1211_v28 = vrot.slane %v1198_v22, 1  ;;  %v1215_v8 = vrot.slane %v1200_v12, 1 }
 0x427   : > { %v1214_v4 = vsel %vm589_vm2, %v1208_v51, %v1213_v52  ;;  %v1209_v7 = vsel %vm589_vm2, %v1207_v6, %v1208_v51 }
 0x428   : > { %1221 = vrot.lane.b32.xlu0 %v1214_v4, %s2015_s18  ;;  %1217 = vrot.lane.b32.xlu1 %v1209_v7, %s2015_s18  ;;  %v1212_v57 = vsel %vm589_vm2, %v1210_v3, %v1211_v28  ;;  %v1216_v60 = vsel %vm589_vm2, %v1211_v28, %v1215_v8  ;;  %v902_v7 = vrot.slane %v2412_v55, 4 }
 0x429   : > { %1219 = vrot.lane.b32.xlu2 %v1212_v57, %s2015_s18 }
 0x430   : > { %1223 = vrot.lane.b32.xlu1 %v1216_v60, %s2015_s18 }
 0x431   : > { %1233 = vrot.lane.b32.xlu2 %v1231_v14, %s2016_s29 }
 0x483   : > { %v1220_v15 = vpop.permute.xlu2 %1219 }
 0x48b   : > { %v1234_v16 = vpop.permute.xlu2 %1233 }
 0x48c   : > { %v1238_v58 = vmul.f32 %v2535_v39, %v1234_v16  ;;  %v1240_v10 = vmul.f32 %v2574_v43, %v1234_v16  ;;  %v1237_v17 = vmul.f32 %v2540_v59, %v1234_v16  ;;  %v1239_v18 = vmul.f32 %v2580_v50, %v1234_v16 }
 0x48d   : > { %v1236_v23 = vmul.f32 %v2545_v11, %v1234_v16  ;;  %v1241_v35 = vmul.f32 %v2553_v9, %v1234_v16 }
 0x48e   : > { %v1249_v30 = vrot.slane %v1238_v58, 1  ;;  %v1254_v34 = vrot.slane %v1240_v10, 1  ;;  %v1251_v21 = vrot.slane %v1237_v17, 1  ;;  %v1252_v24 = vrot.slane %v1239_v18, 1 }
 0x48f   : > { %v1248_v25 = vrot.slane %v1236_v23, 1  ;;  %v1256_v42 = vrot.slane %v1241_v35, 1  ;;  %v2640_v35 = vperm.slane %v2561_v27, 2 }
 0x490   : > { %v1255_v56 = vsel %vm589_vm2, %v1249_v30, %v1254_v34  ;;  %v1253_v29 = vsel %vm589_vm2, %v1251_v21, %v1252_v24 }
 0x491   : > { %1262 = vrot.lane.b32.xlu2 %v1255_v56, %s2017_s30  ;;  %1260 = vrot.lane.b32.xlu1 %v1253_v29, %s2017_s30  ;;  %v1250_v26 = vsel %vm589_vm2, %v1248_v25, %v1249_v30  ;;  %v1257_v53 = vsel %vm589_vm2, %v1252_v24, %v1256_v42  ;;  %v903_v30 = vadd.f32 %v902_v7, %v2412_v55  ;;  %v1329_v25 = vperm.slane %v2561_v27, 4 }
 0x492   : > { %1258 = vrot.lane.b32.xlu0 %v1250_v26, %s2017_s30  ;;  %v1273_v42 = vmul.f32 %v2545_v11, %v2640_v35  ;;  %v892_v7 = vrot.slane %v2423_v31, 4 }
 0x493   : > { %v904_v24 = vrot.slane %v903_v30, 2 }
 0x495   : > { %v905_v29 = vadd.f32 %v904_v24, %v903_v30 }
 0x497   : > { %v906_v55 = vrot.slane %v905_v29, 1 }
 0x499   : > { %1290 = vrot.lane.b32.xlu1 %v1288_v37, %s2011_s28  ;;  %v907_v26 = vadd.f32 %v906_v55, %v905_v29  ;;  %v2644_v37 = vmul.f32 %v2535_v39, %v2640_v35 }
 0x49a   : > { %1264 = vrot.lane.b32.xlu0 %v1257_v53, %s2017_s30  ;;  %v1218_v44 = vpop.permute.xlu1 %1217  ;;  %v2617_v51 = vpop.permute.xlu0 %1221 }
 0x49b   : > { %v1225_v45 = vsel %vm1057_vm8, %v1218_v44, %v1220_v15 }
 0x49c   : > { %v1229_v47 = vadd.f32 %v1225_v45, %v1188_v38  ;;  %v1280_v45 = vrot.slane %v2644_v37, 2 }
 0x4a2   : > { %v2615_v22 = vpop.permute.xlu1 %1223 }
 0x4a3   : > { %v1226_v46 = vsel %vm1057_vm8, %v2617_v51, %v2615_v22 }
 0x4eb   : > { %v2648_v53 = vpop.permute.xlu2 %1262 }
 0x503   : > { %v1261_v52 = vpop.permute.xlu1 %1260 }
 0x504   : > { %v1259_v6 = vpop.permute.xlu0 %1258 }
 0x505   : > { %v1266_v3 = vsel %vm1085_vm9, %v1259_v6, %v1261_v52 }
 0x506   : > { %v1270_v28 = vadd.f32 %v1266_v3, %v1229_v47  ;;  %v1279_v47 = vrot.slane %v1273_v42, 2 }
 0x508   : > { %v1281_v52 = vsel %vm363_vm0, %v1279_v47, %v1280_v45 }
 0x509   : > { %v1286_v3 = vadd.f32 %v1281_v52, %v1270_v28 }
 0x50b   : > { %v1291_v4 = vpop.permute.xlu1 %1290 }
 0x50c   : > { %v1295_v12 = vmul.f32 %v2535_v39, %v1291_v4  ;;  %v1297_v57 = vmul.f32 %v2574_v43, %v1291_v4  ;;  %v1293_v8 = vmul.f32 %v2545_v11, %v1291_v4  ;;  %v1294_v38 = vmul.f32 %v2540_v59, %v1291_v4  ;;  %v2650_v44 = vpop.permute.xlu0 %1264 }
 0x50d   : > { %v1296_v14 = vmul.f32 %v2580_v50, %v1291_v4  ;;  %v1298_v23 = vmul.f32 %v2553_v9, %v1291_v4 }
 0x50e   : > { %v1306_v60 = vrot.slane %v1295_v12, 2  ;;  %v1311_v15 = vrot.slane %v1297_v57, 2  ;;  %v1305_v16 = vrot.slane %v1293_v8, 2  ;;  %v1308_v58 = vrot.slane %v1294_v38, 2 }
 0x50f   : > { %v1309_v10 = vrot.slane %v1296_v14, 2  ;;  %v1313_v21 = vrot.slane %v1298_v23, 2  ;;  %v893_v8 = vadd.f32 %v892_v7, %v2423_v31 }
 0x510   : > { %v1312_v17 = vsel %vm363_vm0, %v1306_v60, %v1311_v15  ;;  %v1307_v18 = vsel %vm363_vm0, %v1305_v16, %v1306_v60  ;;  %v957_v60 = vrot.slane %v2425_v61, 4  ;;  %v948_v15 = vrot.slane %v2427_v41, 4 }
 0x511   : > { %1319 = vrot.lane.b32.xlu1 %v1312_v17, %s2012_s11  ;;  %1315 = vrot.lane.b32.xlu2 %v1307_v18, %s2012_s11  ;;  %v1310_v34 = vsel %vm363_vm0, %v1308_v58, %v1309_v10  ;;  %v1314_v56 = vsel %vm363_vm0, %v1309_v10, %v1313_v21  ;;  %v894_v14 = vrot.slane %v893_v8, 2 }
 0x512   : > { %1317 = vrot.lane.b32.xlu0 %v1310_v34, %s2012_s11  ;;  %v958_v24 = vadd.f32 %v957_v60, %v2425_v61  ;;  %v949_v29 = vadd.f32 %v948_v15, %v2427_v41 }
 0x513   : > { %v895_v21 = vadd.f32 %v894_v14, %v893_v8  ;;  %v1370_v14 = vperm.slane %v2561_v27, 5 }
 0x514   : > { %v959_v47 = vrot.slane %v958_v24, 2  ;;  %v950_v52 = vrot.slane %v949_v29, 2 }
 0x515   : > { %v896_v42 = vrot.slane %v895_v21, 1 }
 0x519   : > { %1321 = vrot.lane.b32.xlu2 %v1314_v56, %s2012_s11 }
 0x51a   : > { %1331 = vrot.lane.b32.xlu0 %v1329_v25, %s2009_s26 }
 0x522   : > { %912 = vrot.lane.b32.xlu0 %v907_v26, %s2012_s11 }
 0x56b   : > { %v1316_v6 = vpop.permute.xlu2 %1315 }
 0x573   : > { %v2682_v60 = vpop.permute.xlu2 %1321 }
 0x584   : > { %v1318_v4 = vpop.permute.xlu0 %1317 }
 0x585   : > { %v1323_v12 = vsel %vm512_vm3, %v1316_v6, %v1318_v4  ;;  %v897_v6 = vadd.f32 %v896_v42, %v895_v21  ;;  %v951_v4 = vadd.f32 %v950_v52, %v949_v29 }
 0x586   : > { %v1327_v57 = vadd.f32 %v1323_v12, %v1286_v3  ;;  %v960_v3 = vadd.f32 %v959_v47, %v958_v24 }
 0x587   : > { %v952_v12 = vrot.slane %v951_v4, 1 }
 0x588   : > { %v961_v7 = vrot.slane %v960_v3, 1 }
 0x58a   : > { %v962_v8 = vadd.f32 %v961_v7, %v960_v3 }
 0x58c   : > { %v1332_v38 = vpop.permute.xlu0 %1331 }
 0x58d   : > { %v1336_v16 = vmul.f32 %v2535_v39, %v1332_v38  ;;  %v1338_v58 = vmul.f32 %v2574_v43, %v1332_v38  ;;  %v1335_v28 = vmul.f32 %v2540_v59, %v1332_v38  ;;  %v1337_v10 = vmul.f32 %v2580_v50, %v1332_v38 }
 0x58e   : > { %v1334_v17 = vmul.f32 %v2545_v11, %v1332_v38  ;;  %v1339_v26 = vmul.f32 %v2553_v9, %v1332_v38  ;;  %v953_v38 = vadd.f32 %v952_v12, %v951_v4  ;;  %v1411_v12 = vperm.slane %v2561_v27, 6 }
 0x58f   : > { %v1347_v18 = vrot.slane %v1336_v16, 2  ;;  %v1352_v23 = vrot.slane %v1338_v58, 2  ;;  %v1349_v30 = vrot.slane %v1335_v28, 2  ;;  %v1350_v31 = vrot.slane %v1337_v10, 2  ;;  %v867_v16 = vld [vmem:[%s2441_s25 + $0x2] sm:$0x1] }
 0x590   : > { %v1346_v34 = vrot.slane %v1334_v17, 2  ;;  %v1354_v61 = vrot.slane %v1339_v26, 2 }
 0x591   : > { %v1353_v25 = vsel %vm363_vm0, %v1347_v18, %v1352_v23  ;;  %v1351_v56 = vsel %vm363_vm0, %v1349_v30, %v1350_v31  ;;  %v2687_v23 = vpop.permute.xlu1 %1319 }
 0x592   : > { %1360 = vrot.lane.b32.xlu0 %v1353_v25, %s2013_s15  ;;  %1358 = vrot.lane.b32.xlu2 %v1351_v56, %s2013_s15  ;;  %v1348_v55 = vsel %vm363_vm0, %v1346_v34, %v1347_v18  ;;  %v1355_v41 = vsel %vm363_vm0, %v1350_v31, %v1354_v61 }
 0x593   : > { %1356 = vrot.lane.b32.xlu1 %v1348_v55, %s2013_s15 }
 0x594   : > { %v913_v58 = vpop.permute.xlu0 %912 }
 0x59a   : > { %910 = vrot.lane.b32.xlu2 %v897_v6, %s2012_s11 }
 0x59b   : > { %1362 = vrot.lane.b32.xlu1 %v1355_v41, %s2013_s15 }
 0x5a2   : > { %967 = vrot.lane.b32.xlu2 %v962_v8, %s2012_s11 }
 0x5a3   : > { %965 = vrot.lane.b32.xlu1 %v953_v38, %s2012_s11  ;;  %v918_v38 = vld [vmem:[%s2441_s25 + $0x3] sm:$0x1] }
 0x5aa   : > { %1372 = vrot.lane.b32.xlu2 %v1370_v14, %s2010_s27 }
 0x5ec   : > { %v1359_v15 = vpop.permute.xlu2 %1358 }
 0x5f4   : > { %v911_v28 = vpop.permute.xlu2 %910 }
 0x5f5   : > { %v914_v10 = vsel %vm512_vm3, %v911_v28, %v913_v58 }
 0x5f6   : > { %v916_v17 = vadd.f32 %v914_v10, %v867_v16 }
 0x5f8   : > { %917 = vst [vmem:[%s2441_s25 + $0x2] sm:$0x1] %v916_v17 }
 0x5fc   : > { %v968_v18 = vpop.permute.xlu2 %967 }
 0x604   : > { %v1373_v30 = vpop.permute.xlu2 %1372  ;;  %v2711_v58 = vpop.permute.xlu0 %1360 }
 0x605   : > { %v1357_v31 = vpop.permute.xlu1 %1356  ;;  %v1377_v34 = vmul.f32 %v2535_v39, %v1373_v30  ;;  %v1379_v21 = vmul.f32 %v2574_v43, %v1373_v30  ;;  %v1375_v24 = vmul.f32 %v2545_v11, %v1373_v30  ;;  %v1376_v25 = vmul.f32 %v2540_v59, %v1373_v30 }
 0x606   : > { %v1364_v56 = vsel %vm404_vm4, %v1357_v31, %v1359_v15  ;;  %v1378_v29 = vmul.f32 %v2580_v50, %v1373_v30  ;;  %v1380_v4 = vmul.f32 %v2553_v9, %v1373_v30 }
 0x607   : > { %v1368_v55 = vadd.f32 %v1364_v56, %v1327_v57  ;;  %v1388_v26 = vrot.slane %v1377_v34, 2  ;;  %v1393_v42 = vrot.slane %v1379_v21, 2  ;;  %v1387_v47 = vrot.slane %v1375_v24, 2 }
 0x608   : > { %v1390_v52 = vrot.slane %v1376_v25, 2  ;;  %v1391_v61 = vrot.slane %v1378_v29, 2  ;;  %v1395_v7 = vrot.slane %v1380_v4, 2 }
 0x609   : > { %v1394_v6 = vsel %vm363_vm0, %v1388_v26, %v1393_v42  ;;  %v1389_v3 = vsel %vm363_vm0, %v1387_v47, %v1388_v26 }
 0x60a   : > { %1401 = vrot.lane.b32.xlu2 %v1394_v6, %s2015_s18  ;;  %1397 = vrot.lane.b32.xlu0 %v1389_v3, %s2015_s18  ;;  %v1392_v41 = vsel %vm363_vm0, %v1390_v52, %v1391_v61  ;;  %v1396_v8 = vsel %vm363_vm0, %v1391_v61, %v1395_v7  ;;  %v2731_v3 = vld [vmem:[%s2963_s4 + $0x10] sm:$0xff] }
 0x60b   : > { %1399 = vrot.lane.b32.xlu1 %v1392_v41, %s2015_s18  ;;  %v1510_v41 = vperm.slane %v2731_v3, 1  ;;  %v1469_v7 = vperm.slane %v2731_v3, 0 }
 0x60d   : > { %v2702_v57 = vpop.permute.xlu1 %1362 }
 0x612   : > { %1403 = vrot.lane.b32.xlu0 %v1396_v8, %s2015_s18  ;;  %v1650_v8 = vperm.slane %v2731_v3, 5 }
 0x613   : > { %1413 = vrot.lane.b32.xlu1 %v1411_v12, %s2016_s29 }
 0x615   : > { %v966_v14 = vpop.permute.xlu1 %965 }
 0x616   : > { %v969_v15 = vsel %vm512_vm3, %v966_v14, %v968_v18  ;;  %v1551_v14 = vperm.slane %v2731_v3, 2 }
 0x617   : > { %v971_v16 = vadd.f32 %v969_v15, %v918_v38  ;;  %v1592_v38 = vperm.slane %v2731_v3, 3  ;;  %v1977_v15 = vld [vmem:[%s2963_s4 + $0x18] ss:$0 sm:$0xff] }
 0x619   : > { %972 = vst [vmem:[%s2441_s25 + $0x3] sm:$0x1] %v971_v16  ;;  %v1732_v16 = vperm.slane %v2731_v3, 7 }
 0x67c   : > { %v1398_v28 = vpop.permute.xlu0 %1397 }
 0x67d   : > { %v1400_v10 = vpop.permute.xlu1 %1399 }
 0x67e   : > { %v1405_v17 = vsel %vm1057_vm8, %v1398_v28, %v1400_v10  ;;  %v1691_v28 = vperm.slane %v2731_v3, 6  ;;  %v979_v10 = vmul.f32 %v2535_v39, %v977_v63 }
 0x67f   : > { %v2714_v30 = vadd.f32 %v1405_v17, %v1368_v55  ;;  %v1004_v17 = vsel %vm512_vm3, %v2464_v1, %v2461_v62 }
 0x684   : > { %v1404_v22 = vpop.permute.xlu0 %1403 }
 0x685   : > { %v1414_v31 = vpop.permute.xlu1 %1413 }
 0x686   : > { %v1418_v34 = vmul.f32 %v2535_v39, %v1414_v31  ;;  %v1420_v21 = vmul.f32 %v2574_v43, %v1414_v31  ;;  %v1417_v24 = vmul.f32 %v2540_v59, %v1414_v31  ;;  %v1419_v25 = vmul.f32 %v2580_v50, %v1414_v31 }
 0x687   : > { %v1416_v18 = vmul.f32 %v2545_v11, %v1414_v31  ;;  %v1421_v6 = vmul.f32 %v2553_v9, %v1414_v31  ;;  %v1031_v31 = vsel %vm404_vm4, %v2480_v40, %v2482_v0  ;;  %v1144_v40 = vsel %vm512_vm3, %v2567_v32, %v2569_v33 }
 0x688   : > { %v1429_v56 = vrot.slane %v1418_v34, 2  ;;  %v1434_v29 = vrot.slane %v1420_v21, 2  ;;  %v1431_v26 = vrot.slane %v1417_v24, 2  ;;  %v1432_v42 = vrot.slane %v1419_v25, 2 }
 0x689   : > { %v1428_v47 = vrot.slane %v1416_v18, 2  ;;  %v1436_v4 = vrot.slane %v1421_v6, 2  ;;  %v1095_v34 = vmul.f32 %v2574_v43, %v2517_v19  ;;  %v1008_v21 = vadd.f32 %v1004_v17, %v979_v10  ;;  %v1402_v19 = vpop.permute.xlu2 %1401 }
 0x68a   : > { %v1435_v52 = vsel %vm363_vm0, %v1429_v56, %v1434_v29  ;;  %v1433_v55 = vsel %vm363_vm0, %v1431_v26, %v1432_v42  ;;  %v1059_v24 = vsel %vm1057_vm8, %v2509_v13, %v2495_v48  ;;  %v1185_v48 = vsel %vm404_vm4, %v2607_v36, %v2594_v54 }
 0x68b   : > { %1442 = vrot.lane.b32.xlu1 %v1435_v52, %s2017_s30  ;;  %v1430_v61 = vsel %vm363_vm0, %v1428_v47, %v1429_v56  ;;  %1440 = vrot.lane.b32.xlu0 %v1433_v55, %s2017_s30  ;;  %v1437_v12 = vsel %vm363_vm0, %v1432_v42, %v1436_v4  ;;  %v1035_v25 = vadd.f32 %v1031_v31, %v1008_v21  ;;  %v1102_v63 = vrot.slane %v1095_v34, 1 }
 0x68c   : > { %1438 = vrot.lane.b32.xlu2 %v1430_v61, %s2017_s30  ;;  %v1275_v13 = vmul.f32 %v2574_v43, %v2640_v35  ;;  %v1452_v56 = vperm.slane %v2561_v27, 7  ;;  %v1324_v36 = vsel %vm512_vm3, %v2687_v23, %v2682_v60  ;;  %v1365_v27 = vsel %vm404_vm4, %v2711_v58, %v2702_v57 }
 0x68d   : > { %v1063_v18 = vadd.f32 %v1059_v24, %v1035_v25  ;;  %v1103_v1 = vsel %vm589_vm2, %v1100_v49, %v1102_v63  ;;  %v1267_v49 = vsel %vm1085_vm9, %v2648_v53, %v2650_v44  ;;  %v1406_v37 = vsel %vm1057_vm8, %v1402_v19, %v1404_v22 }
 0x68e   : > { %v1282_v32 = vrot.slane %v1275_v13, 2  ;;  %v1454_v51 = vmul.f32 %v2535_v39, %v1452_v56  ;;  %v1455_v35 = vmul.f32 %v2574_v43, %v1452_v56  ;;  %v1453_v44 = vmul.f32 %v2545_v11, %v1452_v56 }
 0x68f   : > { %v1091_v62 = vadd.f32 %v1087_v5, %v1063_v18 }
 0x690   : > { %v1283_v54 = vsel %vm363_vm0, %v1280_v45, %v1282_v32  ;;  %v1461_v45 = vrot.slane %v1454_v51, 3  ;;  %v1463_v47 = vrot.slane %v1455_v35, 3  ;;  %v1460_v60 = vrot.slane %v1453_v44, 3 }
 0x691   : > { %v1107_v0 = vadd.f32 %v1103_v1, %v1091_v62 }
 0x692   : > { %v1462_v57 = vsel %vm1459_vm10, %v1460_v60, %v1461_v45 }
 0x693   : > { %1512 = vrot.lane.b32.xlu1 %v1510_v41, %s2009_s26  ;;  %1471 = vrot.lane.b32.xlu0 %v1469_v7, %s2011_s28  ;;  %v1148_v20 = vadd.f32 %v1144_v40, %v1107_v0  ;;  %v1464_v41 = vsel %vm1459_vm10, %v1461_v45, %v1463_v47 }
 0x694   : > { %1444 = vrot.lane.b32.xlu2 %v1437_v12, %s2017_s30 }
 0x695   : > { %v1189_v2 = vadd.f32 %v1185_v48, %v1148_v20 }
 0x697   : > { %v1230_v33 = vadd.f32 %v1226_v46, %v1189_v2 }
 0x699   : > { %v1271_v29 = vadd.f32 %v1267_v49, %v1230_v33 }
 0x69b   : > { %1652 = vrot.lane.b32.xlu1 %v1650_v8, %s2011_s28  ;;  %1594 = vrot.lane.b32.xlu0 %v1592_v38, %s2016_s29  ;;  %v1287_v53 = vadd.f32 %v1283_v54, %v1271_v29 }
 0x69c   : > { %1553 = vrot.lane.b32.xlu2 %v1551_v14, %s2010_s27 }
 0x69d   : > { %v1328_v42 = vadd.f32 %v1324_v36, %v1287_v53 }
 0x69f   : > { %v1369_v52 = vadd.f32 %v1365_v27, %v1328_v42 }
 0x6a1   : > { %v1410_v23 = vadd.f32 %v1406_v37, %v1369_v52 }
 0x6a3   : > { %1775 = vrot.lane.b32.xlu1 %v1977_v15, %s2016_s29  ;;  %1734 = vrot.lane.b32.xlu0 %v1732_v16, %s2010_s27 }
 0x6a4   : > { %1693 = vrot.lane.b32.xlu2 %v1691_v28, %s2009_s26 }
 0x6e6   : > { %v1439_v26 = vpop.permute.xlu2 %1438 }
 0x6ee   : > { %v1445_v55 = vpop.permute.xlu2 %1444 }
 0x6f6   : > { %v1554_v2 = vpop.permute.xlu2 %1553 }
 0x6f7   : > { %v1556_v56 = vmul.f32 %v2545_v11, %v1554_v2  ;;  %v1558_v29 = vmul.f32 %v2535_v39, %v1554_v2  ;;  %v1559_v44 = vmul.f32 %v2580_v50, %v1554_v2  ;;  %v1561_v27 = vmul.f32 %v2553_v9, %v1554_v2 }
 0x6f8   : > { %v1560_v42 = vmul.f32 %v2574_v43, %v1554_v2  ;;  %v1557_v45 = vmul.f32 %v2540_v59, %v1554_v2 }
 0x6f9   : > { %v1568_v22 = vrot.slane %v1556_v56, 3  ;;  %v1569_v51 = vrot.slane %v1558_v29, 3  ;;  %v1572_v60 = vrot.slane %v1559_v44, 3 }
 0x6fb   : > { %v1570_v37 = vsel %vm1459_vm10, %v1568_v22, %v1569_v51 }
 0x6fd   : > { %v1443_v61 = vpop.permute.xlu1 %1442  ;;  %v1441_v4 = vpop.permute.xlu0 %1440 }
 0x6fe   : > { %v1447_v6 = vsel %vm1085_vm9, %v1443_v61, %v1445_v55  ;;  %v1446_v12 = vsel %vm1085_vm9, %v1439_v26, %v1441_v4  ;;  %v1574_v55 = vrot.slane %v1560_v42, 3  ;;  %v1571_v61 = vrot.slane %v1557_v45, 3 }
 0x6ff   : > { %v1451_v7 = vadd.f32 %v1447_v6, %v1410_v23  ;;  %v1450_v58 = vadd.f32 %v1446_v12, %v2714_v30  ;;  %v1576_v23 = vrot.slane %v1561_v27, 3 }
 0x701   : > { %v2806_v8 = vadd.f32 %v1464_v41, %v1451_v7  ;;  %v2808_v38 = vadd.f32 %v1462_v57, %v1450_v58  ;;  %v1577_v4 = vsel %vm1459_vm10, %v1572_v60, %v1576_v23  ;;  %v1575_v41 = vsel %vm1459_vm10, %v1569_v51, %v1574_v55 }
 0x705   : > { %v1513_v14 = vpop.permute.xlu1 %1512  ;;  %v1472_v15 = vpop.permute.xlu0 %1471 }
 0x706   : > { %v1516_v16 = vmul.f32 %v2540_v59, %v1513_v14  ;;  %v1476_v28 = vmul.f32 %v2535_v39, %v1472_v15  ;;  %v1478_v10 = vmul.f32 %v2574_v43, %v1472_v15  ;;  %v1475_v17 = vmul.f32 %v2540_v59, %v1472_v15 }
 0x707   : > { %v1477_v31 = vmul.f32 %v2580_v50, %v1472_v15  ;;  %v1474_v34 = vmul.f32 %v2545_v11, %v1472_v15  ;;  %v1518_v30 = vmul.f32 %v2580_v50, %v1513_v14  ;;  %v1515_v21 = vmul.f32 %v2545_v11, %v1513_v14 }
 0x708   : > { %v1517_v24 = vmul.f32 %v2535_v39, %v1513_v14  ;;  %v1487_v25 = vrot.slane %v1476_v28, 3  ;;  %v1492_v5 = vrot.slane %v1478_v10, 3  ;;  %v1489_v63 = vrot.slane %v1475_v17, 3 }
 0x709   : > { %v1490_v18 = vrot.slane %v1477_v31, 3  ;;  %v1486_v62 = vrot.slane %v1474_v34, 3  ;;  %v1479_v19 = vmul.f32 %v2553_v9, %v1472_v15  ;;  %v1530_v48 = vrot.slane %v1516_v16, 3 }
 0x70a   : > { %v1493_v1 = vsel %vm1459_vm10, %v1487_v25, %v1492_v5  ;;  %v1531_v13 = vrot.slane %v1518_v30, 3  ;;  %v1527_v20 = vrot.slane %v1515_v21, 3  ;;  %v1528_v46 = vrot.slane %v1517_v24, 3 }
 0x70b   : > { %v1491_v40 = vsel %vm1459_vm10, %v1489_v63, %v1490_v18  ;;  %1500 = vrot.lane.b32.xlu1 %v1493_v1, %s2012_s11  ;;  %v1488_v0 = vsel %vm1459_vm10, %v1486_v62, %v1487_v25  ;;  %v1494_v49 = vrot.slane %v1479_v19, 3  ;;  %v1520_v26 = vmul.f32 %v2553_v9, %v1513_v14 }
 0x70c   : > { %1498 = vrot.lane.b32.xlu0 %v1491_v40, %s2012_s11  ;;  %1496 = vrot.lane.b32.xlu2 %v1488_v0, %s2012_s11  ;;  %v1532_v32 = vsel %vm1459_vm10, %v1530_v48, %v1531_v13  ;;  %v1529_v33 = vsel %vm1459_vm10, %v1527_v20, %v1528_v46  ;;  %v1519_v36 = vmul.f32 %v2574_v43, %v1513_v14  ;;  %v1694_v48 = vpop.permute.xlu2 %1693 }
 0x70d   : > { %v1495_v54 = vsel %vm1459_vm10, %v1490_v18, %v1494_v49  ;;  %v1535_v35 = vrot.slane %v1520_v26, 3  ;;  %v1595_v6 = vpop.permute.xlu0 %1594  ;;  %v1573_v14 = vsel %vm1459_vm10, %v1571_v61, %v1572_v60  ;;  %v1653_v31 = vpop.permute.xlu1 %1652  ;;  %v1696_v2 = vmul.f32 %v2545_v11, %v1694_v48 }
 0x70e   : > { %v1533_v53 = vrot.slane %v1519_v36, 3  ;;  %v1599_v7 = vmul.f32 %v2535_v39, %v1595_v6  ;;  %v1601_v12 = vmul.f32 %v2574_v43, %v1595_v6  ;;  %v1598_v57 = vmul.f32 %v2540_v59, %v1595_v6 }
 0x70f   : > { %v1536_v47 = vsel %vm1459_vm10, %v1531_v13, %v1535_v35  ;;  %v1600_v58 = vmul.f32 %v2580_v50, %v1595_v6  ;;  %v1597_v15 = vmul.f32 %v2545_v11, %v1595_v6  ;;  %v1656_v30 = vmul.f32 %v2540_v59, %v1653_v31 }
 0x710   : > { %v1534_v52 = vsel %vm1459_vm10, %v1528_v46, %v1533_v53  ;;  %v1610_v16 = vrot.slane %v1599_v7, 3  ;;  %v1615_v28 = vrot.slane %v1601_v12, 3  ;;  %v1612_v10 = vrot.slane %v1598_v57, 3 }
 0x711   : > { %v1613_v17 = vrot.slane %v1600_v58, 3  ;;  %v1609_v34 = vrot.slane %v1597_v15, 3  ;;  %v1658_v21 = vmul.f32 %v2580_v50, %v1653_v31  ;;  %v1655_v5 = vmul.f32 %v2545_v11, %v1653_v31 }
 0x712   : > { %v1616_v24 = vsel %vm1459_vm10, %v1610_v16, %v1615_v28  ;;  %v1657_v63 = vmul.f32 %v2535_v39, %v1653_v31  ;;  %v1602_v62 = vmul.f32 %v2553_v9, %v1595_v6  ;;  %v1670_v1 = vrot.slane %v1656_v30, 4 }
 0x713   : > { %1539 = vrot.lane.b32.xlu1 %v1532_v32, %s2013_s15  ;;  %v1614_v25 = vsel %vm1459_vm10, %v1612_v10, %v1613_v17  ;;  %v1611_v18 = vsel %vm1459_vm10, %v1609_v34, %v1610_v16  ;;  %v1671_v40 = vrot.slane %v1658_v21, 4  ;;  %v1667_v0 = vrot.slane %v1655_v5, 4 }
 0x714   : > { %1537 = vrot.lane.b32.xlu0 %v1529_v33, %s2013_s15  ;;  %1502 = vrot.lane.b32.xlu2 %v1495_v54, %s2012_s11  ;;  %v1668_v19 = vrot.slane %v1657_v63, 4  ;;  %v1617_v13 = vrot.slane %v1602_v62, 3  ;;  %v1698_v49 = vmul.f32 %v2535_v39, %v1694_v48  ;;  %v1660_v32 = vmul.f32 %v2553_v9, %v1653_v31 }
 0x715   : > { %v1672_v20 = vsel %vm1640_vm11, %v1670_v1, %v1671_v40  ;;  %v1659_v56 = vmul.f32 %v2574_v43, %v1653_v31  ;;  %v1708_v29 = vrot.slane %v1696_v2, 4  ;;  %v1699_v51 = vmul.f32 %v2580_v50, %v1694_v48  ;;  %v1776_v16 = vpop.permute.xlu1 %1775 }
 0x716   : > { %v1669_v46 = vsel %vm1640_vm11, %v1667_v0, %v1668_v19  ;;  %v1618_v33 = vsel %vm1459_vm10, %v1613_v17, %v1617_v13  ;;  %v1709_v26 = vrot.slane %v1698_v49, 4  ;;  %v1675_v54 = vrot.slane %v1660_v32, 4 }
 0x717   : > { %v1673_v36 = vrot.slane %v1659_v56, 4  ;;  %v1701_v35 = vmul.f32 %v2553_v9, %v1694_v48  ;;  %v1700_v53 = vmul.f32 %v2574_v43, %v1694_v48  ;;  %v1697_v44 = vmul.f32 %v2540_v59, %v1694_v48 }
 0x718   : > { %v1710_v22 = vsel %vm1640_vm11, %v1708_v29, %v1709_v26  ;;  %v1676_v27 = vsel %vm1640_vm11, %v1671_v40, %v1675_v54  ;;  %v1779_v17 = vmul.f32 %v2540_v59, %v1776_v16  ;;  %v1781_v34 = vmul.f32 %v2580_v50, %v1776_v16 }
 0x719   : > { %v1674_v42 = vsel %vm1640_vm11, %v1668_v19, %v1673_v36  ;;  %v1716_v45 = vrot.slane %v1701_v35, 4  ;;  %v1711_v60 = vrot.slane %v1697_v44, 4  ;;  %v1778_v30 = vmul.f32 %v2545_v11, %v1776_v16 }
 0x71a   : > { %v1780_v21 = vmul.f32 %v2535_v39, %v1776_v16  ;;  %v1793_v5 = vrot.slane %v1779_v17, 4  ;;  %v1782_v0 = vmul.f32 %v2574_v43, %v1776_v16 }
 0x71b   : > { %1578 = vrot.lane.b32.xlu1 %v1570_v37, %s2015_s18  ;;  %v1712_v37 = vrot.slane %v1699_v51, 4  ;;  %v1790_v63 = vrot.slane %v1778_v30, 4 }
 0x71c   : > { %1543 = vrot.lane.b32.xlu0 %v1536_v47, %s2013_s15  ;;  %1541 = vrot.lane.b32.xlu2 %v1534_v52, %s2013_s15  ;;  %v1714_v47 = vrot.slane %v1700_v53, 4  ;;  %v1735_v52 = vpop.permute.xlu0 %1734  ;;  %v1796_v48 = vrot.slane %v1782_v0, 4 }
 0x71d   : > { %v1739_v23 = vmul.f32 %v2535_v39, %v1735_v52  ;;  %v1741_v55 = vmul.f32 %v2574_v43, %v1735_v52  ;;  %v1717_v61 = vsel %vm1640_vm11, %v1712_v37, %v1716_v45  ;;  %v1713_v7 = vsel %vm1640_vm11, %v1711_v60, %v1712_v37 }
 0x71e   : > { %v1715_v6 = vsel %vm1640_vm11, %v1709_v26, %v1714_v47  ;;  %v1737_v12 = vmul.f32 %v2545_v11, %v1735_v52  ;;  %v1783_v39 = vmul.f32 %v2553_v9, %v1776_v16 }
 0x71f   : > { %v1750_v57 = vrot.slane %v1739_v23, 4  ;;  %v1755_v58 = vrot.slane %v1741_v55, 4 }
 0x720   : > { %v1749_v28 = vrot.slane %v1737_v12, 4  ;;  %v1798_v19 = vrot.slane %v1783_v39, 4  ;;  %v1984_v12 = vld [vmem:[%s2093_s9 + $0x10] sm:$0xff] }
 0x721   : > { %v1756_v10 = vsel %vm1640_vm11, %v1750_v57, %v1755_v58 }
 0x723   : > { %1584 = vrot.lane.b32.xlu1 %v1577_v4, %s2015_s18  ;;  %v1738_v4 = vmul.f32 %v2540_v59, %v1735_v52  ;;  %v1794_v59 = vrot.slane %v1781_v34, 4 }
 0x724   : > { %1582 = vrot.lane.b32.xlu0 %v1575_v41, %s2015_s18  ;;  %1580 = vrot.lane.b32.xlu2 %v1573_v14, %s2015_s18  ;;  %v1740_v41 = vmul.f32 %v2580_v50, %v1735_v52 }
 0x725   : > { %v1752_v14 = vrot.slane %v1738_v4, 4  ;;  %v1795_v50 = vsel %vm1640_vm11, %v1793_v5, %v1794_v59  ;;  %v1799_v13 = vsel %vm1640_vm11, %v1794_v59, %v1798_v19 }
 0x726   : > { %v1753_v15 = vrot.slane %v1740_v41, 4 }
 0x728   : > { %v1754_v31 = vsel %vm1640_vm11, %v1752_v14, %v1753_v15 }
 0x72b   : > { %1623 = vrot.lane.b32.xlu1 %v1616_v24, %s2017_s30  ;;  %v1751_v24 = vsel %vm1640_vm11, %v1749_v28, %v1750_v57 }
 0x72c   : > { %1621 = vrot.lane.b32.xlu0 %v1614_v25, %s2017_s30  ;;  %1619 = vrot.lane.b32.xlu2 %v1611_v18, %s2017_s30  ;;  %v1742_v25 = vmul.f32 %v2553_v9, %v1735_v52  ;;  %v1791_v18 = vrot.slane %v1780_v21, 4 }
 0x72e   : > { %v1757_v62 = vrot.slane %v1742_v25, 4  ;;  %v1792_v1 = vsel %vm1640_vm11, %v1790_v63, %v1791_v18 }
 0x730   : > { %v1758_v40 = vsel %vm1640_vm11, %v1753_v15, %v1757_v62 }
 0x733   : > { %1679 = vrot.lane.b32.xlu1 %v1672_v20, %s2012_s11  ;;  %v1797_v20 = vsel %vm1640_vm11, %v1791_v18, %v1796_v48 }
 0x734   : > { %1677 = vrot.lane.b32.xlu0 %v1669_v46, %s2012_s11  ;;  %1625 = vrot.lane.b32.xlu2 %v1618_v33, %s2017_s30 }
 0x73b   : > { %1718 = vrot.lane.b32.xlu1 %v1710_v22, %s2013_s15 }
 0x73c   : > { %1683 = vrot.lane.b32.xlu0 %v1676_v27, %s2012_s11  ;;  %1681 = vrot.lane.b32.xlu2 %v1674_v42, %s2012_s11 }
 0x743   : > { %1724 = vrot.lane.b32.xlu1 %v1717_v61, %s2013_s15  ;;  %v1633_v61 = vperm.slane %v2731_v3, 4 }
 0x744   : > { %1722 = vrot.lane.b32.xlu0 %v1715_v6, %s2013_s15  ;;  %1720 = vrot.lane.b32.xlu2 %v1713_v7, %s2013_s15 }
 0x745   : > { %v1634_v7 = vmul.f32 %v2545_v11, %v1633_v61  ;;  %v1635_v57 = vmul.f32 %v1984_v12, %v1633_v61  ;;  %v1636_v15 = vmul.f32 %v2574_v43, %v1633_v61 }
 0x747   : > { %v1641_v34 = vrot.slane %v1634_v7, 4  ;;  %v1642_v30 = vrot.slane %v1635_v57, 4  ;;  %v1644_v25 = vrot.slane %v1636_v15, 4 }
 0x749   : > { %v1643_v43 = vsel %vm1640_vm11, %v1641_v34, %v1642_v30  ;;  %v1645_v62 = vsel %vm1640_vm11, %v1642_v30, %v1644_v25 }
 0x74b   : > { %1763 = vrot.lane.b32.xlu1 %v1756_v10, %s2015_s18 }
 0x74c   : > { %1761 = vrot.lane.b32.xlu0 %v1754_v31, %s2015_s18  ;;  %1759 = vrot.lane.b32.xlu2 %v1751_v24, %s2015_s18 }
 0x753   : > { %1802 = vrot.lane.b32.xlu1 %v1795_v50, %s2017_s30 }
 0x754   : > { %1800 = vrot.lane.b32.xlu0 %v1792_v1, %s2017_s30  ;;  %1765 = vrot.lane.b32.xlu2 %v1758_v40, %s2015_s18 }
 0x75c   : > { %1806 = vrot.lane.b32.xlu0 %v1799_v13, %s2017_s30  ;;  %1804 = vrot.lane.b32.xlu2 %v1797_v20, %s2017_s30 }
 0x766   : > { %v1497_v9 = vpop.permute.xlu2 %1496 }
 0x76e   : > { %v1503_v46 = vpop.permute.xlu2 %1502 }
 0x776   : > { %v1542_v2 = vpop.permute.xlu2 %1541 }
 0x77d   : > { %v1501_v49 = vpop.permute.xlu1 %1500 }
 0x77e   : > { %v1499_v32 = vpop.permute.xlu0 %1498  ;;  %v1581_v54 = vpop.permute.xlu2 %1580  ;;  %v1505_v4 = vsel %vm512_vm3, %v1501_v49, %v1503_v46 }
 0x77f   : > { %v1504_v33 = vsel %vm512_vm3, %v1497_v9, %v1499_v32  ;;  %v1509_v16 = vadd.f32 %v1505_v4, %v2806_v8  ;;  %v1824_v4 = vld [vmem:[%s2441_s25 + $0x5] sm:$0x1] }
 0x780   : > { %v1508_v56 = vadd.f32 %v1504_v33, %v2808_v38 }
 0x785   : > { %v1540_v29 = vpop.permute.xlu1 %1539 }
 0x786   : > { %v1538_v26 = vpop.permute.xlu0 %1537  ;;  %v1620_v51 = vpop.permute.xlu2 %1619 }
 0x787   : > { %v1545_v41 = vsel %vm404_vm4, %v1538_v26, %v1540_v29 }
 0x788   : > { %v1549_v28 = vadd.f32 %v1545_v41, %v1508_v56 }
 0x78d   : > { %v1579_v36 = vpop.permute.xlu1 %1578 }
 0x78e   : > { %v1544_v22 = vpop.permute.xlu0 %1543  ;;  %v1626_v44 = vpop.permute.xlu2 %1625  ;;  %v1586_v58 = vsel %vm1057_vm8, %v1579_v36, %v1581_v54 }
 0x78f   : > { %v1546_v14 = vsel %vm404_vm4, %v1542_v2, %v1544_v22  ;;  %v1590_v11 = vadd.f32 %v1586_v58, %v1549_v28 }
 0x790   : > { %v1550_v21 = vadd.f32 %v1546_v14, %v1509_v16 }
 0x795   : > { %v1585_v35 = vpop.permute.xlu1 %1584 }
 0x796   : > { %v1583_v53 = vpop.permute.xlu0 %1582  ;;  %v1682_v37 = vpop.permute.xlu2 %1681 }
 0x797   : > { %v1587_v17 = vsel %vm1057_vm8, %v1583_v53, %v1585_v35 }
 0x798   : > { %v1591_v5 = vadd.f32 %v1587_v17, %v1550_v21 }
 0x79d   : > { %v1624_v27 = vpop.permute.xlu1 %1623 }
 0x79e   : > { %v1622_v42 = vpop.permute.xlu0 %1621  ;;  %v1721_v23 = vpop.permute.xlu2 %1720  ;;  %v1628_v24 = vsel %vm1085_vm9, %v1624_v27, %v1626_v44 }
 0x79f   : > { %v1627_v31 = vsel %vm1085_vm9, %v1620_v51, %v1622_v42  ;;  %v1632_v63 = vadd.f32 %v1628_v24, %v1591_v5 }
 0x7a0   : > { %v1631_v59 = vadd.f32 %v1627_v31, %v1590_v11 }
 0x7a1   : > { %v1649_v19 = vadd.f32 %v1645_v62, %v1632_v63 }
 0x7a2   : > { %v1648_v50 = vadd.f32 %v1643_v43, %v1631_v59 }
 0x7a5   : > { %v1680_v45 = vpop.permute.xlu1 %1679 }
 0x7a6   : > { %v1678_v47 = vpop.permute.xlu0 %1677  ;;  %v1760_v6 = vpop.permute.xlu2 %1759 }
 0x7a7   : > { %v1685_v18 = vsel %vm512_vm3, %v1678_v47, %v1680_v45 }
 0x7a8   : > { %v1689_v0 = vadd.f32 %v1685_v18, %v1648_v50 }
 0x7ad   : > { %v1719_v52 = vpop.permute.xlu1 %1718 }
 0x7ae   : > { %v1684_v60 = vpop.permute.xlu0 %1683  ;;  %v1766_v8 = vpop.permute.xlu2 %1765  ;;  %v1726_v39 = vsel %vm404_vm4, %v1719_v52, %v1721_v23 }
 0x7af   : > { %v1686_v40 = vsel %vm512_vm3, %v1682_v37, %v1684_v60  ;;  %v1730_v9 = vadd.f32 %v1726_v39, %v1689_v0 }
 0x7b0   : > { %v1690_v46 = vadd.f32 %v1686_v40, %v1649_v19 }
 0x7b5   : > { %v1725_v55 = vpop.permute.xlu1 %1724 }
 0x7b6   : > { %v1723_v38 = vpop.permute.xlu0 %1722  ;;  %v1805_v56 = vpop.permute.xlu2 %1804 }
 0x7b7   : > { %v1727_v13 = vsel %vm404_vm4, %v1723_v38, %v1725_v55  ;;  %v1814_v38 = vld [vmem:[%s2441_s25 + $0x4] sm:$0x1] }
 0x7b8   : > { %v1731_v32 = vadd.f32 %v1727_v13, %v1690_v46 }
 0x7bd   : > { %v1764_v10 = vpop.permute.xlu1 %1763 }
 0x7be   : > { %v1762_v3 = vpop.permute.xlu0 %1761  ;;  %v1768_v2 = vsel %vm1057_vm8, %v1764_v10, %v1766_v8 }
 0x7bf   : > { %v1767_v20 = vsel %vm1057_vm8, %v1760_v6, %v1762_v3  ;;  %v1772_v29 = vadd.f32 %v1768_v2, %v1731_v32 }
 0x7c0   : > { %v1771_v33 = vadd.f32 %v1767_v20, %v1730_v9 }
 0x7c5   : > { %v1803_v48 = vpop.permute.xlu1 %1802 }
 0x7c6   : > { %v1801_v1 = vpop.permute.xlu0 %1800 }
 0x7c7   : > { %v1808_v49 = vsel %vm1085_vm9, %v1801_v1, %v1803_v48 }
 0x7c8   : > { %v1812_v26 = vadd.f32 %v1808_v49, %v1771_v33 }
 0x7ca   : > { %v1825_v51 = vmul.f32 %v1812_v26, %v1812_v26 }
 0x7ce   : > { %v1807_v54 = vpop.permute.xlu0 %1806 }
 0x7cf   : > { %v1809_v36 = vsel %vm1085_vm9, %v1805_v56, %v1807_v54 }
 0x7d0   : > { %v1813_v22 = vadd.f32 %v1809_v36, %v1772_v29 }
 0x7d2   : > { %v1815_v35 = vadd.f32 %v1813_v22, %v1812_v26  ;;  %v1826_v53 = vmul.f32 %v1813_v22, %v1813_v22 }
 0x7d4   : > { %v1816_v44 = vrot.slane %v1815_v35, 4  ;;  %v1827_v27 = vadd.f32 %v1826_v53, %v1825_v51 }
 0x7d6   : > { %v1817_v42 = vadd.f32 %v1816_v44, %v1815_v35  ;;  %v1828_v37 = vrot.slane %v1827_v27, 4 }
 0x7d8   : > { %v1818_v45 = vrot.slane %v1817_v42, 2  ;;  %v1829_v47 = vadd.f32 %v1828_v37, %v1827_v27 }
 0x7da   : > { %v1819_v52 = vadd.f32 %v1818_v45, %v1817_v42  ;;  %v1830_v60 = vrot.slane %v1829_v47, 2 }
 0x7dc   : > { %v1820_v23 = vrot.slane %v1819_v52, 1  ;;  %v1831_v55 = vadd.f32 %v1830_v60, %v1829_v47 }
 0x7de   : > { %v1821_v61 = vadd.f32 %v1820_v23, %v1819_v52  ;;  %v1832_v6 = vrot.slane %v1831_v55, 1 }
 0x7e0   : > { %v1822_v41 = vadd.f32 %v1821_v61, %v1814_v38  ;;  %v1833_v7 = vadd.f32 %v1832_v6, %v1831_v55 }
 0x7e2   : > { %1823 = vst [vmem:[%s2441_s25 + $0x4] sm:$0x1] %v1822_v41  ;;  %v1834_v12 = vadd.f32 %v1833_v7, %v1824_v4 }
 0x7e4   : > { %1835 = vst [vmem:[%s2441_s25 + $0x5] sm:$0x1] %v1834_v12 }
 0x7e5 PF: > { %s15_s20 = sadd.s32 1, %s2007_s20   ;;  %s2965_s18 = smov %s2003_s19 }
 0x7e6   : > { %p12_p5 = scmp.ge.s32.totalorder %s15_s20, 4   ;;  %s2966_s19 = smov %s2968_s21 }
 0x7e8   :  { %14 = sbr.rel (!%p12_p5) target bundleno = 2 (0x2), region = 77 }

</bundles_post_ra>
